<compile_context>
chip_gen: v7x
topology: tpu7x:2x2x1
jax: 0.10.0
libtpu: 0.0.40
codegen_flags: <defaults>
</compile_context>

<pallas_src>
import functools

import jax
import jax.numpy as jnp
from jax import lax
from jax.experimental import pallas as pl
from jax.experimental.pallas import tpu as pltpu

EPS = 1e-5  # GroupNorm default eps


def _round_up(v, m):
    return (v + m - 1) // m * m


# ---------------------------------------------------------------------------
# One stride-2 ConvBlock (+ GroupNorm(1) + ReLU, + optional fused avg-pool)
# as a single Pallas kernel, gridded over the batch dimension.
# ---------------------------------------------------------------------------
def _conv_block_kernel(x_ref, w_ref, p_ref, o_ref, *, offsets, L, We, Wo, Ho,
                       cout, norm, pool):
    """Implicit-GEMM conv block with the 4 taps folded into one contraction.

    x_ref: (ptot, Ce4)   bf16 reflect-padded + 2x2 space-to-depth input,
                         flat row-major (He, We) spatial rows, channels lanes.
    w_ref: (K, cout)     bf16 folded weights, K = 4 * Ce4 = 16 * Cin.
    p_ref: (3, cout)     f32 rows: [bias; gamma; beta].
    o_ref: (Ho*Wo, cout) f32 valid outputs (wrap columns dropped in-kernel),
                         or (1, cout) when pool=True.
    """
    # --- single big-K MXU contraction over all 4 folded taps ---------------
    xbig = jnp.concatenate([x_ref[pl.ds(off, L), :] for off in offsets],
                           axis=1)                              # (L, K) bf16
    y = jnp.dot(xbig, w_ref[...],
                preferred_element_type=jnp.float32)             # (L, cout) f32
    y = y + p_ref[0:1, :]                                       # bias

    # Valid flat rows: (l % We) < Wo.  Wrap-around columns of the flat
    # accumulator are excluded from stats / pool / output.  Generated
    # in-kernel (no mask input stream, no HBM bytes).
    row = lax.broadcasted_iota(jnp.int32, (L, cout), 0)
    mask = ((row % We) < Wo).astype(jnp.float32)

    if norm:
        # GroupNorm(num_groups=1) == stats over (C, H, W), biased variance.
        # Two-pass (mean-subtracted) form: avoids one-pass f32 cancellation.
        inv_cnt = 1.0 / float(Ho * Wo * cout)
        mean = jnp.sum(y * mask) * inv_cnt
        d = (y - mean) * mask
        var = jnp.sum(d * d) * inv_cnt
        y = (y - mean) * lax.rsqrt(var + EPS)
        y = y * p_ref[1:2, :] + p_ref[2:3, :]

    y = jnp.maximum(y, 0.0)                                     # ReLU

    if pool:
        # Fused AdaptiveAvgPool2d(1): mean over valid spatial positions.
        o_ref[...] = (jnp.sum(y * mask, axis=0, keepdims=True)
                      * (1.0 / float(Ho * Wo)))
    else:
        # Drop the We-Wo wrap columns in-kernel (compacting row copies) so the
        # next layer consumes a clean flat channels-last tensor directly.
        for ho in range(Ho):
            o_ref[pl.ds(ho * Wo, Wo), :] = y[ho * We: ho * We + Wo, :]


def _conv_block_call(z, wbig, pvec, *, We, Wo, Ho, norm, pool):
    N, ptot, ce4 = z.shape
    K, cout = wbig.shape
    L = Ho * We
    offsets = (0, 1, We, We + 1)          # (th, tw) taps of the s2d k=2 conv
    kern = functools.partial(_conv_block_kernel, offsets=offsets, L=L, We=We,
                             Wo=Wo, Ho=Ho, cout=cout, norm=norm, pool=pool)
    out_rows = 1 if pool else Ho * Wo
    return pl.pallas_call(
        kern,
        out_shape=jax.ShapeDtypeStruct((N, out_rows, cout), jnp.float32),
        grid=(N,),
        in_specs=[
            pl.BlockSpec((None, ptot, ce4), lambda n: (n, 0, 0)),
            pl.BlockSpec((K, cout), lambda n: (0, 0)),
            pl.BlockSpec((3, cout), lambda n: (0, 0)),
        ],
        out_specs=pl.BlockSpec((None, out_rows, cout), lambda n: (n, 0, 0)),
        compiler_params=pltpu.CompilerParams(
            dimension_semantics=("parallel",)),
    )(z, wbig, pvec)


def _fold_stride2_weights(w):
    """(cout, cin, 4, 4) OIHW -> (16*cin, cout) folded weights.

    K index = ((th*2 + tw) * 4 + sh*2 + sw) * cin + ci, matching the
    in-kernel tap-major concat order and the XLA-side space-to-depth channel
    order (sh, sw, ci).
    """
    cout, cin = w.shape[0], w.shape[1]
    w6 = w.reshape(cout, cin, 2, 2, 2, 2)        # (co, ci, th, sh, tw, sw)
    return jnp.transpose(w6, (2, 4, 3, 5, 1, 0)).reshape(16 * cin, cout)


# ---------------------------------------------------------------------------
# Style_Encoder: parameters + forward
# ---------------------------------------------------------------------------
def init_style_encoder_params(key, conv_dim=8):
    # Mirrors the PyTorch __init__:
    #   ConvBlock(3, d, 7, 1, 3, norm='none'); 2x ConvBlock(c, 2c, 4, 2, 1, 'ln')
    #   2x ConvBlock(c, c, 4, 2, 1, 'ln'); AdaptiveAvgPool2d(1)
    specs = [(3, conv_dim, 7, 1, 3, False)]
    curr = conv_dim
    for _ in range(2):
        specs.append((curr, curr * 2, 4, 2, 1, True))
        curr *= 2
    for _ in range(2):
        specs.append((curr, curr, 4, 2, 1, True))

    params = []
    for (cin, cout, k, s, p, norm) in specs:
        key, kw, kb, kg, kbe = jax.random.split(key, 5)
        fan_in = cin * k * k
        w = jax.random.normal(kw, (cout, cin, k, k), jnp.float32) / jnp.sqrt(fan_in)
        b = 0.1 * jax.random.normal(kb, (cout,), jnp.float32)
        gamma = (1.0 + 0.1 * jax.random.normal(kg, (cout,), jnp.float32)) if norm else None
        beta = (0.1 * jax.random.normal(kbe, (cout,), jnp.float32)) if norm else None
        params.append(dict(w=w, b=b, gamma=gamma, beta=beta, k=k, s=s, p=p, norm=norm))
    return params, curr


def style_encoder_forward(params, x_nchw, compute_dtype=jnp.bfloat16):
    """NCHW float32 in -> (N, C, 1, 1) float32 out (matches the PyTorch module)."""
    n_layers = len(params)

    # ---- layer 0: 3-channel 7x7 stem kept in XLA (lane-density fix) --------
    l0 = params[0]
    p0 = l0["p"]
    a = jnp.transpose(x_nchw, (0, 2, 3, 1))                         # NHWC
    a = jnp.pad(a, ((0, 0), (p0, p0), (p0, p0), (0, 0)), mode="reflect")
    w0 = jnp.transpose(l0["w"], (2, 3, 1, 0))                       # HWIO
    a = lax.conv_general_dilated(a, w0, (1, 1), "VALID",
                                 dimension_numbers=("NHWC", "HWIO", "NHWC"))
    a = jnp.maximum(a + l0["b"][None, None, None, :], 0.0)          # (N,H,W,C0)

    # ---- layers 1..4 in Pallas (last one fuses AdaptiveAvgPool2d(1)) -------
    for li in range(1, n_layers):
        layer = params[li]
        N, Hi, Wi, C = a.shape
        assert layer["k"] == 4 and layer["s"] == 2 and layer["p"] == 1
        assert Hi % 2 == 0 and Wi % 2 == 0
        cout = layer["w"].shape[0]
        He, We = Hi // 2 + 1, Wi // 2 + 1
        Ho, Wo = Hi // 2, Wi // 2

        # Reflect pad + 2x2 space-to-depth -> flat channels-last operand.
        # This (plus the tiny tail pad) is the only XLA glue per boundary.
        ap = jnp.pad(a, ((0, 0), (1, 1), (1, 1), (0, 0)), mode="reflect")
        z = ap.reshape(N, He, 2, We, 2, C).transpose(0, 1, 3, 2, 4, 5)
        z = z.reshape(N, He * We, 4 * C).astype(compute_dtype)
        ptot = _round_up(He * We + 1, 8)       # tail rows so every tap slice fits
        z = jnp.pad(z, ((0, 0), (0, ptot - He * We), (0, 0)))

        wbig = _fold_stride2_weights(layer["w"]).astype(compute_dtype)
        gamma = layer["gamma"] if layer["gamma"] is not None else jnp.ones((cout,), jnp.float32)
        beta = layer["beta"] if layer["beta"] is not None else jnp.zeros((cout,), jnp.float32)
        pvec = jnp.stack([layer["b"], gamma, beta], axis=0)          # (3, cout)

        pool = (li == n_layers - 1)            # fuse AdaptiveAvgPool2d(1)
        y = _conv_block_call(z, wbig, pvec, We=We, Wo=Wo, Ho=Ho,
                             norm=layer["norm"], pool=pool)
        if pool:
            return jnp.transpose(y, (0, 2, 1)).reshape(N, cout, 1, 1)
        a = y.reshape(N, Ho, Wo, cout)         # flat channels-last, valid-only


# ---------------------------------------------------------------------------
# Pure-JAX reference (for correctness check)
# ---------------------------------------------------------------------------
def style_encoder_ref(params, x_nchw):
    x = x_nchw
    for layer in params:
        p = layer["p"]
        xp = jnp.pad(x, ((0, 0), (0, 0), (p, p), (p, p)), mode="reflect")
        y = lax.conv_general_dilated(
            xp, layer["w"], (layer["s"], layer["s"]), "VALID",
            dimension_numbers=("NCHW", "OIHW", "NCHW"))
        y = y + layer["b"][None, :, None, None]
        if layer["norm"]:
            mean = jnp.mean(y, axis=(1, 2, 3), keepdims=True)
            var = jnp.mean((y - mean) ** 2, axis=(1, 2, 3), keepdims=True)
            y = (y - mean) * lax.rsqrt(var + EPS)
            y = y * layer["gamma"][None, :, None, None] + layer["beta"][None, :, None, None]
        x = jnp.maximum(y, 0.0)
    return jnp.mean(x, axis=(2, 3), keepdims=True)


if __name__ == "__main__":
    key = jax.random.PRNGKey(0)
    kx, kp = jax.random.split(key)

    # Small shapes consistent with the module: RGB input, conv_dim=8.
    x = jax.random.normal(kx, (2, 3, 32, 32), jnp.float32)   # NCHW, like PyTorch
    params, curr_dim = init_style_encoder_params(kp, conv_dim=8)

    fwd = jax.jit(lambda inp: style_encoder_forward(params, inp))
    out = jax.block_until_ready(fwd(x))
    assert out.shape == (2, curr_dim, 1, 1), out.shape

    ref = jax.block_until_ready(style_encoder_ref(params, x))
    # bf16 MXU operands (f32 accumulation + f32 GroupNorm) -> loosened abs tol.
    max_diff = float(jnp.max(jnp.abs(out - ref)))
    assert max_diff < 5e-2, f"mismatch vs reference: max|diff|={max_diff}"

    print("KERNEL_OK")
</pallas_src>

<mosaic_0001>
module attributes {stable_mosaic.version = 11 : i64} {
  func.func @_conv_block_kernel(%arg0: i32, %arg1: memref<1x296x32xbf16, #tpu.memory_space<vmem>>, %arg2: memref<128x16xbf16, #tpu.memory_space<vmem>>, %arg3: memref<3x16xf32, #tpu.memory_space<vmem>>, %arg4: memref<1x256x16xf32, #tpu.memory_space<vmem>>) attributes {dimension_semantics = [#tpu.dimension_semantics<parallel>], iteration_bounds = array<i64: 2>, scalar_prefetch = 0 : i64, scratch_operands = 0 : i64, tpu.core_type = #tpu.core_type<tc>, window_params = [{transform_indices = @transform_0, window_bounds = array<i64: 1, 296, 32>}, {pipeline_mode = #tpu.pipeline_mode<synchronous>, transform_indices = @transform_1, window_bounds = array<i64: 128, 16>}, {pipeline_mode = #tpu.pipeline_mode<synchronous>, transform_indices = @transform_2, window_bounds = array<i64: 3, 16>}, {transform_indices = @transform_3, window_bounds = array<i64: 1, 256, 16>}]} {
    %c0 = arith.constant 0 : index
    %c0_0 = arith.constant 0 : index
    %c0_1 = arith.constant 0 : index
    %0 = vector.load %arg1[%c0, %c0_0, %c0_1] : memref<1x296x32xbf16, #tpu.memory_space<vmem>>, vector<1x272x32xbf16>
    %1 = vector.shape_cast %0 : vector<1x272x32xbf16> to vector<272x32xbf16>
    %c0_2 = arith.constant 0 : index
    %c1 = arith.constant 1 : index
    %c0_3 = arith.constant 0 : index
    %2 = vector.load %arg1[%c0_2, %c1, %c0_3] : memref<1x296x32xbf16, #tpu.memory_space<vmem>>, vector<1x272x32xbf16>
    %3 = vector.shape_cast %2 : vector<1x272x32xbf16> to vector<272x32xbf16>
    %c0_4 = arith.constant 0 : index
    %c17 = arith.constant 17 : index
    %c0_5 = arith.constant 0 : index
    %4 = vector.load %arg1[%c0_4, %c17, %c0_5] : memref<1x296x32xbf16, #tpu.memory_space<vmem>>, vector<1x272x32xbf16>
    %5 = vector.shape_cast %4 : vector<1x272x32xbf16> to vector<272x32xbf16>
    %c0_6 = arith.constant 0 : index
    %c18 = arith.constant 18 : index
    %c0_7 = arith.constant 0 : index
    %6 = vector.load %arg1[%c0_6, %c18, %c0_7] : memref<1x296x32xbf16, #tpu.memory_space<vmem>>, vector<1x272x32xbf16>
    %7 = vector.shape_cast %6 : vector<1x272x32xbf16> to vector<272x32xbf16>
    %8 = tpu.concatenate %1, %3, %5, %7 in 1 : vector<272x32xbf16>, vector<272x32xbf16>, vector<272x32xbf16>, vector<272x32xbf16> -> vector<272x128xbf16>
    %c0_8 = arith.constant 0 : index
    %c0_9 = arith.constant 0 : index
    %9 = vector.load %arg2[%c0_8, %c0_9] : memref<128x16xbf16, #tpu.memory_space<vmem>>, vector<128x16xbf16>
    %cst = arith.constant dense<0.000000e+00> : vector<272x16xf32>
    %10 = tpu.matmul %8, %9, %cst {dimension_numbers = #tpu.dot_dimension_numbers<[1], [0], [0], [1], [0, 0, 1, 1], [], []>} : vector<272x128xbf16>, vector<128x16xbf16>, vector<272x16xf32> -> vector<272x16xf32>
    %c0_10 = arith.constant 0 : index
    %c0_11 = arith.constant 0 : index
    %11 = vector.load %arg3[%c0_10, %c0_11] : memref<3x16xf32, #tpu.memory_space<vmem>>, vector<1x16xf32>
    %12 = vector.broadcast %11 : vector<1x16xf32> to vector<272x16xf32>
    %13 = arith.addf %10, %12 : vector<272x16xf32>
    %14 = tpu.iota {dimensions = array<i32: 0>} : vector<272x16xi32>
    %c17_i32 = arith.constant 17 : i32
    %c0_i32 = arith.constant 0 : i32
    %15 = arith.cmpi eq, %c17_i32, %c0_i32 : i32
    %c1_i32 = arith.constant 1 : i32
    %16 = arith.select %15, %c1_i32, %c17_i32 : i32
    %17 = vector.broadcast %16 : i32 to vector<272x16xi32>
    %18 = arith.remsi %14, %17 : vector<272x16xi32>
    %c0_i32_12 = arith.constant 0 : i32
    %19 = vector.broadcast %c0_i32_12 : i32 to vector<272x16xi32>
    %20 = arith.cmpi ne, %18, %19 : vector<272x16xi32>
    %c0_i32_13 = arith.constant 0 : i32
    %21 = vector.broadcast %c0_i32_13 : i32 to vector<272x16xi32>
    %22 = arith.cmpi slt, %18, %21 : vector<272x16xi32>
    %c0_i32_14 = arith.constant 0 : i32
    %23 = arith.cmpi slt, %16, %c0_i32_14 : i32
    %24 = vector.broadcast %23 : i1 to vector<272x16xi1>
    %25 = vector.broadcast %24 : vector<272x16xi1> to vector<272x16xi1>
    %26 = arith.xori %22, %25 : vector<272x16xi1>
    %27 = arith.andi %26, %20 : vector<272x16xi1>
    %28 = vector.broadcast %16 : i32 to vector<272x16xi32>
    %29 = arith.addi %18, %28 : vector<272x16xi32>
    %30 = arith.select %27, %29, %18 : vector<272x16xi1>, vector<272x16xi32>
    %c16_i32 = arith.constant 16 : i32
    %31 = vector.broadcast %c16_i32 : i32 to vector<272x16xi32>
    %32 = arith.cmpi slt, %30, %31 : vector<272x16xi32>
    %33 = arith.extui %32 : vector<272x16xi1> to vector<272x16xi32>
    %34 = arith.sitofp %33 : vector<272x16xi32> to vector<272x16xf32>
    %35 = arith.mulf %13, %34 : vector<272x16xf32>
    %36 = vector.shape_cast %35 : vector<272x16xf32> to vector<1x272x16xf32>
    %cst_15 = arith.constant dense<0.000000e+00> : vector<1xf32>
    %37 = vector.multi_reduction <add>, %36, %cst_15 [1, 2] : vector<1x272x16xf32> to vector<1xf32>
    %38 = vector.shape_cast %37 : vector<1xf32> to vector<1x1x1xf32>
    %39 = vector.extract %38[0, 0, 0] : f32 from vector<1x1x1xf32>
    %cst_16 = arith.constant 2.44140625E-4 : f32
    %40 = arith.mulf %39, %cst_16 : f32
    %41 = vector.broadcast %40 : f32 to vector<272x16xf32>
    %42 = arith.subf %13, %41 : vector<272x16xf32>
    %43 = arith.mulf %42, %34 : vector<272x16xf32>
    %44 = arith.mulf %43, %43 : vector<272x16xf32>
    %45 = vector.shape_cast %44 : vector<272x16xf32> to vector<1x272x16xf32>
    %cst_17 = arith.constant dense<0.000000e+00> : vector<1xf32>
    %46 = vector.multi_reduction <add>, %45, %cst_17 [1, 2] : vector<1x272x16xf32> to vector<1xf32>
    %47 = vector.shape_cast %46 : vector<1xf32> to vector<1x1x1xf32>
    %48 = vector.extract %47[0, 0, 0] : f32 from vector<1x1x1xf32>
    %cst_18 = arith.constant 2.44140625E-4 : f32
    %49 = arith.mulf %48, %cst_18 : f32
    %50 = vector.broadcast %40 : f32 to vector<272x16xf32>
    %51 = arith.subf %13, %50 : vector<272x16xf32>
    %cst_19 = arith.constant 9.99999974E-6 : f32
    %52 = arith.addf %49, %cst_19 : f32
    %53 = math.rsqrt %52 : f32
    %54 = vector.broadcast %53 : f32 to vector<272x16xf32>
    %55 = arith.mulf %51, %54 : vector<272x16xf32>
    %c1_20 = arith.constant 1 : index
    %c0_21 = arith.constant 0 : index
    %56 = vector.load %arg3[%c1_20, %c0_21] : memref<3x16xf32, #tpu.memory_space<vmem>>, vector<1x16xf32>
    %57 = vector.broadcast %56 : vector<1x16xf32> to vector<272x16xf32>
    %58 = arith.mulf %55, %57 : vector<272x16xf32>
    %c2 = arith.constant 2 : index
    %c0_22 = arith.constant 0 : index
    %59 = vector.load %arg3[%c2, %c0_22] : memref<3x16xf32, #tpu.memory_space<vmem>>, vector<1x16xf32>
    %60 = vector.broadcast %59 : vector<1x16xf32> to vector<272x16xf32>
    %61 = arith.addf %58, %60 : vector<272x16xf32>
    %cst_23 = arith.constant 0.000000e+00 : f32
    %62 = vector.broadcast %cst_23 : f32 to vector<272x16xf32>
    %63 = arith.maximumf %61, %62 : vector<272x16xf32>
    %64 = vector.extract_strided_slice %63 {offsets = [0, 0], sizes = [16, 16], strides = [1, 1]} : vector<272x16xf32> to vector<16x16xf32>
    %c0_24 = arith.constant 0 : index
    %c0_25 = arith.constant 0 : index
    %c0_26 = arith.constant 0 : index
    %65 = vector.load %arg4[%c0_24, %c0_25, %c0_26] : memref<1x256x16xf32, #tpu.memory_space<vmem>>, vector<1x16x16xf32>
    %66 = vector.shape_cast %65 : vector<1x16x16xf32> to vector<16x16xf32>
    %67 = vector.shape_cast %64 : vector<16x16xf32> to vector<1x16x16xf32>
    tpu.vector_store %arg4[%c0_24, %c0_25, %c0_26], %67 {strides = array<i32>} : memref<1x256x16xf32, #tpu.memory_space<vmem>>, vector<1x16x16xf32>,
    %68 = vector.extract_strided_slice %63 {offsets = [17, 0], sizes = [16, 16], strides = [1, 1]} : vector<272x16xf32> to vector<16x16xf32>
    %c0_27 = arith.constant 0 : index
    %c16 = arith.constant 16 : index
    %c0_28 = arith.constant 0 : index
    %69 = vector.load %arg4[%c0_27, %c16, %c0_28] : memref<1x256x16xf32, #tpu.memory_space<vmem>>, vector<1x16x16xf32>
    %70 = vector.shape_cast %69 : vector<1x16x16xf32> to vector<16x16xf32>
    %71 = vector.shape_cast %68 : vector<16x16xf32> to vector<1x16x16xf32>
    tpu.vector_store %arg4[%c0_27, %c16, %c0_28], %71 {strides = array<i32>} : memref<1x256x16xf32, #tpu.memory_space<vmem>>, vector<1x16x16xf32>,
    %72 = vector.extract_strided_slice %63 {offsets = [34, 0], sizes = [16, 16], strides = [1, 1]} : vector<272x16xf32> to vector<16x16xf32>
    %c0_29 = arith.constant 0 : index
    %c32 = arith.constant 32 : index
    %c0_30 = arith.constant 0 : index
    %73 = vector.load %arg4[%c0_29, %c32, %c0_30] : memref<1x256x16xf32, #tpu.memory_space<vmem>>, vector<1x16x16xf32>
    %74 = vector.shape_cast %73 : vector<1x16x16xf32> to vector<16x16xf32>
    %75 = vector.shape_cast %72 : vector<16x16xf32> to vector<1x16x16xf32>
    tpu.vector_store %arg4[%c0_29, %c32, %c0_30], %75 {strides = array<i32>} : memref<1x256x16xf32, #tpu.memory_space<vmem>>, vector<1x16x16xf32>,
    %76 = vector.extract_strided_slice %63 {offsets = [51, 0], sizes = [16, 16], strides = [1, 1]} : vector<272x16xf32> to vector<16x16xf32>
    %c0_31 = arith.constant 0 : index
    %c48 = arith.constant 48 : index
    %c0_32 = arith.constant 0 : index
    %77 = vector.load %arg4[%c0_31, %c48, %c0_32] : memref<1x256x16xf32, #tpu.memory_space<vmem>>, vector<1x16x16xf32>
    %78 = vector.shape_cast %77 : vector<1x16x16xf32> to vector<16x16xf32>
    %79 = vector.shape_cast %76 : vector<16x16xf32> to vector<1x16x16xf32>
    tpu.vector_store %arg4[%c0_31, %c48, %c0_32], %79 {strides = array<i32>} : memref<1x256x16xf32, #tpu.memory_space<vmem>>, vector<1x16x16xf32>,
    %80 = vector.extract_strided_slice %63 {offsets = [68, 0], sizes = [16, 16], strides = [1, 1]} : vector<272x16xf32> to vector<16x16xf32>
    %c0_33 = arith.constant 0 : index
    %c64 = arith.constant 64 : index
    %c0_34 = arith.constant 0 : index
    %81 = vector.load %arg4[%c0_33, %c64, %c0_34] : memref<1x256x16xf32, #tpu.memory_space<vmem>>, vector<1x16x16xf32>
    %82 = vector.shape_cast %81 : vector<1x16x16xf32> to vector<16x16xf32>
    %83 = vector.shape_cast %80 : vector<16x16xf32> to vector<1x16x16xf32>
    tpu.vector_store %arg4[%c0_33, %c64, %c0_34], %83 {strides = array<i32>} : memref<1x256x16xf32, #tpu.memory_space<vmem>>, vector<1x16x16xf32>,
    %84 = vector.extract_strided_slice %63 {offsets = [85, 0], sizes = [16, 16], strides = [1, 1]} : vector<272x16xf32> to vector<16x16xf32>
    %c0_35 = arith.constant 0 : index
    %c80 = arith.constant 80 : index
    %c0_36 = arith.constant 0 : index
    %85 = vector.load %arg4[%c0_35, %c80, %c0_36] : memref<1x256x16xf32, #tpu.memory_space<vmem>>, vector<1x16x16xf32>
    %86 = vector.shape_cast %85 : vector<1x16x16xf32> to vector<16x16xf32>
    %87 = vector.shape_cast %84 : vector<16x16xf32> to vector<1x16x16xf32>
    tpu.vector_store %arg4[%c0_35, %c80, %c0_36], %87 {strides = array<i32>} : memref<1x256x16xf32, #tpu.memory_space<vmem>>, vector<1x16x16xf32>,
    %88 = vector.extract_strided_slice %63 {offsets = [102, 0], sizes = [16, 16], strides = [1, 1]} : vector<272x16xf32> to vector<16x16xf32>
    %c0_37 = arith.constant 0 : index
    %c96 = arith.constant 96 : index
    %c0_38 = arith.constant 0 : index
    %89 = vector.load %arg4[%c0_37, %c96, %c0_38] : memref<1x256x16xf32, #tpu.memory_space<vmem>>, vector<1x16x16xf32>
    %90 = vector.shape_cast %89 : vector<1x16x16xf32> to vector<16x16xf32>
    %91 = vector.shape_cast %88 : vector<16x16xf32> to vector<1x16x16xf32>
    tpu.vector_store %arg4[%c0_37, %c96, %c0_38], %91 {strides = array<i32>} : memref<1x256x16xf32, #tpu.memory_space<vmem>>, vector<1x16x16xf32>,
    %92 = vector.extract_strided_slice %63 {offsets = [119, 0], sizes = [16, 16], strides = [1, 1]} : vector<272x16xf32> to vector<16x16xf32>
    %c0_39 = arith.constant 0 : index
    %c112 = arith.constant 112 : index
    %c0_40 = arith.constant 0 : index
    %93 = vector.load %arg4[%c0_39, %c112, %c0_40] : memref<1x256x16xf32, #tpu.memory_space<vmem>>, vector<1x16x16xf32>
    %94 = vector.shape_cast %93 : vector<1x16x16xf32> to vector<16x16xf32>
    %95 = vector.shape_cast %92 : vector<16x16xf32> to vector<1x16x16xf32>
    tpu.vector_store %arg4[%c0_39, %c112, %c0_40], %95 {strides = array<i32>} : memref<1x256x16xf32, #tpu.memory_space<vmem>>, vector<1x16x16xf32>,
    %96 = vector.extract_strided_slice %63 {offsets = [136, 0], sizes = [16, 16], strides = [1, 1]} : vector<272x16xf32> to vector<16x16xf32>
    %c0_41 = arith.constant 0 : index
    %c128 = arith.constant 128 : index
    %c0_42 = arith.constant 0 : index
    %97 = vector.load %arg4[%c0_41, %c128, %c0_42] : memref<1x256x16xf32, #tpu.memory_space<vmem>>, vector<1x16x16xf32>
    %98 = vector.shape_cast %97 : vector<1x16x16xf32> to vector<16x16xf32>
    %99 = vector.shape_cast %96 : vector<16x16xf32> to vector<1x16x16xf32>
    tpu.vector_store %arg4[%c0_41, %c128, %c0_42], %99 {strides = array<i32>} : memref<1x256x16xf32, #tpu.memory_space<vmem>>, vector<1x16x16xf32>,
    %100 = vector.extract_strided_slice %63 {offsets = [153, 0], sizes = [16, 16], strides = [1, 1]} : vector<272x16xf32> to vector<16x16xf32>
    %c0_43 = arith.constant 0 : index
    %c144 = arith.constant 144 : index
    %c0_44 = arith.constant 0 : index
    %101 = vector.load %arg4[%c0_43, %c144, %c0_44] : memref<1x256x16xf32, #tpu.memory_space<vmem>>, vector<1x16x16xf32>
    %102 = vector.shape_cast %101 : vector<1x16x16xf32> to vector<16x16xf32>
    %103 = vector.shape_cast %100 : vector<16x16xf32> to vector<1x16x16xf32>
    tpu.vector_store %arg4[%c0_43, %c144, %c0_44], %103 {strides = array<i32>} : memref<1x256x16xf32, #tpu.memory_space<vmem>>, vector<1x16x16xf32>,
    %104 = vector.extract_strided_slice %63 {offsets = [170, 0], sizes = [16, 16], strides = [1, 1]} : vector<272x16xf32> to vector<16x16xf32>
    %c0_45 = arith.constant 0 : index
    %c160 = arith.constant 160 : index
    %c0_46 = arith.constant 0 : index
    %105 = vector.load %arg4[%c0_45, %c160, %c0_46] : memref<1x256x16xf32, #tpu.memory_space<vmem>>, vector<1x16x16xf32>
    %106 = vector.shape_cast %105 : vector<1x16x16xf32> to vector<16x16xf32>
    %107 = vector.shape_cast %104 : vector<16x16xf32> to vector<1x16x16xf32>
    tpu.vector_store %arg4[%c0_45, %c160, %c0_46], %107 {strides = array<i32>} : memref<1x256x16xf32, #tpu.memory_space<vmem>>, vector<1x16x16xf32>,
    %108 = vector.extract_strided_slice %63 {offsets = [187, 0], sizes = [16, 16], strides = [1, 1]} : vector<272x16xf32> to vector<16x16xf32>
    %c0_47 = arith.constant 0 : index
    %c176 = arith.constant 176 : index
    %c0_48 = arith.constant 0 : index
    %109 = vector.load %arg4[%c0_47, %c176, %c0_48] : memref<1x256x16xf32, #tpu.memory_space<vmem>>, vector<1x16x16xf32>
    %110 = vector.shape_cast %109 : vector<1x16x16xf32> to vector<16x16xf32>
    %111 = vector.shape_cast %108 : vector<16x16xf32> to vector<1x16x16xf32>
    tpu.vector_store %arg4[%c0_47, %c176, %c0_48], %111 {strides = array<i32>} : memref<1x256x16xf32, #tpu.memory_space<vmem>>, vector<1x16x16xf32>,
    %112 = vector.extract_strided_slice %63 {offsets = [204, 0], sizes = [16, 16], strides = [1, 1]} : vector<272x16xf32> to vector<16x16xf32>
    %c0_49 = arith.constant 0 : index
    %c192 = arith.constant 192 : index
    %c0_50 = arith.constant 0 : index
    %113 = vector.load %arg4[%c0_49, %c192, %c0_50] : memref<1x256x16xf32, #tpu.memory_space<vmem>>, vector<1x16x16xf32>
    %114 = vector.shape_cast %113 : vector<1x16x16xf32> to vector<16x16xf32>
    %115 = vector.shape_cast %112 : vector<16x16xf32> to vector<1x16x16xf32>
    tpu.vector_store %arg4[%c0_49, %c192, %c0_50], %115 {strides = array<i32>} : memref<1x256x16xf32, #tpu.memory_space<vmem>>, vector<1x16x16xf32>,
    %116 = vector.extract_strided_slice %63 {offsets = [221, 0], sizes = [16, 16], strides = [1, 1]} : vector<272x16xf32> to vector<16x16xf32>
    %c0_51 = arith.constant 0 : index
    %c208 = arith.constant 208 : index
    %c0_52 = arith.constant 0 : index
    %117 = vector.load %arg4[%c0_51, %c208, %c0_52] : memref<1x256x16xf32, #tpu.memory_space<vmem>>, vector<1x16x16xf32>
    %118 = vector.shape_cast %117 : vector<1x16x16xf32> to vector<16x16xf32>
    %119 = vector.shape_cast %116 : vector<16x16xf32> to vector<1x16x16xf32>
    tpu.vector_store %arg4[%c0_51, %c208, %c0_52], %119 {strides = array<i32>} : memref<1x256x16xf32, #tpu.memory_space<vmem>>, vector<1x16x16xf32>,
    %120 = vector.extract_strided_slice %63 {offsets = [238, 0], sizes = [16, 16], strides = [1, 1]} : vector<272x16xf32> to vector<16x16xf32>
    %c0_53 = arith.constant 0 : index
    %c224 = arith.constant 224 : index
    %c0_54 = arith.constant 0 : index
    %121 = vector.load %arg4[%c0_53, %c224, %c0_54] : memref<1x256x16xf32, #tpu.memory_space<vmem>>, vector<1x16x16xf32>
    %122 = vector.shape_cast %121 : vector<1x16x16xf32> to vector<16x16xf32>
    %123 = vector.shape_cast %120 : vector<16x16xf32> to vector<1x16x16xf32>
    tpu.vector_store %arg4[%c0_53, %c224, %c0_54], %123 {strides = array<i32>} : memref<1x256x16xf32, #tpu.memory_space<vmem>>, vector<1x16x16xf32>,
    %124 = vector.extract_strided_slice %63 {offsets = [255, 0], sizes = [16, 16], strides = [1, 1]} : vector<272x16xf32> to vector<16x16xf32>
    %c0_55 = arith.constant 0 : index
    %c240 = arith.constant 240 : index
    %c0_56 = arith.constant 0 : index
    %125 = vector.load %arg4[%c0_55, %c240, %c0_56] : memref<1x256x16xf32, #tpu.memory_space<vmem>>, vector<1x16x16xf32>
    %126 = vector.shape_cast %125 : vector<1x16x16xf32> to vector<16x16xf32>
    %127 = vector.shape_cast %124 : vector<16x16xf32> to vector<1x16x16xf32>
    tpu.vector_store %arg4[%c0_55, %c240, %c0_56], %127 {strides = array<i32>} : memref<1x256x16xf32, #tpu.memory_space<vmem>>, vector<1x16x16xf32>,
    return
  }
  func.func @transform_0(%arg0: i32) -> (i32, i32, i32) {
    %c0_i32 = arith.constant 0 : i32
    %c0_i32_0 = arith.constant 0 : i32
    %c0_i32_1 = arith.constant 0 : i32
    return %arg0, %c0_i32, %c0_i32_0 : i32, i32, i32
  }
  func.func @transform_1(%arg0: i32) -> (i32, i32) {
    %c0_i32 = arith.constant 0 : i32
    %c0_i32_0 = arith.constant 0 : i32
    %c0_i32_1 = arith.constant 0 : i32
    return %c0_i32, %c0_i32_0 : i32, i32
  }
  func.func @transform_2(%arg0: i32) -> (i32, i32) {
    %c0_i32 = arith.constant 0 : i32
    %c0_i32_0 = arith.constant 0 : i32
    %c0_i32_1 = arith.constant 0 : i32
    return %c0_i32, %c0_i32_0 : i32, i32
  }
  func.func @transform_3(%arg0: i32) -> (i32, i32, i32) {
    %c0_i32 = arith.constant 0 : i32
    %c0_i32_0 = arith.constant 0 : i32
    %c0_i32_1 = arith.constant 0 : i32
    return %arg0, %c0_i32, %c0_i32_0 : i32, i32, i32
  }
}

module attributes {stable_mosaic.version = 11 : i64} {
  func.func @_conv_block_kernel(%arg0: i32, %arg1: memref<1x88x64xbf16, #tpu.memory_space<vmem>>, %arg2: memref<256x32xbf16, #tpu.memory_space<vmem>>, %arg3: memref<3x32xf32, #tpu.memory_space<vmem>>, %arg4: memref<1x64x32xf32, #tpu.memory_space<vmem>>) attributes {dimension_semantics = [#tpu.dimension_semantics<parallel>], iteration_bounds = array<i64: 2>, scalar_prefetch = 0 : i64, scratch_operands = 0 : i64, tpu.core_type = #tpu.core_type<tc>, window_params = [{transform_indices = @transform_0, window_bounds = array<i64: 1, 88, 64>}, {pipeline_mode = #tpu.pipeline_mode<synchronous>, transform_indices = @transform_1, window_bounds = array<i64: 256, 32>}, {pipeline_mode = #tpu.pipeline_mode<synchronous>, transform_indices = @transform_2, window_bounds = array<i64: 3, 32>}, {transform_indices = @transform_3, window_bounds = array<i64: 1, 64, 32>}]} {
    %c0 = arith.constant 0 : index
    %c0_0 = arith.constant 0 : index
    %c0_1 = arith.constant 0 : index
    %0 = vector.load %arg1[%c0, %c0_0, %c0_1] : memref<1x88x64xbf16, #tpu.memory_space<vmem>>, vector<1x72x64xbf16>
    %1 = vector.shape_cast %0 : vector<1x72x64xbf16> to vector<72x64xbf16>
    %c0_2 = arith.constant 0 : index
    %c1 = arith.constant 1 : index
    %c0_3 = arith.constant 0 : index
    %2 = vector.load %arg1[%c0_2, %c1, %c0_3] : memref<1x88x64xbf16, #tpu.memory_space<vmem>>, vector<1x72x64xbf16>
    %3 = vector.shape_cast %2 : vector<1x72x64xbf16> to vector<72x64xbf16>
    %c0_4 = arith.constant 0 : index
    %c9 = arith.constant 9 : index
    %c0_5 = arith.constant 0 : index
    %4 = vector.load %arg1[%c0_4, %c9, %c0_5] : memref<1x88x64xbf16, #tpu.memory_space<vmem>>, vector<1x72x64xbf16>
    %5 = vector.shape_cast %4 : vector<1x72x64xbf16> to vector<72x64xbf16>
    %c0_6 = arith.constant 0 : index
    %c10 = arith.constant 10 : index
    %c0_7 = arith.constant 0 : index
    %6 = vector.load %arg1[%c0_6, %c10, %c0_7] : memref<1x88x64xbf16, #tpu.memory_space<vmem>>, vector<1x72x64xbf16>
    %7 = vector.shape_cast %6 : vector<1x72x64xbf16> to vector<72x64xbf16>
    %8 = tpu.concatenate %1, %3, %5, %7 in 1 : vector<72x64xbf16>, vector<72x64xbf16>, vector<72x64xbf16>, vector<72x64xbf16> -> vector<72x256xbf16>
    %c0_8 = arith.constant 0 : index
    %c0_9 = arith.constant 0 : index
    %9 = vector.load %arg2[%c0_8, %c0_9] : memref<256x32xbf16, #tpu.memory_space<vmem>>, vector<256x32xbf16>
    %cst = arith.constant dense<0.000000e+00> : vector<72x32xf32>
    %10 = tpu.matmul %8, %9, %cst {dimension_numbers = #tpu.dot_dimension_numbers<[1], [0], [0], [1], [0, 0, 1, 1], [], []>} : vector<72x256xbf16>, vector<256x32xbf16>, vector<72x32xf32> -> vector<72x32xf32>
    %c0_10 = arith.constant 0 : index
    %c0_11 = arith.constant 0 : index
    %11 = vector.load %arg3[%c0_10, %c0_11] : memref<3x32xf32, #tpu.memory_space<vmem>>, vector<1x32xf32>
    %12 = vector.broadcast %11 : vector<1x32xf32> to vector<72x32xf32>
    %13 = arith.addf %10, %12 : vector<72x32xf32>
    %14 = tpu.iota {dimensions = array<i32: 0>} : vector<72x32xi32>
    %c9_i32 = arith.constant 9 : i32
    %c0_i32 = arith.constant 0 : i32
    %15 = arith.cmpi eq, %c9_i32, %c0_i32 : i32
    %c1_i32 = arith.constant 1 : i32
    %16 = arith.select %15, %c1_i32, %c9_i32 : i32
    %17 = vector.broadcast %16 : i32 to vector<72x32xi32>
    %18 = arith.remsi %14, %17 : vector<72x32xi32>
    %c0_i32_12 = arith.constant 0 : i32
    %19 = vector.broadcast %c0_i32_12 : i32 to vector<72x32xi32>
    %20 = arith.cmpi ne, %18, %19 : vector<72x32xi32>
    %c0_i32_13 = arith.constant 0 : i32
    %21 = vector.broadcast %c0_i32_13 : i32 to vector<72x32xi32>
    %22 = arith.cmpi slt, %18, %21 : vector<72x32xi32>
    %c0_i32_14 = arith.constant 0 : i32
    %23 = arith.cmpi slt, %16, %c0_i32_14 : i32
    %24 = vector.broadcast %23 : i1 to vector<72x32xi1>
    %25 = vector.broadcast %24 : vector<72x32xi1> to vector<72x32xi1>
    %26 = arith.xori %22, %25 : vector<72x32xi1>
    %27 = arith.andi %26, %20 : vector<72x32xi1>
    %28 = vector.broadcast %16 : i32 to vector<72x32xi32>
    %29 = arith.addi %18, %28 : vector<72x32xi32>
    %30 = arith.select %27, %29, %18 : vector<72x32xi1>, vector<72x32xi32>
    %c8_i32 = arith.constant 8 : i32
    %31 = vector.broadcast %c8_i32 : i32 to vector<72x32xi32>
    %32 = arith.cmpi slt, %30, %31 : vector<72x32xi32>
    %33 = arith.extui %32 : vector<72x32xi1> to vector<72x32xi32>
    %34 = arith.sitofp %33 : vector<72x32xi32> to vector<72x32xf32>
    %35 = arith.mulf %13, %34 : vector<72x32xf32>
    %36 = vector.shape_cast %35 : vector<72x32xf32> to vector<1x72x32xf32>
    %cst_15 = arith.constant dense<0.000000e+00> : vector<1xf32>
    %37 = vector.multi_reduction <add>, %36, %cst_15 [1, 2] : vector<1x72x32xf32> to vector<1xf32>
    %38 = vector.shape_cast %37 : vector<1xf32> to vector<1x1x1xf32>
    %39 = vector.extract %38[0, 0, 0] : f32 from vector<1x1x1xf32>
    %cst_16 = arith.constant 4.8828125E-4 : f32
    %40 = arith.mulf %39, %cst_16 : f32
    %41 = vector.broadcast %40 : f32 to vector<72x32xf32>
    %42 = arith.subf %13, %41 : vector<72x32xf32>
    %43 = arith.mulf %42, %34 : vector<72x32xf32>
    %44 = arith.mulf %43, %43 : vector<72x32xf32>
    %45 = vector.shape_cast %44 : vector<72x32xf32> to vector<1x72x32xf32>
    %cst_17 = arith.constant dense<0.000000e+00> : vector<1xf32>
    %46 = vector.multi_reduction <add>, %45, %cst_17 [1, 2] : vector<1x72x32xf32> to vector<1xf32>
    %47 = vector.shape_cast %46 : vector<1xf32> to vector<1x1x1xf32>
    %48 = vector.extract %47[0, 0, 0] : f32 from vector<1x1x1xf32>
    %cst_18 = arith.constant 4.8828125E-4 : f32
    %49 = arith.mulf %48, %cst_18 : f32
    %50 = vector.broadcast %40 : f32 to vector<72x32xf32>
    %51 = arith.subf %13, %50 : vector<72x32xf32>
    %cst_19 = arith.constant 9.99999974E-6 : f32
    %52 = arith.addf %49, %cst_19 : f32
    %53 = math.rsqrt %52 : f32
    %54 = vector.broadcast %53 : f32 to vector<72x32xf32>
    %55 = arith.mulf %51, %54 : vector<72x32xf32>
    %c1_20 = arith.constant 1 : index
    %c0_21 = arith.constant 0 : index
    %56 = vector.load %arg3[%c1_20, %c0_21] : memref<3x32xf32, #tpu.memory_space<vmem>>, vector<1x32xf32>
    %57 = vector.broadcast %56 : vector<1x32xf32> to vector<72x32xf32>
    %58 = arith.mulf %55, %57 : vector<72x32xf32>
    %c2 = arith.constant 2 : index
    %c0_22 = arith.constant 0 : index
    %59 = vector.load %arg3[%c2, %c0_22] : memref<3x32xf32, #tpu.memory_space<vmem>>, vector<1x32xf32>
    %60 = vector.broadcast %59 : vector<1x32xf32> to vector<72x32xf32>
    %61 = arith.addf %58, %60 : vector<72x32xf32>
    %cst_23 = arith.constant 0.000000e+00 : f32
    %62 = vector.broadcast %cst_23 : f32 to vector<72x32xf32>
    %63 = arith.maximumf %61, %62 : vector<72x32xf32>
    %64 = vector.extract_strided_slice %63 {offsets = [0, 0], sizes = [8, 32], strides = [1, 1]} : vector<72x32xf32> to vector<8x32xf32>
    %c0_24 = arith.constant 0 : index
    %c0_25 = arith.constant 0 : index
    %c0_26 = arith.constant 0 : index
    %65 = vector.load %arg4[%c0_24, %c0_25, %c0_26] : memref<1x64x32xf32, #tpu.memory_space<vmem>>, vector<1x8x32xf32>
    %66 = vector.shape_cast %65 : vector<1x8x32xf32> to vector<8x32xf32>
    %67 = vector.shape_cast %64 : vector<8x32xf32> to vector<1x8x32xf32>
    tpu.vector_store %arg4[%c0_24, %c0_25, %c0_26], %67 {strides = array<i32>} : memref<1x64x32xf32, #tpu.memory_space<vmem>>, vector<1x8x32xf32>,
    %68 = vector.extract_strided_slice %63 {offsets = [9, 0], sizes = [8, 32], strides = [1, 1]} : vector<72x32xf32> to vector<8x32xf32>
    %c0_27 = arith.constant 0 : index
    %c8 = arith.constant 8 : index
    %c0_28 = arith.constant 0 : index
    %69 = vector.load %arg4[%c0_27, %c8, %c0_28] : memref<1x64x32xf32, #tpu.memory_space<vmem>>, vector<1x8x32xf32>
    %70 = vector.shape_cast %69 : vector<1x8x32xf32> to vector<8x32xf32>
    %71 = vector.shape_cast %68 : vector<8x32xf32> to vector<1x8x32xf32>
    tpu.vector_store %arg4[%c0_27, %c8, %c0_28], %71 {strides = array<i32>} : memref<1x64x32xf32, #tpu.memory_space<vmem>>, vector<1x8x32xf32>,
    %72 = vector.extract_strided_slice %63 {offsets = [18, 0], sizes = [8, 32], strides = [1, 1]} : vector<72x32xf32> to vector<8x32xf32>
    %c0_29 = arith.constant 0 : index
    %c16 = arith.constant 16 : index
    %c0_30 = arith.constant 0 : index
    %73 = vector.load %arg4[%c0_29, %c16, %c0_30] : memref<1x64x32xf32, #tpu.memory_space<vmem>>, vector<1x8x32xf32>
    %74 = vector.shape_cast %73 : vector<1x8x32xf32> to vector<8x32xf32>
    %75 = vector.shape_cast %72 : vector<8x32xf32> to vector<1x8x32xf32>
    tpu.vector_store %arg4[%c0_29, %c16, %c0_30], %75 {strides = array<i32>} : memref<1x64x32xf32, #tpu.memory_space<vmem>>, vector<1x8x32xf32>,
    %76 = vector.extract_strided_slice %63 {offsets = [27, 0], sizes = [8, 32], strides = [1, 1]} : vector<72x32xf32> to vector<8x32xf32>
    %c0_31 = arith.constant 0 : index
    %c24 = arith.constant 24 : index
    %c0_32 = arith.constant 0 : index
    %77 = vector.load %arg4[%c0_31, %c24, %c0_32] : memref<1x64x32xf32, #tpu.memory_space<vmem>>, vector<1x8x32xf32>
    %78 = vector.shape_cast %77 : vector<1x8x32xf32> to vector<8x32xf32>
    %79 = vector.shape_cast %76 : vector<8x32xf32> to vector<1x8x32xf32>
    tpu.vector_store %arg4[%c0_31, %c24, %c0_32], %79 {strides = array<i32>} : memref<1x64x32xf32, #tpu.memory_space<vmem>>, vector<1x8x32xf32>,
    %80 = vector.extract_strided_slice %63 {offsets = [36, 0], sizes = [8, 32], strides = [1, 1]} : vector<72x32xf32> to vector<8x32xf32>
    %c0_33 = arith.constant 0 : index
    %c32 = arith.constant 32 : index
    %c0_34 = arith.constant 0 : index
    %81 = vector.load %arg4[%c0_33, %c32, %c0_34] : memref<1x64x32xf32, #tpu.memory_space<vmem>>, vector<1x8x32xf32>
    %82 = vector.shape_cast %81 : vector<1x8x32xf32> to vector<8x32xf32>
    %83 = vector.shape_cast %80 : vector<8x32xf32> to vector<1x8x32xf32>
    tpu.vector_store %arg4[%c0_33, %c32, %c0_34], %83 {strides = array<i32>} : memref<1x64x32xf32, #tpu.memory_space<vmem>>, vector<1x8x32xf32>,
    %84 = vector.extract_strided_slice %63 {offsets = [45, 0], sizes = [8, 32], strides = [1, 1]} : vector<72x32xf32> to vector<8x32xf32>
    %c0_35 = arith.constant 0 : index
    %c40 = arith.constant 40 : index
    %c0_36 = arith.constant 0 : index
    %85 = vector.load %arg4[%c0_35, %c40, %c0_36] : memref<1x64x32xf32, #tpu.memory_space<vmem>>, vector<1x8x32xf32>
    %86 = vector.shape_cast %85 : vector<1x8x32xf32> to vector<8x32xf32>
    %87 = vector.shape_cast %84 : vector<8x32xf32> to vector<1x8x32xf32>
    tpu.vector_store %arg4[%c0_35, %c40, %c0_36], %87 {strides = array<i32>} : memref<1x64x32xf32, #tpu.memory_space<vmem>>, vector<1x8x32xf32>,
    %88 = vector.extract_strided_slice %63 {offsets = [54, 0], sizes = [8, 32], strides = [1, 1]} : vector<72x32xf32> to vector<8x32xf32>
    %c0_37 = arith.constant 0 : index
    %c48 = arith.constant 48 : index
    %c0_38 = arith.constant 0 : index
    %89 = vector.load %arg4[%c0_37, %c48, %c0_38] : memref<1x64x32xf32, #tpu.memory_space<vmem>>, vector<1x8x32xf32>
    %90 = vector.shape_cast %89 : vector<1x8x32xf32> to vector<8x32xf32>
    %91 = vector.shape_cast %88 : vector<8x32xf32> to vector<1x8x32xf32>
    tpu.vector_store %arg4[%c0_37, %c48, %c0_38], %91 {strides = array<i32>} : memref<1x64x32xf32, #tpu.memory_space<vmem>>, vector<1x8x32xf32>,
    %92 = vector.extract_strided_slice %63 {offsets = [63, 0], sizes = [8, 32], strides = [1, 1]} : vector<72x32xf32> to vector<8x32xf32>
    %c0_39 = arith.constant 0 : index
    %c56 = arith.constant 56 : index
    %c0_40 = arith.constant 0 : index
    %93 = vector.load %arg4[%c0_39, %c56, %c0_40] : memref<1x64x32xf32, #tpu.memory_space<vmem>>, vector<1x8x32xf32>
    %94 = vector.shape_cast %93 : vector<1x8x32xf32> to vector<8x32xf32>
    %95 = vector.shape_cast %92 : vector<8x32xf32> to vector<1x8x32xf32>
    tpu.vector_store %arg4[%c0_39, %c56, %c0_40], %95 {strides = array<i32>} : memref<1x64x32xf32, #tpu.memory_space<vmem>>, vector<1x8x32xf32>,
    return
  }
  func.func @transform_0(%arg0: i32) -> (i32, i32, i32) {
    %c0_i32 = arith.constant 0 : i32
    %c0_i32_0 = arith.constant 0 : i32
    %c0_i32_1 = arith.constant 0 : i32
    return %arg0, %c0_i32, %c0_i32_0 : i32, i32, i32
  }
  func.func @transform_1(%arg0: i32) -> (i32, i32) {
    %c0_i32 = arith.constant 0 : i32
    %c0_i32_0 = arith.constant 0 : i32
    %c0_i32_1 = arith.constant 0 : i32
    return %c0_i32, %c0_i32_0 : i32, i32
  }
  func.func @transform_2(%arg0: i32) -> (i32, i32) {
    %c0_i32 = arith.constant 0 : i32
    %c0_i32_0 = arith.constant 0 : i32
    %c0_i32_1 = arith.constant 0 : i32
    return %c0_i32, %c0_i32_0 : i32, i32
  }
  func.func @transform_3(%arg0: i32) -> (i32, i32, i32) {
    %c0_i32 = arith.constant 0 : i32
    %c0_i32_0 = arith.constant 0 : i32
    %c0_i32_1 = arith.constant 0 : i32
    return %arg0, %c0_i32, %c0_i32_0 : i32, i32, i32
  }
}

module attributes {stable_mosaic.version = 11 : i64} {
  func.func @_conv_block_kernel(%arg0: i32, %arg1: memref<1x32x128xbf16, #tpu.memory_space<vmem>>, %arg2: memref<512x32xbf16, #tpu.memory_space<vmem>>, %arg3: memref<3x32xf32, #tpu.memory_space<vmem>>, %arg4: memref<1x16x32xf32, #tpu.memory_space<vmem>>) attributes {dimension_semantics = [#tpu.dimension_semantics<parallel>], iteration_bounds = array<i64: 2>, scalar_prefetch = 0 : i64, scratch_operands = 0 : i64, tpu.core_type = #tpu.core_type<tc>, window_params = [{transform_indices = @transform_0, window_bounds = array<i64: 1, 32, 128>}, {pipeline_mode = #tpu.pipeline_mode<synchronous>, transform_indices = @transform_1, window_bounds = array<i64: 512, 32>}, {pipeline_mode = #tpu.pipeline_mode<synchronous>, transform_indices = @transform_2, window_bounds = array<i64: 3, 32>}, {transform_indices = @transform_3, window_bounds = array<i64: 1, 16, 32>}]} {
    %c0 = arith.constant 0 : index
    %c0_0 = arith.constant 0 : index
    %c0_1 = arith.constant 0 : index
    %0 = vector.load %arg1[%c0, %c0_0, %c0_1] : memref<1x32x128xbf16, #tpu.memory_space<vmem>>, vector<1x20x128xbf16>
    %1 = vector.shape_cast %0 : vector<1x20x128xbf16> to vector<20x128xbf16>
    %c0_2 = arith.constant 0 : index
    %c1 = arith.constant 1 : index
    %c0_3 = arith.constant 0 : index
    %2 = vector.load %arg1[%c0_2, %c1, %c0_3] : memref<1x32x128xbf16, #tpu.memory_space<vmem>>, vector<1x20x128xbf16>
    %3 = vector.shape_cast %2 : vector<1x20x128xbf16> to vector<20x128xbf16>
    %c0_4 = arith.constant 0 : index
    %c5 = arith.constant 5 : index
    %c0_5 = arith.constant 0 : index
    %4 = vector.load %arg1[%c0_4, %c5, %c0_5] : memref<1x32x128xbf16, #tpu.memory_space<vmem>>, vector<1x20x128xbf16>
    %5 = vector.shape_cast %4 : vector<1x20x128xbf16> to vector<20x128xbf16>
    %c0_6 = arith.constant 0 : index
    %c6 = arith.constant 6 : index
    %c0_7 = arith.constant 0 : index
    %6 = vector.load %arg1[%c0_6, %c6, %c0_7] : memref<1x32x128xbf16, #tpu.memory_space<vmem>>, vector<1x20x128xbf16>
    %7 = vector.shape_cast %6 : vector<1x20x128xbf16> to vector<20x128xbf16>
    %8 = tpu.concatenate %1, %3, %5, %7 in 1 : vector<20x128xbf16>, vector<20x128xbf16>, vector<20x128xbf16>, vector<20x128xbf16> -> vector<20x512xbf16>
    %c0_8 = arith.constant 0 : index
    %c0_9 = arith.constant 0 : index
    %9 = vector.load %arg2[%c0_8, %c0_9] : memref<512x32xbf16, #tpu.memory_space<vmem>>, vector<512x32xbf16>
    %cst = arith.constant dense<0.000000e+00> : vector<20x32xf32>
    %10 = tpu.matmul %8, %9, %cst {dimension_numbers = #tpu.dot_dimension_numbers<[1], [0], [0], [1], [0, 0, 1, 1], [], []>} : vector<20x512xbf16>, vector<512x32xbf16>, vector<20x32xf32> -> vector<20x32xf32>
    %c0_10 = arith.constant 0 : index
    %c0_11 = arith.constant 0 : index
    %11 = vector.load %arg3[%c0_10, %c0_11] : memref<3x32xf32, #tpu.memory_space<vmem>>, vector<1x32xf32>
    %12 = vector.broadcast %11 : vector<1x32xf32> to vector<20x32xf32>
    %13 = arith.addf %10, %12 : vector<20x32xf32>
    %14 = tpu.iota {dimensions = array<i32: 0>} : vector<20x32xi32>
    %c5_i32 = arith.constant 5 : i32
    %c0_i32 = arith.constant 0 : i32
    %15 = arith.cmpi eq, %c5_i32, %c0_i32 : i32
    %c1_i32 = arith.constant 1 : i32
    %16 = arith.select %15, %c1_i32, %c5_i32 : i32
    %17 = vector.broadcast %16 : i32 to vector<20x32xi32>
    %18 = arith.remsi %14, %17 : vector<20x32xi32>
    %c0_i32_12 = arith.constant 0 : i32
    %19 = vector.broadcast %c0_i32_12 : i32 to vector<20x32xi32>
    %20 = arith.cmpi ne, %18, %19 : vector<20x32xi32>
    %c0_i32_13 = arith.constant 0 : i32
    %21 = vector.broadcast %c0_i32_13 : i32 to vector<20x32xi32>
    %22 = arith.cmpi slt, %18, %21 : vector<20x32xi32>
    %c0_i32_14 = arith.constant 0 : i32
    %23 = arith.cmpi slt, %16, %c0_i32_14 : i32
    %24 = vector.broadcast %23 : i1 to vector<20x32xi1>
    %25 = vector.broadcast %24 : vector<20x32xi1> to vector<20x32xi1>
    %26 = arith.xori %22, %25 : vector<20x32xi1>
    %27 = arith.andi %26, %20 : vector<20x32xi1>
    %28 = vector.broadcast %16 : i32 to vector<20x32xi32>
    %29 = arith.addi %18, %28 : vector<20x32xi32>
    %30 = arith.select %27, %29, %18 : vector<20x32xi1>, vector<20x32xi32>
    %c4_i32 = arith.constant 4 : i32
    %31 = vector.broadcast %c4_i32 : i32 to vector<20x32xi32>
    %32 = arith.cmpi slt, %30, %31 : vector<20x32xi32>
    %33 = arith.extui %32 : vector<20x32xi1> to vector<20x32xi32>
    %34 = arith.sitofp %33 : vector<20x32xi32> to vector<20x32xf32>
    %35 = arith.mulf %13, %34 : vector<20x32xf32>
    %36 = vector.shape_cast %35 : vector<20x32xf32> to vector<1x20x32xf32>
    %cst_15 = arith.constant dense<0.000000e+00> : vector<1xf32>
    %37 = vector.multi_reduction <add>, %36, %cst_15 [1, 2] : vector<1x20x32xf32> to vector<1xf32>
    %38 = vector.shape_cast %37 : vector<1xf32> to vector<1x1x1xf32>
    %39 = vector.extract %38[0, 0, 0] : f32 from vector<1x1x1xf32>
    %cst_16 = arith.constant 0.001953125 : f32
    %40 = arith.mulf %39, %cst_16 : f32
    %41 = vector.broadcast %40 : f32 to vector<20x32xf32>
    %42 = arith.subf %13, %41 : vector<20x32xf32>
    %43 = arith.mulf %42, %34 : vector<20x32xf32>
    %44 = arith.mulf %43, %43 : vector<20x32xf32>
    %45 = vector.shape_cast %44 : vector<20x32xf32> to vector<1x20x32xf32>
    %cst_17 = arith.constant dense<0.000000e+00> : vector<1xf32>
    %46 = vector.multi_reduction <add>, %45, %cst_17 [1, 2] : vector<1x20x32xf32> to vector<1xf32>
    %47 = vector.shape_cast %46 : vector<1xf32> to vector<1x1x1xf32>
    %48 = vector.extract %47[0, 0, 0] : f32 from vector<1x1x1xf32>
    %cst_18 = arith.constant 0.001953125 : f32
    %49 = arith.mulf %48, %cst_18 : f32
    %50 = vector.broadcast %40 : f32 to vector<20x32xf32>
    %51 = arith.subf %13, %50 : vector<20x32xf32>
    %cst_19 = arith.constant 9.99999974E-6 : f32
    %52 = arith.addf %49, %cst_19 : f32
    %53 = math.rsqrt %52 : f32
    %54 = vector.broadcast %53 : f32 to vector<20x32xf32>
    %55 = arith.mulf %51, %54 : vector<20x32xf32>
    %c1_20 = arith.constant 1 : index
    %c0_21 = arith.constant 0 : index
    %56 = vector.load %arg3[%c1_20, %c0_21] : memref<3x32xf32, #tpu.memory_space<vmem>>, vector<1x32xf32>
    %57 = vector.broadcast %56 : vector<1x32xf32> to vector<20x32xf32>
    %58 = arith.mulf %55, %57 : vector<20x32xf32>
    %c2 = arith.constant 2 : index
    %c0_22 = arith.constant 0 : index
    %59 = vector.load %arg3[%c2, %c0_22] : memref<3x32xf32, #tpu.memory_space<vmem>>, vector<1x32xf32>
    %60 = vector.broadcast %59 : vector<1x32xf32> to vector<20x32xf32>
    %61 = arith.addf %58, %60 : vector<20x32xf32>
    %cst_23 = arith.constant 0.000000e+00 : f32
    %62 = vector.broadcast %cst_23 : f32 to vector<20x32xf32>
    %63 = arith.maximumf %61, %62 : vector<20x32xf32>
    %64 = vector.extract_strided_slice %63 {offsets = [0, 0], sizes = [4, 32], strides = [1, 1]} : vector<20x32xf32> to vector<4x32xf32>
    %c0_24 = arith.constant 0 : index
    %c0_25 = arith.constant 0 : index
    %c0_26 = arith.constant 0 : index
    %65 = vector.load %arg4[%c0_24, %c0_25, %c0_26] : memref<1x16x32xf32, #tpu.memory_space<vmem>>, vector<1x4x32xf32>
    %66 = vector.shape_cast %65 : vector<1x4x32xf32> to vector<4x32xf32>
    %67 = vector.shape_cast %64 : vector<4x32xf32> to vector<1x4x32xf32>
    tpu.vector_store %arg4[%c0_24, %c0_25, %c0_26], %67 {strides = array<i32>} : memref<1x16x32xf32, #tpu.memory_space<vmem>>, vector<1x4x32xf32>,
    %68 = vector.extract_strided_slice %63 {offsets = [5, 0], sizes = [4, 32], strides = [1, 1]} : vector<20x32xf32> to vector<4x32xf32>
    %c0_27 = arith.constant 0 : index
    %c4 = arith.constant 4 : index
    %c0_28 = arith.constant 0 : index
    %69 = vector.load %arg4[%c0_27, %c4, %c0_28] : memref<1x16x32xf32, #tpu.memory_space<vmem>>, vector<1x4x32xf32>
    %70 = vector.shape_cast %69 : vector<1x4x32xf32> to vector<4x32xf32>
    %71 = vector.shape_cast %68 : vector<4x32xf32> to vector<1x4x32xf32>
    tpu.vector_store %arg4[%c0_27, %c4, %c0_28], %71 {strides = array<i32>} : memref<1x16x32xf32, #tpu.memory_space<vmem>>, vector<1x4x32xf32>,
    %72 = vector.extract_strided_slice %63 {offsets = [10, 0], sizes = [4, 32], strides = [1, 1]} : vector<20x32xf32> to vector<4x32xf32>
    %c0_29 = arith.constant 0 : index
    %c8 = arith.constant 8 : index
    %c0_30 = arith.constant 0 : index
    %73 = vector.load %arg4[%c0_29, %c8, %c0_30] : memref<1x16x32xf32, #tpu.memory_space<vmem>>, vector<1x4x32xf32>
    %74 = vector.shape_cast %73 : vector<1x4x32xf32> to vector<4x32xf32>
    %75 = vector.shape_cast %72 : vector<4x32xf32> to vector<1x4x32xf32>
    tpu.vector_store %arg4[%c0_29, %c8, %c0_30], %75 {strides = array<i32>} : memref<1x16x32xf32, #tpu.memory_space<vmem>>, vector<1x4x32xf32>,
    %76 = vector.extract_strided_slice %63 {offsets = [15, 0], sizes = [4, 32], strides = [1, 1]} : vector<20x32xf32> to vector<4x32xf32>
    %c0_31 = arith.constant 0 : index
    %c12 = arith.constant 12 : index
    %c0_32 = arith.constant 0 : index
    %77 = vector.load %arg4[%c0_31, %c12, %c0_32] : memref<1x16x32xf32, #tpu.memory_space<vmem>>, vector<1x4x32xf32>
    %78 = vector.shape_cast %77 : vector<1x4x32xf32> to vector<4x32xf32>
    %79 = vector.shape_cast %76 : vector<4x32xf32> to vector<1x4x32xf32>
    tpu.vector_store %arg4[%c0_31, %c12, %c0_32], %79 {strides = array<i32>} : memref<1x16x32xf32, #tpu.memory_space<vmem>>, vector<1x4x32xf32>,
    return
  }
  func.func @transform_0(%arg0: i32) -> (i32, i32, i32) {
    %c0_i32 = arith.constant 0 : i32
    %c0_i32_0 = arith.constant 0 : i32
    %c0_i32_1 = arith.constant 0 : i32
    return %arg0, %c0_i32, %c0_i32_0 : i32, i32, i32
  }
  func.func @transform_1(%arg0: i32) -> (i32, i32) {
    %c0_i32 = arith.constant 0 : i32
    %c0_i32_0 = arith.constant 0 : i32
    %c0_i32_1 = arith.constant 0 : i32
    return %c0_i32, %c0_i32_0 : i32, i32
  }
  func.func @transform_2(%arg0: i32) -> (i32, i32) {
    %c0_i32 = arith.constant 0 : i32
    %c0_i32_0 = arith.constant 0 : i32
    %c0_i32_1 = arith.constant 0 : i32
    return %c0_i32, %c0_i32_0 : i32, i32
  }
  func.func @transform_3(%arg0: i32) -> (i32, i32, i32) {
    %c0_i32 = arith.constant 0 : i32
    %c0_i32_0 = arith.constant 0 : i32
    %c0_i32_1 = arith.constant 0 : i32
    return %arg0, %c0_i32, %c0_i32_0 : i32, i32, i32
  }
}

module attributes {stable_mosaic.version = 11 : i64} {
  func.func @_conv_block_kernel(%arg0: i32, %arg1: memref<1x16x128xbf16, #tpu.memory_space<vmem>>, %arg2: memref<512x32xbf16, #tpu.memory_space<vmem>>, %arg3: memref<3x32xf32, #tpu.memory_space<vmem>>, %arg4: memref<1x1x32xf32, #tpu.memory_space<vmem>>) attributes {dimension_semantics = [#tpu.dimension_semantics<parallel>], iteration_bounds = array<i64: 2>, scalar_prefetch = 0 : i64, scratch_operands = 0 : i64, tpu.core_type = #tpu.core_type<tc>, window_params = [{transform_indices = @transform_0, window_bounds = array<i64: 1, 16, 128>}, {pipeline_mode = #tpu.pipeline_mode<synchronous>, transform_indices = @transform_1, window_bounds = array<i64: 512, 32>}, {pipeline_mode = #tpu.pipeline_mode<synchronous>, transform_indices = @transform_2, window_bounds = array<i64: 3, 32>}, {transform_indices = @transform_3, window_bounds = array<i64: 1, 1, 32>}]} {
    %c0 = arith.constant 0 : index
    %c0_0 = arith.constant 0 : index
    %c0_1 = arith.constant 0 : index
    %0 = vector.load %arg1[%c0, %c0_0, %c0_1] : memref<1x16x128xbf16, #tpu.memory_space<vmem>>, vector<1x6x128xbf16>
    %1 = vector.shape_cast %0 : vector<1x6x128xbf16> to vector<6x128xbf16>
    %c0_2 = arith.constant 0 : index
    %c1 = arith.constant 1 : index
    %c0_3 = arith.constant 0 : index
    %2 = vector.load %arg1[%c0_2, %c1, %c0_3] : memref<1x16x128xbf16, #tpu.memory_space<vmem>>, vector<1x6x128xbf16>
    %3 = vector.shape_cast %2 : vector<1x6x128xbf16> to vector<6x128xbf16>
    %c0_4 = arith.constant 0 : index
    %c3 = arith.constant 3 : index
    %c0_5 = arith.constant 0 : index
    %4 = vector.load %arg1[%c0_4, %c3, %c0_5] : memref<1x16x128xbf16, #tpu.memory_space<vmem>>, vector<1x6x128xbf16>
    %5 = vector.shape_cast %4 : vector<1x6x128xbf16> to vector<6x128xbf16>
    %c0_6 = arith.constant 0 : index
    %c4 = arith.constant 4 : index
    %c0_7 = arith.constant 0 : index
    %6 = vector.load %arg1[%c0_6, %c4, %c0_7] : memref<1x16x128xbf16, #tpu.memory_space<vmem>>, vector<1x6x128xbf16>
    %7 = vector.shape_cast %6 : vector<1x6x128xbf16> to vector<6x128xbf16>
    %8 = tpu.concatenate %1, %3, %5, %7 in 1 : vector<6x128xbf16>, vector<6x128xbf16>, vector<6x128xbf16>, vector<6x128xbf16> -> vector<6x512xbf16>
    %c0_8 = arith.constant 0 : index
    %c0_9 = arith.constant 0 : index
    %9 = vector.load %arg2[%c0_8, %c0_9] : memref<512x32xbf16, #tpu.memory_space<vmem>>, vector<512x32xbf16>
    %cst = arith.constant dense<0.000000e+00> : vector<6x32xf32>
    %10 = tpu.matmul %8, %9, %cst {dimension_numbers = #tpu.dot_dimension_numbers<[1], [0], [0], [1], [0, 0, 1, 1], [], []>} : vector<6x512xbf16>, vector<512x32xbf16>, vector<6x32xf32> -> vector<6x32xf32>
    %c0_10 = arith.constant 0 : index
    %c0_11 = arith.constant 0 : index
    %11 = vector.load %arg3[%c0_10, %c0_11] : memref<3x32xf32, #tpu.memory_space<vmem>>, vector<1x32xf32>
    %12 = vector.broadcast %11 : vector<1x32xf32> to vector<6x32xf32>
    %13 = arith.addf %10, %12 : vector<6x32xf32>
    %14 = tpu.iota {dimensions = array<i32: 0>} : vector<6x32xi32>
    %c3_i32 = arith.constant 3 : i32
    %c0_i32 = arith.constant 0 : i32
    %15 = arith.cmpi eq, %c3_i32, %c0_i32 : i32
    %c1_i32 = arith.constant 1 : i32
    %16 = arith.select %15, %c1_i32, %c3_i32 : i32
    %17 = vector.broadcast %16 : i32 to vector<6x32xi32>
    %18 = arith.remsi %14, %17 : vector<6x32xi32>
    %c0_i32_12 = arith.constant 0 : i32
    %19 = vector.broadcast %c0_i32_12 : i32 to vector<6x32xi32>
    %20 = arith.cmpi ne, %18, %19 : vector<6x32xi32>
    %c0_i32_13 = arith.constant 0 : i32
    %21 = vector.broadcast %c0_i32_13 : i32 to vector<6x32xi32>
    %22 = arith.cmpi slt, %18, %21 : vector<6x32xi32>
    %c0_i32_14 = arith.constant 0 : i32
    %23 = arith.cmpi slt, %16, %c0_i32_14 : i32
    %24 = vector.broadcast %23 : i1 to vector<6x32xi1>
    %25 = vector.broadcast %24 : vector<6x32xi1> to vector<6x32xi1>
    %26 = arith.xori %22, %25 : vector<6x32xi1>
    %27 = arith.andi %26, %20 : vector<6x32xi1>
    %28 = vector.broadcast %16 : i32 to vector<6x32xi32>
    %29 = arith.addi %18, %28 : vector<6x32xi32>
    %30 = arith.select %27, %29, %18 : vector<6x32xi1>, vector<6x32xi32>
    %c2_i32 = arith.constant 2 : i32
    %31 = vector.broadcast %c2_i32 : i32 to vector<6x32xi32>
    %32 = arith.cmpi slt, %30, %31 : vector<6x32xi32>
    %33 = arith.extui %32 : vector<6x32xi1> to vector<6x32xi32>
    %34 = arith.sitofp %33 : vector<6x32xi32> to vector<6x32xf32>
    %35 = arith.mulf %13, %34 : vector<6x32xf32>
    %36 = vector.shape_cast %35 : vector<6x32xf32> to vector<1x6x32xf32>
    %cst_15 = arith.constant dense<0.000000e+00> : vector<1xf32>
    %37 = vector.multi_reduction <add>, %36, %cst_15 [1, 2] : vector<1x6x32xf32> to vector<1xf32>
    %38 = vector.shape_cast %37 : vector<1xf32> to vector<1x1x1xf32>
    %39 = vector.extract %38[0, 0, 0] : f32 from vector<1x1x1xf32>
    %cst_16 = arith.constant 7.812500e-03 : f32
    %40 = arith.mulf %39, %cst_16 : f32
    %41 = vector.broadcast %40 : f32 to vector<6x32xf32>
    %42 = arith.subf %13, %41 : vector<6x32xf32>
    %43 = arith.mulf %42, %34 : vector<6x32xf32>
    %44 = arith.mulf %43, %43 : vector<6x32xf32>
    %45 = vector.shape_cast %44 : vector<6x32xf32> to vector<1x6x32xf32>
    %cst_17 = arith.constant dense<0.000000e+00> : vector<1xf32>
    %46 = vector.multi_reduction <add>, %45, %cst_17 [1, 2] : vector<1x6x32xf32> to vector<1xf32>
    %47 = vector.shape_cast %46 : vector<1xf32> to vector<1x1x1xf32>
    %48 = vector.extract %47[0, 0, 0] : f32 from vector<1x1x1xf32>
    %cst_18 = arith.constant 7.812500e-03 : f32
    %49 = arith.mulf %48, %cst_18 : f32
    %50 = vector.broadcast %40 : f32 to vector<6x32xf32>
    %51 = arith.subf %13, %50 : vector<6x32xf32>
    %cst_19 = arith.constant 9.99999974E-6 : f32
    %52 = arith.addf %49, %cst_19 : f32
    %53 = math.rsqrt %52 : f32
    %54 = vector.broadcast %53 : f32 to vector<6x32xf32>
    %55 = arith.mulf %51, %54 : vector<6x32xf32>
    %c1_20 = arith.constant 1 : index
    %c0_21 = arith.constant 0 : index
    %56 = vector.load %arg3[%c1_20, %c0_21] : memref<3x32xf32, #tpu.memory_space<vmem>>, vector<1x32xf32>
    %57 = vector.broadcast %56 : vector<1x32xf32> to vector<6x32xf32>
    %58 = arith.mulf %55, %57 : vector<6x32xf32>
    %c2 = arith.constant 2 : index
    %c0_22 = arith.constant 0 : index
    %59 = vector.load %arg3[%c2, %c0_22] : memref<3x32xf32, #tpu.memory_space<vmem>>, vector<1x32xf32>
    %60 = vector.broadcast %59 : vector<1x32xf32> to vector<6x32xf32>
    %61 = arith.addf %58, %60 : vector<6x32xf32>
    %cst_23 = arith.constant 0.000000e+00 : f32
    %62 = vector.broadcast %cst_23 : f32 to vector<6x32xf32>
    %63 = arith.maximumf %61, %62 : vector<6x32xf32>
    %64 = arith.mulf %63, %34 : vector<6x32xf32>
    %cst_24 = arith.constant dense<0.000000e+00> : vector<32xf32>
    %65 = vector.multi_reduction <add>, %64, %cst_24 [0] : vector<6x32xf32> to vector<32xf32>
    %66 = vector.shape_cast %65 : vector<32xf32> to vector<1x32xf32>
    %cst_25 = arith.constant 2.500000e-01 : f32
    %67 = vector.broadcast %cst_25 : f32 to vector<1x32xf32>
    %68 = arith.mulf %66, %67 : vector<1x32xf32>
    %c0_26 = arith.constant 0 : index
    %c0_27 = arith.constant 0 : index
    %c0_28 = arith.constant 0 : index
    %69 = vector.load %arg4[%c0_26, %c0_27, %c0_28] : memref<1x1x32xf32, #tpu.memory_space<vmem>>, vector<1x1x32xf32>
    %70 = vector.shape_cast %69 : vector<1x1x32xf32> to vector<1x32xf32>
    %71 = vector.shape_cast %68 : vector<1x32xf32> to vector<1x1x32xf32>
    tpu.vector_store %arg4[%c0_26, %c0_27, %c0_28], %71 {strides = array<i32>} : memref<1x1x32xf32, #tpu.memory_space<vmem>>, vector<1x1x32xf32>,
    return
  }
  func.func @transform_0(%arg0: i32) -> (i32, i32, i32) {
    %c0_i32 = arith.constant 0 : i32
    %c0_i32_0 = arith.constant 0 : i32
    %c0_i32_1 = arith.constant 0 : i32
    return %arg0, %c0_i32, %c0_i32_0 : i32, i32, i32
  }
  func.func @transform_1(%arg0: i32) -> (i32, i32) {
    %c0_i32 = arith.constant 0 : i32
    %c0_i32_0 = arith.constant 0 : i32
    %c0_i32_1 = arith.constant 0 : i32
    return %c0_i32, %c0_i32_0 : i32, i32
  }
  func.func @transform_2(%arg0: i32) -> (i32, i32) {
    %c0_i32 = arith.constant 0 : i32
    %c0_i32_0 = arith.constant 0 : i32
    %c0_i32_1 = arith.constant 0 : i32
    return %c0_i32, %c0_i32_0 : i32, i32
  }
  func.func @transform_3(%arg0: i32) -> (i32, i32, i32) {
    %c0_i32 = arith.constant 0 : i32
    %c0_i32_0 = arith.constant 0 : i32
    %c0_i32_1 = arith.constant 0 : i32
    return %arg0, %c0_i32, %c0_i32_0 : i32, i32, i32
  }
}

</mosaic_0001>

<bundles_post_ra>
// kernel: _lambda_.4
= control target key start
LH: loop header
LB: loop body
LE: loop exit
PB: predicated region body
PF: predicated region fallthrough
CT: control target
= control target key end

     0   :  { %s2555_s12 = smov 0   ;;  %s4678_s0 = inlined_call_operand.vmem [shape: bf16[2,296,32], index: 0, kind: input, shape index: {}]   ;;  %s4679_s1 = inlined_call_operand.vmem [shape: bf16[128,16], index: 1, kind: input, shape index: {}]   ;;  %s4680_s2 = inlined_call_operand.vmem [shape: f32[3,16], index: 2, kind: input, shape index: {}]   ;;  %s4681_s3 = inlined_call_operand.vmem [shape: f32[2,256,16], index: 3, kind: output, shape index: {}]  }
   0x1 LB: > { %s2201_s13 = sadd.s32 4294967295, %s2528_s12   ;;  %p2205_p0 = scmp.ge.s32.totalorder %s2528_s12, 1  ;;  %s2528_s12 = sphi %s2555_s12, %s13_s12  }
   0x2   : > { %p137_p1 = scmp.lt.s32.totalorder %s2528_s12, 3 }
   0x4   : > { %p138_p2 = pnand %p2205_p0, %p137_p1 }
   0x6   : > { %141 = sbr.rel (%p138_p2) target bundleno = 1076 (0x434), region = 32 }
   0xd   : > { %p161_p3 = scmp.lt.s32.totalorder %s2201_s13, 1  ;;  %v4682_v0 = vmov 0.0   ;;  %v2509_v1 = vld [vmem:[%s4679_s1] sm:$0xff]   ;;  %v2511_v2 = vld [vmem:[%s4679_s1 + $0x8] sm:$0xff]   ;;  %v2512_v3 = vld [vmem:[%s4679_s1 + $0x10] sm:$0xff]   ;;  %vm532_vm0 = vcmask 1046528  }
   0xe   : > { %2303 = vmatprep.subr.bf16.mxu0 %v4682_v0  ;;  %2387 = vmatprep.subr.bf16.mxu1 %v4682_v0  ;;  %v2515_v12 = vld [vmem:[%s4679_s1 + $0x18] sm:$0xff]   ;;  %s2531_s26 = smov 96   ;;  %vm299_vm1 = vsmask.f32 7424  ;;  %v2516_v27 = vld [vmem:[%s4679_s1 + $0x20] sm:$0xff]   ;;  %s2532_s29 = smov 32  }
   0xf   : > { %s4874_s13 = smov (!%p161_p3, %s2201_s13), 1  ;;  %2304 = vmatpush3.bf16.msra.mxu0 %v2509_v1  ;;  %2395 = vmatpush3.bf16.msra.mxu1 %v2509_v1  ;;  %s2533_s30 = smov 64   ;;  %v2517_v55 = vld [vmem:[%s4679_s1 + $0x28] sm:$0xff]   ;;  %v2518_v1 = vld [vmem:[%s4679_s1 + $0x30] sm:$0xff]   ;;  %vm2534_vm2 = vmmov 0   ;;  %vm602_vm3 = vcmask 261120  }
  0x10   : > { %s2403_s16 = smul.u32 148, %s4874_s13  ;;  %2305 = vmatprep.subr.bf16.mxu0 %v4682_v0  ;;  %2388 = vmatprep.subr.bf16.mxu1 %v4682_v0  ;;  %vm637_vm4 = vcmask 523264   ;;  %vm672_vm5 = vcmask 785408   ;;  %s2277_s24 = sshll.u32 %s4874_s13, 8 }
  0x11   : > { %2319 = vmatprep.mubr.msk.bf16.mxu0 %vm2534_vm2, %v4682_v0  ;;  %2355 = vmatprep.mubr.msk.bf16.mxu1 %vm2534_vm2, %v4682_v0 }
  0x12   : > { %s2579_s21 = scalar_lea.vmem %s4678_s0, %s2403_s16 }
  0x13   : > { %v2585_v4 = vld [vmem:[%s2579_s21 + $0x18] sm:$0xff]   ;;  %v2588_v5 = vld [vmem:[%s2579_s21 + $0x20] sm:$0xff]   ;;  %2306 = vmatpush3.bf16.msra.mxu0 %v2511_v2  ;;  %2396 = vmatpush3.bf16.msra.mxu1 %v2511_v2  ;;  %v175_v6 = vld [vmem:[%s2579_s21 + $0xc] sm:$0xf] }
  0x14   : > { %2307 = vmatprep.subr.bf16.mxu0 %v4682_v0  ;;  %2389 = vmatprep.subr.bf16.mxu1 %v4682_v0  ;;  %v536_v7 = vrot.slane %v2585_v4, 1  ;;  %v538_v8 = vrot.slane %v2588_v5, 1  ;;  %v210_v9 = vld [vmem:[%s2579_s21 + $0x8] sm:$0xe]  ;;  %v2597_v10 = vld [vmem:[%s2579_s21 + $0x10] sm:$0xff]   ;;  %v2600_v11 = vld [vmem:[%s2579_s21] sm:$0xff]  }
  0x15   : > { %v2229_v13 = vcombine.low %v210_v9, %v175_v6  ;;  %v174_v14 = vld [vmem:[%s2579_s21 + $0x8] sm:$0xf]  ;;  %v534_v16 = vrot.slane %v2597_v10, 1  ;;  %v301_v18 = vshrl.u32 %v2600_v11, 16  ;;  %v303_v20 = vshll.u32 %v2600_v11, 16  ;;  %v2648_v47 = vld [vmem:[%s2579_s21 + $0x30] sm:$0xff]  }
  0x16   : > { %v539_v15 = vsel %vm532_vm0, %v536_v7, %v538_v8  ;;  %v2610_v17 = vcombine.low %v174_v14, %v175_v6  ;;  %v316_v21 = vshll.u32 %v2597_v10, 16  ;;  %v324_v22 = vshll.u32 %v2585_v4, 16  ;;  %v2637_v42 = vld [vmem:[%s2579_s21 + $0x28] sm:$0xff]   ;;  %v2659_v54 = vld [vmem:[%s2579_s21 + $0x38] sm:$0xff]   ;;  %v2671_v58 = vld [vmem:[%s2579_s21 + $0x50] sm:$0xff]  }
  0x17   : > { %2308 = vmatpush3.bf16.msra.mxu0 %v2512_v3  ;;  %2397 = vmatpush3.bf16.msra.mxu1 %v2512_v3  ;;  %v533_v19 = vrot.slane %v2229_v13, 1  ;;  %v305_v26 = vrot.slane %v303_v20, 1  ;;  %v328_v31 = vshrl.u32 %v2585_v4, 16  ;;  %v537_v32 = vsel %vm532_vm0, %v534_v16, %v536_v7  ;;  %v2656_v53 = vld [vmem:[%s2579_s21 + $0x48] sm:$0xff]   ;;  %v2676_v63 = vld [vmem:[%s2579_s21 + $0x80] sm:$0xff]   ;;  %v2693_v9 = vld [vmem:[%s2579_s21 + $0x58] sm:$0xff]  }
  0x18   : > { %572 = vrot.lane.b32.xlu0 %v539_v15, %s2531_s26  ;;  %2309 = vmatprep.subr.bf16.mxu0 %v4682_v0  ;;  %v308_v23 = vshll.u32 %v2610_v17, 16  ;;  %v312_v24 = vshrl.u32 %v2610_v17, 16  ;;  %v318_v29 = vrot.slane %v316_v21, 1  ;;  %v326_v30 = vrot.slane %v324_v22, 1  ;;  %v2510_v6 = vld [vmem:[%s2579_s21 + $0x88] sm:$0xff]  }
  0x19   : > { %2390 = vmatprep.subr.bf16.mxu1 %v4682_v0  ;;  %v535_v25 = vsel %vm532_vm0, %v533_v19, %v534_v16  ;;  %v306_v33 = vor.u32 %v305_v26, %v301_v18  ;;  %v332_v34 = vshll.u32 %v2588_v5, 16  ;;  %v320_v35 = vshrl.u32 %v2597_v10, 16  ;;  %v2519_v18 = vld [vmem:[%s4679_s1 + $0x38] sm:$0xff]  }
  0x1a   : > { %568 = vrot.lane.b32.xlu1 %v535_v25, %s2531_s26  ;;  %v310_v28 = vrot.slane %v308_v23, 1  ;;  %v330_v39 = vor.u32 %v328_v31, %v326_v30  ;;  %v336_v45 = vshrl.u32 %v2588_v5, 16  ;;  %v340_v46 = vshll.u32 %v2637_v42, 16  ;;  %v2514_v23 = vld [vmem:[%s2579_s21 + $0x90] ss:$0 sps:$4 sm:$0x11]  }
  0x1b   : > { %2310 = vmatpush3.bf16.msra.mxu0 %v2515_v12  ;;  %2398 = vmatpush3.bf16.msra.mxu1 %v2515_v12  ;;  %v334_v40 = vrot.slane %v332_v34, 1  ;;  %v322_v41 = vor.u32 %v320_v35, %v318_v29  ;;  %v540_v48 = vrot.slane %v2637_v42, 1  ;;  %v344_v51 = vshrl.u32 %v2637_v42, 16  ;;  %v2513_v12 = vld [vmem:[%s2579_s21 + $0x88] ss:$0 sps:$4 sm:$0x11]  }
  0x1c   : > { %2311 = vmatprep.subr.bf16.mxu0 %v4682_v0  ;;  %v314_v36 = vor.u32 %v312_v24, %v310_v28  ;;  %2391 = vmatprep.subr.bf16.mxu1 %v4682_v0  ;;  %v311_v37 = vsel %vm299_vm1, %v306_v33, %v310_v28  ;;  %v342_v50 = vrot.slane %v340_v46, 1  ;;  %v348_v52 = vshll.u32 %v2648_v47, 16 }
  0x1d   : > { %440 = vrot.lane.b32.xlu0 %v311_v37, %s2532_s29  ;;  %v335_v43 = vsel %vm299_vm1, %v330_v39, %v334_v40  ;;  %v327_v44 = vsel %vm299_vm1, %v322_v41, %v326_v30  ;;  %v338_v49 = vor.u32 %v336_v45, %v334_v40  ;;  %v541_v56 = vsel %vm532_vm0, %v538_v8, %v540_v48 }
  0x1e   : > { %570 = vrot.lane.b32.xlu1 %v537_v32, %s2531_s26  ;;  %v319_v38 = vsel %vm299_vm1, %v314_v36, %v318_v29  ;;  %v542_v57 = vrot.slane %v2648_v47, 1  ;;  %v346_v60 = vor.u32 %v344_v51, %v342_v50  ;;  %v350_v61 = vrot.slane %v348_v52, 1  ;;  %v2739_v51 = vld [vmem:[%s2579_s21 + $0x40] sm:$0xff]  }
  0x1f   : > { %2312 = vmatpush3.bf16.msra.mxu0 %v2516_v27  ;;  %2399 = vmatpush3.bf16.msra.mxu1 %v2516_v27  ;;  %v343_v59 = vsel %vm299_vm1, %v338_v49, %v342_v50  ;;  %v372_v62 = vshll.u32 %v2656_v53, 16  ;;  %v352_v2 = vshrl.u32 %v2648_v47, 16  ;;  %v356_v3 = vshll.u32 %v2659_v54, 16 }
  0x20   : > { %2313 = vmatprep.subr.bf16.mxu0 %v4682_v0  ;;  %2392 = vmatprep.subr.bf16.mxu1 %v4682_v0  ;;  %v543_v7 = vsel %vm532_vm0, %v540_v48, %v542_v57  ;;  %v380_v8 = vshll.u32 %v2671_v58, 16  ;;  %v351_v13 = vsel %vm299_vm1, %v346_v60, %v350_v61  ;;  %v376_v15 = vshrl.u32 %v2656_v53, 16 }
  0x21   : > { %495 = vrot.lane.b32.xlu0 %v319_v38, %s2533_s30  ;;  %v2697_v14 = vrot.slane %v372_v62, 1  ;;  %v428_v16 = vshll.u32 %v2676_v63, 16  ;;  %v354_v19 = vor.u32 %v352_v2, %v350_v61  ;;  %v358_v20 = vrot.slane %v356_v3, 1 }
  0x22   : > { %442 = vrot.lane.b32.xlu1 %v319_v38, %s2532_s29  ;;  %v384_v21 = vshrl.u32 %v2671_v58, 16  ;;  %v432_v22 = vshrl.u32 %v2676_v63, 16  ;;  %v562_v25 = vrot.slane %v2676_v63, 1  ;;  %v483_v26 = vshll.u32 %v2510_v6, 16 }
  0x23   : > { %2314 = vmatpush3.bf16.msra.mxu0 %v2517_v55  ;;  %2400 = vmatpush3.bf16.msra.mxu1 %v2517_v55  ;;  %v2709_v24 = vrot.slane %v428_v16, 1  ;;  %v564_v27 = vrot.slane %v2510_v6, 1  ;;  %v382_v28 = vrot.slane %v380_v8, 1  ;;  %v388_v29 = vshll.u32 %v2693_v9, 16 }
  0x24   : > { %2315 = vmatprep.subr.bf16.mxu0 %v4682_v0  ;;  %2393 = vmatprep.subr.bf16.mxu1 %v4682_v0  ;;  %v436_v30 = vshll.u32 %v2513_v12, 16  ;;  %v487_v31 = vshrl.u32 %v2510_v6, 16  ;;  %v378_v32 = vor.u32 %v376_v15, %v2697_v14  ;;  %v485_v34 = vrot.slane %v483_v26, 1 }
  0x25   : > { %497 = vrot.lane.b32.xlu0 %v327_v44, %s2533_s30  ;;  %v434_v33 = vor.u32 %v432_v22, %v2709_v24  ;;  %v2720_v35 = vsel %vm532_vm0, %v562_v25, %v564_v27  ;;  %v491_v37 = vshll.u32 %v2514_v23, 16  ;;  %v566_v38 = vrot.slane %v2514_v23, 1 }
  0x26   : > { %499 = vrot.lane.b32.xlu1 %v335_v43, %s2533_s30  ;;  %v438_v36 = vrot.slane %v436_v30, 1  ;;  %v489_v40 = vor.u32 %v487_v31, %v485_v34  ;;  %v544_v41 = vrot.slane %v2659_v54, 1  ;;  %v359_v46 = vsel %vm299_vm1, %v354_v19, %v358_v20 }
  0x27   : > { %2316 = vmatpush3.bf16.msra.mxu0 %v2518_v1  ;;  %2401 = vmatpush3.bf16.msra.mxu1 %v2518_v1  ;;  %v2723_v39 = vsel %vm299_vm1, %v434_v33, %v485_v34  ;;  %v2732_v45 = vsel %vm532_vm0, %v564_v27, %v566_v38  ;;  %v2736_v48 = vsel %vm299_vm1, %v378_v32, %v382_v28  ;;  %v390_v50 = vrot.slane %v388_v29, 1  ;;  %v2760_v1 = vld [vmem:[%s2579_s21 + $0x60] sm:$0xff]  }
  0x28   : > { %2317 = vmatprep.subr.bf16.mxu0 %v4682_v0  ;;  %2394 = vmatprep.subr.bf16.mxu1 %v4682_v0  ;;  %v386_v49 = vor.u32 %v384_v21, %v382_v28  ;;  %v550_v55 = vrot.slane %v2671_v58, 1  ;;  %v360_v61 = vshrl.u32 %v2659_v54, 16  ;;  %v364_v62 = vshll.u32 %v2739_v51, 16  ;;  %v2778_v21 = vld [vmem:[%s2579_s21 + $0x68] sm:$0xff]  }
  0x29   : > { %444 = vrot.lane.b32.xlu0 %v327_v44, %s2532_s29  ;;  %v493_v44 = vrot.slane %v491_v37, 1  ;;  %v546_v12 = vrot.slane %v2739_v51, 1  ;;  %v554_v19 = vrot.slane %v2760_v1, 1  ;;  %v400_v26 = vshrl.u32 %v2760_v1, 16 }
  0x2a   : > { %446 = vrot.lane.b32.xlu1 %v335_v43, %s2532_s29  ;;  %v2729_v43 = vsel %vm299_vm1, %v434_v33, %v438_v36  ;;  %v391_v60 = vsel %vm299_vm1, %v386_v49, %v390_v50  ;;  %v362_v3 = vor.u32 %v360_v61, %v358_v20  ;;  %v366_v6 = vrot.slane %v364_v62, 1  ;;  %v2796_v36 = vld [vmem:[%s2579_s21 + $0x70] sm:$0xff]  }
  0x2b   : > { %2318 = vmatpush3.bf16.msra.mxu0 %v2519_v18  ;;  %2402 = vmatpush3.bf16.msra.mxu1 %v2519_v18  ;;  %v2746_v52 = vsel %vm299_vm1, %v489_v40, %v493_v44  ;;  %v547_v16 = vsel %vm532_vm0, %v544_v41, %v546_v12  ;;  %v368_v20 = vshrl.u32 %v2739_v51, 16  ;;  %v404_v27 = vshll.u32 %v2778_v21, 16  ;;  %v2806_v44 = vld [vmem:[%s2579_s21 + $0x78] sm:$0xff]  }
  0x2c   : > { %v367_v8 = vsel %vm299_vm1, %v362_v3, %v366_v6  ;;  %v548_v29 = vrot.slane %v2656_v53, 1  ;;  %v556_v34 = vrot.slane %v2778_v21, 1  ;;  %v408_v37 = vshrl.u32 %v2778_v21, 16 }
  0x2d   : > { %501 = vrot.lane.b32.xlu0 %v343_v59, %s2533_s30  ;;  %v370_v23 = vor.u32 %v368_v20, %v366_v6  ;;  %v406_v31 = vrot.slane %v404_v27, 1  ;;  %v412_v38 = vshll.u32 %v2796_v36, 16 }
  0x2e   : > { %574 = vrot.lane.b32.xlu1 %v541_v56, %s2531_s26  ;;  %v552_v56 = vrot.slane %v2693_v9, 1  ;;  %v549_v32 = vsel %vm532_vm0, %v546_v12, %v548_v29 }
  0x2f   : > { %v375_v28 = vsel %vm299_vm1, %v370_v23, %v2697_v14  ;;  %v557_v14 = vsel %vm532_vm0, %v554_v19, %v556_v34  ;;  %v410_v40 = vor.u32 %v408_v37, %v406_v31 }
  0x30   : > { %v553_v2 = vsel %vm532_vm0, %v550_v55, %v552_v56  ;;  %v555_v22 = vsel %vm532_vm0, %v552_v56, %v554_v19  ;;  %v416_v56 = vshrl.u32 %v2796_v36, 16 }
  0x31   : > { %448 = vrot.lane.b32.xlu0 %v343_v59, %s2532_s29  ;;  %v545_v59 = vsel %vm532_vm0, %v542_v57, %v544_v41  ;;  %v396_v57 = vshll.u32 %v2760_v1, 16  ;;  %v414_v41 = vrot.slane %v412_v38, 1 }
  0x32   : > { %503 = vrot.lane.b32.xlu1 %v351_v13, %s2533_s30 }
  0x33   : > { %v398_v15 = vrot.slane %v396_v57, 1  ;;  %v415_v49 = vsel %vm299_vm1, %v410_v40, %v414_v41  ;;  %v418_v61 = vor.u32 %v416_v56, %v414_v41 }
  0x35   : > { %576 = vrot.lane.b32.xlu0 %v543_v7, %s2531_s26  ;;  %v392_v7 = vshrl.u32 %v2693_v9, 16  ;;  %v402_v30 = vor.u32 %v400_v26, %v398_v15 }
  0x36   : > { %450 = vrot.lane.b32.xlu1 %v351_v13, %s2532_s29 }
  0x37   : > { %v394_v13 = vor.u32 %v392_v7, %v390_v50  ;;  %v407_v33 = vsel %vm299_vm1, %v402_v30, %v406_v31  ;;  %v558_v50 = vrot.slane %v2796_v36, 1 }
  0x39   : > { %458 = vrot.lane.b32.xlu0 %v2736_v48, %s2532_s29  ;;  %v399_v18 = vsel %vm299_vm1, %v394_v13, %v398_v15 }
  0x3a   : > { %505 = vrot.lane.b32.xlu1 %v359_v46, %s2533_s30 }
  0x3d   : > { %513 = vrot.lane.b32.xlu0 %v391_v60, %s2533_s30 }
  0x3e   : > { %578 = vrot.lane.b32.xlu1 %v545_v59, %s2531_s26  ;;  %v420_v59 = vshll.u32 %v2806_v44, 16 }
  0x40   : > { %v422_v62 = vrot.slane %v420_v59, 1 }
  0x41   : > { %586 = vrot.lane.b32.xlu0 %v553_v2, %s2531_s26 }
  0x42   : > { %452 = vrot.lane.b32.xlu1 %v359_v46, %s2532_s29  ;;  %v551_v46 = vsel %vm532_vm0, %v548_v29, %v550_v55  ;;  %v424_v55 = vshrl.u32 %v2806_v44, 16  ;;  %v423_v2 = vsel %vm299_vm1, %v418_v61, %v422_v62 }
  0x44   : > { %v426_v6 = vor.u32 %v424_v55, %v422_v62 }
  0x45   : > { %460 = vrot.lane.b32.xlu0 %v391_v60, %s2532_s29  ;;  %v560_v60 = vrot.slane %v2806_v44, 1 }
  0x46   : > { %507 = vrot.lane.b32.xlu1 %v367_v8, %s2533_s30  ;;  %v431_v7 = vsel %vm299_vm1, %v426_v6, %v2709_v24 }
  0x47   : > { %v561_v3 = vsel %vm532_vm0, %v558_v50, %v560_v60  ;;  %v563_v57 = vsel %vm532_vm0, %v560_v60, %v562_v25 }
  0x49   : > { %515 = vrot.lane.b32.xlu0 %v399_v18, %s2533_s30 }
  0x4a   : > { %580 = vrot.lane.b32.xlu1 %v547_v16, %s2531_s26 }
  0x4d   : > { %588 = vrot.lane.b32.xlu0 %v555_v22, %s2531_s26 }
  0x4e   : > { %454 = vrot.lane.b32.xlu1 %v367_v8, %s2532_s29 }
  0x51   : > { %462 = vrot.lane.b32.xlu0 %v399_v18, %s2532_s29 }
  0x52   : > { %509 = vrot.lane.b32.xlu1 %v375_v28, %s2533_s30 }
  0x55   : > { %517 = vrot.lane.b32.xlu0 %v407_v33, %s2533_s30 }
  0x56   : > { %582 = vrot.lane.b32.xlu1 %v549_v32, %s2531_s26 }
  0x59   : > { %590 = vrot.lane.b32.xlu0 %v557_v14, %s2531_s26 }
  0x5a   : > { %456 = vrot.lane.b32.xlu1 %v375_v28, %s2532_s29 }
  0x5d   : > { %464 = vrot.lane.b32.xlu0 %v407_v33, %s2532_s29 }
  0x5e   : > { %511 = vrot.lane.b32.xlu1 %v2736_v48, %s2533_s30  ;;  %v559_v48 = vsel %vm532_vm0, %v556_v34, %v558_v50 }
  0x61   : > { %519 = vrot.lane.b32.xlu0 %v415_v49, %s2533_s30 }
  0x62   : > { %584 = vrot.lane.b32.xlu1 %v551_v46, %s2531_s26 }
  0x65   : > { %592 = vrot.lane.b32.xlu0 %v559_v48, %s2531_s26 }
  0x66   : > { %466 = vrot.lane.b32.xlu1 %v415_v49, %s2532_s29 }
  0x69   : > { %521 = vrot.lane.b32.xlu0 %v423_v2, %s2533_s30 }
  0x6a   : > { %594 = vrot.lane.b32.xlu1 %v561_v3, %s2531_s26 }
  0x6d   : > { %468 = vrot.lane.b32.xlu0 %v423_v2, %s2532_s29 }
  0x6e   : > { %523 = vrot.lane.b32.xlu1 %v431_v7, %s2533_s30 }
  0x71   : > { %596 = vrot.lane.b32.xlu0 %v563_v57, %s2531_s26 }
  0x72   : > { %470 = vrot.lane.b32.xlu1 %v431_v7, %s2532_s29 }
  0x75   : > { %525 = vrot.lane.b32.xlu0 %v2723_v39, %s2533_s30 }
  0x76   : > { %598 = vrot.lane.b32.xlu1 %v2720_v35, %s2531_s26 }
  0x79   : > { %472 = vrot.lane.b32.xlu0 %v2729_v43, %s2532_s29 }
  0x7a   : > { %527 = vrot.lane.b32.xlu1 %v2746_v52, %s2533_s30 }
  0x7d   : > { %600 = vrot.lane.b32.xlu0 %v2732_v45, %s2531_s26  ;;  %s4537_s26 = scalar_lea.vmem %s4681_s3, %s2277_s24 }
  0x8a   : > { %v573_v24 = vpop.permute.xlu0 %572 }
  0x8c   : > { %v569_v25 = vpop.permute.xlu1 %568 }
  0x8f   : > { %v441_v12 = vpop.permute.xlu0 %440 }
  0x90   : > { %v571_v8 = vpop.permute.xlu1 %570  ;;  %v604_v39 = vsel %vm602_vm3, %v2600_v11, %v441_v12 }
  0x93   : > { %v496_v13 = vpop.permute.xlu0 %495 }
  0x94   : > { %v443_v35 = vpop.permute.xlu1 %442  ;;  %v639_v43 = vsel %vm637_vm4, %v604_v39, %v496_v13 }
  0x95   : > { %v674_v15 = vsel %vm672_vm5, %v639_v43, %v569_v25  ;;  %v606_v45 = vsel %vm602_vm3, %v2610_v17, %v443_v35 }
  0x96   : > { %2320 = vmatmul.mubr.bf16.vlgmr.msra.gmra.mrb[0].mxu0 %v674_v15 }
  0x97   : > { %v498_v16 = vpop.permute.xlu0 %497  ;;  %2323 = vmatprep.mubr.msk.bf16.mxu0 %vm2534_vm2, %v4682_v0 }
  0x98   : > { %v500_v52 = vpop.permute.xlu1 %499  ;;  %v641_v18 = vsel %vm637_vm4, %v606_v45, %v498_v16 }
  0x99   : > { %v677_v11 = vsel %vm672_vm5, %v641_v18, %v571_v8 }
  0x9b   : > { %v445_v20 = vpop.permute.xlu0 %444 }
  0x9c   : > { %v447_v19 = vpop.permute.xlu1 %446  ;;  %v608_v22 = vsel %vm602_vm3, %v2597_v10, %v445_v20 }
  0x9d   : > { %v643_v17 = vsel %vm637_vm4, %v608_v22, %v500_v52  ;;  %v610_v30 = vsel %vm602_vm3, %v2585_v4, %v447_v19 }
  0x9e   : > { %2324 = vmatmul.mubr.bf16.gmra.mrb[4].mxu0 %v677_v11  ;;  %v680_v29 = vsel %vm672_vm5, %v643_v17, %v573_v24 }
  0x9f   : > { %v502_v26 = vpop.permute.xlu0 %501  ;;  %2327 = vmatprep.mubr.msk.bf16.mxu0 %vm2534_vm2, %v4682_v0 }
  0xa0   : > { %v575_v23 = vpop.permute.xlu1 %574  ;;  %v645_v10 = vsel %vm637_vm4, %v610_v30, %v502_v26 }
  0xa1   : > { %v683_v14 = vsel %vm672_vm5, %v645_v10, %v575_v23 }
  0xa3   : > { %v449_v28 = vpop.permute.xlu0 %448 }
  0xa4   : > { %v504_v27 = vpop.permute.xlu1 %503  ;;  %v612_v4 = vsel %vm602_vm3, %v2588_v5, %v449_v28 }
  0xa5   : > { %v647_v56 = vsel %vm637_vm4, %v612_v4, %v504_v27 }
  0xa6   : > { %2328 = vmatmul.mubr.bf16.gmra.mrb[8].mxu0 %v680_v29 }
  0xa7   : > { %v577_v32 = vpop.permute.xlu0 %576  ;;  %2331 = vmatprep.mubr.msk.bf16.mxu0 %vm2534_vm2, %v4682_v0 }
  0xa8   : > { %v451_v31 = vpop.permute.xlu1 %450  ;;  %v686_v59 = vsel %vm672_vm5, %v647_v56, %v577_v32 }
  0xab   : > { %v459_v34 = vpop.permute.xlu0 %458 }
  0xac   : > { %v506_v33 = vpop.permute.xlu1 %505  ;;  %v622_v40 = vsel %vm602_vm3, %v2656_v53, %v459_v34  ;;  %v614_v53 = vsel %vm602_vm3, %v2637_v42, %v451_v31 }
  0xad   : > { %v649_v62 = vsel %vm637_vm4, %v614_v53, %v506_v33 }
  0xae   : > { %2332 = vmatmul.mubr.bf16.gmra.mrb[12].mxu0 %v683_v14 }
  0xaf   : > { %v514_v38 = vpop.permute.xlu0 %513  ;;  %2335 = vmatprep.mubr.msk.bf16.mxu0 %vm2534_vm2, %v4682_v0 }
  0xb0   : > { %v579_v37 = vpop.permute.xlu1 %578  ;;  %v657_v41 = vsel %vm637_vm4, %v622_v40, %v514_v38 }
  0xb1   : > { %v689_v55 = vsel %vm672_vm5, %v649_v62, %v579_v37 }
  0xb3   : > { %v587_v49 = vpop.permute.xlu0 %586 }
  0xb4   : > { %v453_v46 = vpop.permute.xlu1 %452  ;;  %v701_v50 = vsel %vm672_vm5, %v657_v41, %v587_v49 }
  0xb5   : > { %2356 = vmatmul.mubr.bf16.vlgmr.msra.gmra.mrb[0].mxu1 %v701_v50  ;;  %v616_v42 = vsel %vm602_vm3, %v2648_v47, %v453_v46 }
  0xb6   : > { %2336 = vmatmul.mubr.bf16.gmra.mrb[16].mxu0 %v686_v59  ;;  %2359 = vmatprep.mubr.msk.bf16.mxu1 %vm2534_vm2, %v4682_v0 }
  0xb7   : > { %v461_v5 = vpop.permute.xlu0 %460  ;;  %2339 = vmatprep.mubr.msk.bf16.mxu0 %vm2534_vm2, %v4682_v0 }
  0xb8   : > { %v508_v60 = vpop.permute.xlu1 %507  ;;  %v624_v2 = vsel %vm602_vm3, %v2671_v58, %v461_v5 }
  0xb9   : > { %v651_v58 = vsel %vm637_vm4, %v616_v42, %v508_v60  ;;  %v962_v60 = vlaneseq }
  0xbb   : > { %v516_v61 = vpop.permute.xlu0 %515  ;;  %v2944_v5 = vshrl.u32 %v962_v60, 7 }
  0xbc   : > { %v581_v48 = vpop.permute.xlu1 %580  ;;  %v659_v3 = vsel %vm637_vm4, %v624_v2, %v516_v61 }
  0xbd   : > { %v692_v8 = vsel %vm672_vm5, %v651_v58, %v581_v48  ;;  %v2947_v53 = vmul.u32.u64.low 4042322161, %v2944_v5  ;;  %v2948_v48 = vmul.u32.u64.high 4042322161, %v2944_v5, %v2947_v53  ;;  %v964_v61 = vadd.s32 8, %v2944_v5 }
  0xbe   : > { %2340 = vmatmul.mubr.bf16.gmra.mrb[20].mxu0 %v689_v55 }
  0xbf   : > { %v589_v7 = vpop.permute.xlu0 %588  ;;  %2343 = vmatprep.mubr.msk.bf16.mxu0 %vm2534_vm2, %v4682_v0  ;;  %v1003_v62 = vshrl.u32 %v2948_v48, 4  ;;  %v2953_v55 = vmul.u32.u64.low 4042322161, %v964_v61  ;;  %v2954_v2 = vmul.u32.u64.high 4042322161, %v964_v61, %v2953_v55  ;;  %v3055_v48 = vadd.s32 88, %v2944_v5 }
  0xc0   : > { %v455_v6 = vpop.permute.xlu1 %454  ;;  %v704_v57 = vsel %vm672_vm5, %v659_v3, %v589_v7  ;;  %v966_v3 = vadd.s32 24, %v2944_v5  ;;  %v968_v7 = vadd.s32 40, %v2944_v5 }
  0xc1   : > { %2360 = vmatmul.mubr.bf16.gmra.mrb[4].mxu1 %v704_v57  ;;  %v618_v35 = vsel %vm602_vm3, %v2659_v54, %v455_v6  ;;  %v967_v6 = vadd.s32 32, %v2944_v5 }
  0xc2   : > { %2363 = vmatprep.mubr.msk.bf16.mxu1 %vm2534_vm2, %v4682_v0 }
  0xc3   : > { %v463_v25 = vpop.permute.xlu0 %462 }
  0xc4   : > { %v510_v24 = vpop.permute.xlu1 %509  ;;  %v626_v47 = vsel %vm602_vm3, %v2693_v9, %v463_v25  ;;  %v2962_v25 = vmul.u32.u64.low 4042322161, %v966_v3  ;;  %v2963_v58 = vmul.u32.u64.high 4042322161, %v966_v3, %v2962_v25 }
  0xc5   : > { %v653_v45 = vsel %vm637_vm4, %v618_v35, %v510_v24  ;;  %v1004_v24 = vmul.u32 17, %v1003_v62 }
  0xc6   : > { %2344 = vmatmul.mubr.bf16.gmra.mrb[24].mxu0 %v692_v8 }
  0xc7   : > { %v518_v39 = vpop.permute.xlu0 %517  ;;  %2347 = vmatprep.mubr.msk.bf16.mxu0 %vm2534_vm2, %v4682_v0 }
  0xc8   : > { %v583_v12 = vpop.permute.xlu1 %582  ;;  %v661_v13 = vsel %vm637_vm4, %v626_v47, %v518_v39  ;;  %v2968_v39 = vmul.u32.u64.low 4042322161, %v968_v7  ;;  %v2969_v35 = vmul.u32.u64.high 4042322161, %v968_v7, %v2968_v39  ;;  %v969_v47 = vadd.s32 48, %v2944_v5 }
  0xc9   : > { %v695_v16 = vsel %vm672_vm5, %v653_v45, %v583_v12  ;;  %v2965_v8 = vmul.u32.u64.low 4042322161, %v967_v6  ;;  %v2966_v12 = vmul.u32.u64.high 4042322161, %v967_v6, %v2965_v8 }
  0xcb   : > { %v591_v15 = vpop.permute.xlu0 %590 }
  0xcc   : > { %v457_v43 = vpop.permute.xlu1 %456  ;;  %v707_v52 = vsel %vm672_vm5, %v661_v13, %v591_v15  ;;  %v1014_v13 = vshrl.u32 %v2954_v2, 4  ;;  %v2974_v15 = vmul.u32.u64.low 4042322161, %v969_v47  ;;  %v2975_v45 = vmul.u32.u64.high 4042322161, %v969_v47, %v2974_v15 }
  0xcd   : > { %2364 = vmatmul.mubr.bf16.gmra.mrb[8].mxu1 %v707_v52  ;;  %v620_v9 = vsel %vm602_vm3, %v2739_v51, %v457_v43  ;;  %v1005_v43 = vsub.s32 %v2944_v5, %v1004_v24  ;;  %v3070_v2 = vadd.s32 160, %v2944_v5 }
  0xce   : > { %2348 = vmatmul.mubr.bf16.gmra.mrb[28].mxu0 %v695_v16  ;;  %2367 = vmatprep.mubr.msk.bf16.mxu1 %vm2534_vm2, %v4682_v0  ;;  %v1015_v16 = vmul.u32 17, %v1014_v13 }
  0xcf   : > { %v465_v54 = vpop.permute.xlu0 %464  ;;  %2351 = vmatprep.mubr.msk.bf16.mxu0 %vm2534_vm2, %v4682_v0  ;;  %vm1371_vm6 = vcmp.ne.s32.totalorder %v1005_v43, 0  ;;  %vm1405_vm7 = vcmp.lt.s32.totalorder %v1005_v43, 0 }
  0xd0   : > { %v512_v18 = vpop.permute.xlu1 %511  ;;  %v628_v23 = vsel %vm602_vm3, %v2760_v1, %v465_v54  ;;  %v2980_v54 = vadd.s32 56, %v2944_v5  ;;  %vm1439_vm8 = vmand %vm1405_vm7, %vm1371_vm6 }
  0xd1   : > { %v655_v19 = vsel %vm637_vm4, %v620_v9, %v512_v18  ;;  %v1036_v18 = vshrl.u32 %v2963_v58, 4  ;;  %v1047_v9 = vshrl.u32 %v2966_v12, 4 }
  0xd3   : > { %v520_v11 = vpop.permute.xlu0 %519 }
  0xd4   : > { %v585_v20 = vpop.permute.xlu1 %584  ;;  %v663_v26 = vsel %vm637_vm4, %v628_v23, %v520_v11  ;;  %v1037_v23 = vmul.u32 17, %v1036_v18 }
  0xd5   : > { %v698_v22 = vsel %vm672_vm5, %v655_v19, %v585_v20  ;;  %v1058_v19 = vshrl.u32 %v2969_v35, 4  ;;  %v1473_v20 = vadd.s32 17, %v1005_v43 }
  0xd6   : > { %2352 = vmatmul.mubr.bf16.gmra.mrb[32].mxu0 %v698_v22  ;;  %v2984_v22 = vsub.s32 %v964_v61, %v1015_v16 }
  0xd7   : > { %v593_v17 = vpop.permute.xlu0 %592 }
  0xd8   : > { %v467_v27 = vpop.permute.xlu1 %466  ;;  %v710_v28 = vsel %vm672_vm5, %v663_v26, %v593_v17  ;;  %v2987_v26 = vmul.u32.u64.low 4042322161, %v2980_v54  ;;  %v2988_v17 = vmul.u32.u64.high 4042322161, %v2980_v54, %v2987_v26  ;;  %vm1372_vm9 = vcmp.ne.s32.totalorder %v2984_v22, 0 }
  0xd9   : > { %2368 = vmatmul.mubr.bf16.gmra.mrb[12].mxu1 %v710_v28  ;;  %v630_v51 = vsel %vm602_vm3, %v2778_v21, %v467_v27  ;;  %v1048_v27 = vmul.u32 17, %v1047_v9  ;;  %v1059_v28 = vmul.u32 17, %v1058_v19  ;;  %vm1406_vm10 = vcmp.lt.s32.totalorder %v2984_v22, 0 }
  0xda   : > { %2371 = vmatprep.mubr.msk.bf16.mxu1 %vm2534_vm2, %v4682_v0 }
  0xdb   : > { %v522_v29 = vpop.permute.xlu0 %521 }
  0xdc   : > { %v665_v30 = vsel %vm637_vm4, %v630_v51, %v522_v29  ;;  %v595_v31 = vpop.permute.xlu1 %594  ;;  %v1069_v51 = vshrl.u32 %v2975_v45, 4  ;;  %v1507_v29 = vsel %vm1439_vm8, %v1473_v20, %v1005_v43 }
  0xdd   : > { %v713_v1 = vsel %vm672_vm5, %v665_v30, %v595_v31  ;;  %v2994_v31 = vadd.s32 144, %v2944_v5  ;;  %vm3000_vm11 = vcmp.lt.s32.totalorder %v1507_v29, 16 }
  0xde   : > { %v3114_v13 = vsel %vm3000_vm11, 1.0, %v4682_v0 }
  0xdf   : > { %v469_v32 = vpop.permute.xlu0 %468 }
  0xe0   : > { %v524_v10 = vpop.permute.xlu1 %523  ;;  %v632_v33 = vsel %vm602_vm3, %v2796_v36, %v469_v32  ;;  %v2998_v32 = vsub.s32 %v966_v3, %v1037_v23 }
  0xe1   : > { %2372 = vmatmul.mubr.bf16.gmra.mrb[16].mxu1 %v713_v1  ;;  %v667_v21 = vsel %vm637_vm4, %v632_v33, %v524_v10  ;;  %v3004_v10 = vsub.s32 %v967_v6, %v1048_v27  ;;  %v3006_v33 = vsub.s32 %v968_v7, %v1059_v28  ;;  %v3082_v7 = vadd.s32 168, %v2944_v5 }
  0xe2   : > { %2375 = vmatprep.mubr.msk.bf16.mxu1 %vm2534_vm2, %v4682_v0  ;;  %vm1374_vm14 = vcmp.ne.s32.totalorder %v2998_v32, 0  ;;  %vm1408_vm15 = vcmp.lt.s32.totalorder %v2998_v32, 0 }
  0xe3   : > { %v597_v34 = vpop.permute.xlu0 %596  ;;  %vm1375_vm0 = vcmp.ne.s32.totalorder %v3004_v10, 0  ;;  %vm1409_vm1 = vcmp.lt.s32.totalorder %v3004_v10, 0  ;;  %vm3077_vm6 = vmand %vm1408_vm15, %vm1374_vm14  ;;  %v1477_v25 = vadd.s32 17, %v3004_v10  ;;  %v1478_v58 = vadd.s32 17, %v3006_v33 }
  0xe4   : > { %v471_v14 = vpop.permute.xlu1 %470  ;;  %v716_v37 = vsel %vm672_vm5, %v667_v21, %v597_v34  ;;  %v1070_v21 = vmul.u32 17, %v1069_v51  ;;  %v1474_v34 = vadd.s32 17, %v2984_v22  ;;  %v3154_v51 = vadd.s32 96, %v2944_v5 }
  0xe5   : > { %v634_v4 = vsel %vm602_vm3, %v2806_v44, %v471_v14  ;;  %v3011_v14 = vadd.s32 64, %v2944_v5  ;;  %v3135_v9 = vmul.u32.u64.low 4042322161, %v3082_v7  ;;  %v3136_v19 = vmul.u32.u64.high 4042322161, %v3082_v7, %v3135_v9 }
  0xe7   : > { %v526_v38 = vpop.permute.xlu0 %525  ;;  %v1234_v61 = vshrl.u32 %v3136_v19, 4 }
  0xe8   : > { %v669_v40 = vsel %vm637_vm4, %v634_v4, %v526_v38  ;;  %v599_v36 = vpop.permute.xlu1 %598  ;;  %v3018_v38 = vmul.u32.u64.low 4042322161, %v2994_v31  ;;  %v3019_v4 = vmul.u32.u64.high 4042322161, %v2994_v31, %v3018_v38 }
  0xe9   : > { %2376 = vmatmul.mubr.bf16.gmra.mrb[20].mxu1 %v716_v37  ;;  %v719_v46 = vsel %vm672_vm5, %v669_v40, %v599_v36  ;;  %v3014_v37 = vadd.s32 152, %v2944_v5  ;;  %v3022_v40 = vadd.s32 72, %v2944_v5  ;;  %v1080_v36 = vshrl.u32 %v2988_v17, 4 }
  0xea   : > { %2379 = vmatprep.mubr.msk.bf16.mxu1 %vm2534_vm2, %v4682_v0  ;;  %v1201_v39 = vshrl.u32 %v3019_v4, 4  ;;  %v3345_v38 = vadd.s32 120, %v2944_v5 }
  0xeb   : > { %v473_v41 = vpop.permute.xlu0 %472  ;;  %v3051_v60 = vmul.u32.u64.low 4042322161, %v3022_v40  ;;  %v3052_v53 = vmul.u32.u64.high 4042322161, %v3022_v40, %v3051_v60 }
  0xec   : > { %v636_v49 = vsel %vm602_vm3, %v2676_v63, %v473_v41  ;;  %v528_v50 = vpop.permute.xlu1 %527  ;;  %v965_v63 = vadd.s32 16, %v2944_v5  ;;  %v3028_v41 = vadd.s32 80, %v2944_v5  ;;  %vm3045_vm3 = vmand %vm1406_vm10, %vm1372_vm9  ;;  %v1202_v26 = vmul.u32 17, %v1201_v39 }
  0xed   : > { %v671_v56 = vsel %vm637_vm4, %v636_v49, %v528_v50  ;;  %v3034_v49 = vmul.u32.u64.low 4042322161, %v3011_v14  ;;  %v3035_v50 = vmul.u32.u64.high 4042322161, %v3011_v14, %v3034_v49  ;;  %vm1410_vm4 = vcmp.lt.s32.totalorder %v3006_v33, 0  ;;  %vm3092_vm9 = vmand %vm1409_vm1, %vm1375_vm0 }
  0xee   : > { %v2959_v57 = vmul.u32.u64.low 4042322161, %v965_v63  ;;  %v2960_v42 = vmul.u32.u64.high 4042322161, %v965_v63, %v2959_v57  ;;  %v3066_v62 = vmul.u32.u64.low 4042322161, %v3028_v41  ;;  %v3067_v55 = vmul.u32.u64.high 4042322161, %v3028_v41, %v3066_v62 }
  0xef   : > { %v601_v44 = vpop.permute.xlu0 %600  ;;  %v1508_v57 = vsel %vm3045_vm3, %v1474_v34, %v2984_v22  ;;  %v1511_v20 = vsel %vm3092_vm9, %v1477_v25, %v3004_v10  ;;  %v1091_v22 = vshrl.u32 %v3035_v50, 4  ;;  %v1102_v27 = vshrl.u32 %v3052_v53, 4 }
  0xf0   : > { %v722_v59 = vsel %vm672_vm5, %v671_v56, %v601_v44  ;;  %v1025_v52 = vshrl.u32 %v2960_v42, 4  ;;  %v3038_v56 = vmul.u32.u64.low 4042322161, %v3014_v37  ;;  %v3039_v44 = vmul.u32.u64.high 4042322161, %v3014_v37, %v3038_v56 }
  0xf1   : > { %2380 = vmatmul.mubr.bf16.gmra.mrb[24].mxu1 %v719_v46  ;;  %v1071_v46 = vsub.s32 %v969_v47, %v1070_v21  ;;  %v1476_v42 = vadd.s32 17, %v2998_v32  ;;  %v3108_v35 = vmul.u32.u64.low 4042322161, %v3055_v48  ;;  %v3109_v47 = vmul.u32.u64.high 4042322161, %v3055_v48, %v3108_v35 }
  0xf2   : > { %2383 = vmatprep.mubr.msk.bf16.mxu1 %vm2534_vm2, %v4682_v0  ;;  %v1026_v11 = vmul.u32 17, %v1025_v52  ;;  %vm1376_vm2 = vcmp.ne.s32.totalorder %v3006_v33, 0  ;;  %v3124_v45 = vmul.u32.u64.low 4042322161, %v3070_v2  ;;  %v3125_v52 = vmul.u32.u64.high 4042322161, %v3070_v2, %v3124_v45 }
  0xf3   : > { %vm1377_vm7 = vcmp.ne.s32.totalorder %v1071_v46, 0  ;;  %vm1411_vm8 = vcmp.lt.s32.totalorder %v1071_v46, 0  ;;  %vm3102_vm10 = vmand %vm1410_vm4, %vm1376_vm2  ;;  %v1479_v12 = vadd.s32 17, %v1071_v46  ;;  %v1212_v17 = vshrl.u32 %v3039_v44, 4 }
  0xf4   : > { %v2991_v30 = vsub.s32 %v965_v63, %v1026_v11  ;;  %v1081_v63 = vmul.u32 17, %v1080_v36  ;;  %v1512_v11 = vsel %vm3102_vm10, %v1478_v58, %v3006_v33  ;;  %v1113_v28 = vshrl.u32 %v3067_v55, 4 }
  0xf5   : > { %vm3169_vm1 = vcmp.lt.s32.totalorder %v1511_v20, 16  ;;  %vm3173_vm2 = vcmp.lt.s32.totalorder %v1512_v11, 16  ;;  %v1092_v34 = vmul.u32 17, %v1091_v22  ;;  %v3186_v4 = vsub.s32 %v2994_v31, %v1202_v26 }
  0xf6   : > { %vm1373_vm12 = vcmp.ne.s32.totalorder %v2991_v30, 0  ;;  %vm1407_vm13 = vcmp.lt.s32.totalorder %v2991_v30, 0  ;;  %v1475_v3 = vadd.s32 17, %v2991_v30  ;;  %v1082_v15 = vsub.s32 %v2980_v54, %v1081_v63 }
  0xf7   : > { %vm3061_vm5 = vmand %vm1407_vm13, %vm1373_vm12  ;;  %vm3127_vm13 = vcmp.lt.s32.totalorder %v1508_v57, 16  ;;  %v1510_v54 = vsel %vm3077_vm6, %v1476_v42, %v2998_v32  ;;  %v1213_v36 = vmul.u32 17, %v1212_v17  ;;  %v1124_v49 = vshrl.u32 %v3109_v47, 4 }
  0xf8   : > { %vm3118_vm12 = vmand %vm1411_vm8, %vm1377_vm7  ;;  %v1509_v18 = vsel %vm3061_vm5, %v1475_v3, %v2991_v30  ;;  %vm1378_vm11 = vcmp.ne.s32.totalorder %v1082_v15, 0  ;;  %vm1412_vm14 = vcmp.lt.s32.totalorder %v1082_v15, 0  ;;  %v3159_v29 = vsel %vm3127_vm13, 1.0, %v4682_v0 }
  0xf9   : > { %2384 = vmatmul.mubr.bf16.gmra.mrb[28].mxu1 %v722_v59  ;;  %v1513_v23 = vsel %vm3118_vm12, %v1479_v12, %v1071_v46  ;;  %vm3161_vm15 = vcmp.lt.s32.totalorder %v1509_v18, 16  ;;  %vm3165_vm0 = vcmp.lt.s32.totalorder %v1510_v54, 16  ;;  %v1480_v21 = vadd.s32 17, %v1082_v15  ;;  %vm3181_vm4 = vmand %vm1412_vm14, %vm1378_vm11 }
  0xfa   : > { %vm3177_vm3 = vcmp.lt.s32.totalorder %v1513_v23, 16  ;;  %v1103_v46 = vmul.u32 17, %v1102_v27  ;;  %v1114_v50 = vmul.u32 17, %v1113_v28  ;;  %v1223_v56 = vshrl.u32 %v3125_v52, 4 }
  0xfb   : > { %v3191_v44 = vmul.u32.u64.low 4042322161, %v3154_v51  ;;  %v3192_v59 = vmul.u32.u64.high 4042322161, %v3154_v51, %v3191_v44  ;;  %v3197_v60 = vsel %vm3161_vm15, 1.0, %v4682_v0  ;;  %v3202_v31 = vsel %vm3165_vm0, 1.0, %v4682_v0 }
  0xfc   : > { %v3207_v53 = vsel %vm3169_vm1, 1.0, %v4682_v0  ;;  %v3213_v63 = vsel %vm3173_vm2, 1.0, %v4682_v0  ;;  %v1514_v62 = vsel %vm3181_vm4, %v1480_v21, %v1082_v15  ;;  %v3218_v55 = vsub.s32 %v3011_v14, %v1092_v34 }
  0xfd   : > { %v3221_v3 = vadd.s32 104, %v2944_v5  ;;  %v3226_v6 = vsel %vm3177_vm3, 1.0, %v4682_v0  ;;  %v3229_v57 = vsub.s32 %v3014_v37, %v1213_v36  ;;  %v3232_v42 = vsub.s32 %v3022_v40, %v1103_v46 }
  0xfe   : > { %4734 = vst [vmem:[#allocation2_spill] sm:$0xff] %v3226_v6  ;;  %v1125_v24 = vmul.u32 17, %v1124_v49  ;;  %vm1389_vm5 = vcmp.ne.s32.totalorder %v3186_v4, 0  ;;  %vm1423_vm6 = vcmp.lt.s32.totalorder %v3186_v4, 0  ;;  %v3237_v14 = vsub.s32 %v3028_v41, %v1114_v50 }
  0xff   : > { %v1224_v25 = vmul.u32 17, %v1223_v56  ;;  %vm3239_vm7 = vcmp.lt.s32.totalorder %v1514_v62, 16  ;;  %v1491_v8 = vadd.s32 17, %v3186_v4  ;;  %v1235_v37 = vmul.u32 17, %v1234_v61  ;;  %vm3255_vm10 = vmand %vm1423_vm6, %vm1389_vm5 }
 0x100   : > { %v3245_v12 = vadd.s32 176, %v2944_v5  ;;  %vm1379_vm8 = vcmp.ne.s32.totalorder %v3218_v55, 0  ;;  %vm1413_vm9 = vcmp.lt.s32.totalorder %v3218_v55, 0  ;;  %vm1390_vm12 = vcmp.ne.s32.totalorder %v3229_v57, 0 }
 0x101   : > { %v3252_v41 = vmul.u32.u64.low 4042322161, %v3221_v3  ;;  %v3253_v39 = vmul.u32.u64.high 4042322161, %v3221_v3, %v3252_v41  ;;  %vm1424_vm13 = vcmp.lt.s32.totalorder %v3229_v57, 0  ;;  %vm1380_vm11 = vcmp.ne.s32.totalorder %v3232_v42, 0  ;;  %vm3275_vm0 = vmand %vm1413_vm9, %vm1379_vm8 }
 0x102   : > { %v3263_v43 = vsub.s32 %v3055_v48, %v1125_v24  ;;  %vm1414_vm14 = vcmp.lt.s32.totalorder %v3232_v42, 0  ;;  %vm1381_vm15 = vcmp.ne.s32.totalorder %v3237_v14, 0  ;;  %v3270_v45 = vsub.s32 %v3070_v2, %v1224_v25  ;;  %vm3300_vm2 = vmand %vm1424_vm13, %vm1390_vm12 }
 0x103   : > { %v1135_v52 = vshrl.u32 %v3192_v59, 4  ;;  %vm1415_vm1 = vcmp.lt.s32.totalorder %v3237_v14, 0  ;;  %v3281_v48 = vsub.s32 %v3082_v7, %v1235_v37  ;;  %v3290_v2 = vsel %vm3239_vm7, 1.0, %v4682_v0  ;;  %vm3309_vm3 = vmand %vm1414_vm14, %vm1380_vm11 }
 0x104   : > { %v3284_v9 = vmul.u32.u64.low 4042322161, %v3245_v12  ;;  %v3285_v19 = vmul.u32.u64.high 4042322161, %v3245_v12, %v3284_v9  ;;  %4741 = vst [vmem:[#allocation3_spill] sm:$0xff] %v3290_v2  ;;  %v1525_v54 = vsel %vm3255_vm10, %v1491_v8, %v3186_v4  ;;  %v1481_v20 = vadd.s32 17, %v3218_v55  ;;  %vm3319_vm6 = vmand %vm1415_vm1, %vm1381_vm15 }
 0x105   : > { %v1492_v11 = vadd.s32 17, %v3229_v57  ;;  %v1482_v23 = vadd.s32 17, %v3232_v42  ;;  %v1483_v26 = vadd.s32 17, %v3237_v14  ;;  %vm1382_vm4 = vcmp.ne.s32.totalorder %v3263_v43, 0 }
 0x106   : > { %vm1416_vm5 = vcmp.lt.s32.totalorder %v3263_v43, 0  ;;  %vm1391_vm7 = vcmp.ne.s32.totalorder %v3270_v45, 0  ;;  %vm1425_vm8 = vcmp.lt.s32.totalorder %v3270_v45, 0  ;;  %v1136_v27 = vmul.u32 17, %v1135_v52 }
 0x107   : > { %v3326_v28 = vadd.s32 112, %v2944_v5  ;;  %vm3328_vm9 = vcmp.lt.s32.totalorder %v1525_v54, 16  ;;  %v1484_v32 = vadd.s32 17, %v3263_v43  ;;  %vm1392_vm10 = vcmp.ne.s32.totalorder %v3281_v48, 0  ;;  %vm3338_vm13 = vmand %vm1416_vm5, %vm1382_vm4 }
 0x108   : > { %vm1426_vm12 = vcmp.lt.s32.totalorder %v3281_v48, 0  ;;  %v1515_v10 = vsel %vm3275_vm0, %v1481_v20, %v3218_v55  ;;  %v1493_v21 = vadd.s32 17, %v3270_v45  ;;  %v1146_v34 = vshrl.u32 %v3253_v39, 4  ;;  %vm3360_vm11 = vmand %vm1425_vm8, %vm1391_vm7 }
 0x109   : > { %v1526_v36 = vsel %vm3300_vm2, %v1492_v11, %v3229_v57  ;;  %v1516_v46 = vsel %vm3309_vm3, %v1482_v23, %v3232_v42  ;;  %v1517_v49 = vsel %vm3319_vm6, %v1483_v26, %v3237_v14  ;;  %v1494_v56 = vadd.s32 17, %v3281_v48  ;;  %vm3369_vm14 = vmand %vm1426_vm12, %vm1392_vm10 }
 0x10a   : > { %v3374_v61 = vsub.s32 %v3154_v51, %v1136_v27  ;;  %v3377_v62 = vmul.u32.u64.low 4042322161, %v3326_v28  ;;  %v3378_v55 = vmul.u32.u64.high 4042322161, %v3326_v28, %v3377_v62  ;;  %v3381_v57 = vadd.s32 184, %v2944_v5 }
 0x10b   : > { %v3386_v24 = vsel %vm3328_vm9, 1.0, %v4682_v0  ;;  %vm3388_vm15 = vcmp.lt.s32.totalorder %v1515_v10, 16  ;;  %v1518_v51 = vsel %vm3338_vm13, %v1484_v32, %v3263_v43  ;;  %v1245_v25 = vshrl.u32 %v3285_v19, 4 }
 0x10c   : > { %4756 = vst [vmem:[#allocation4_spill] sm:$0xff] %v3386_v24  ;;  %v1527_v58 = vsel %vm3360_vm11, %v1493_v21, %v3270_v45  ;;  %v1147_v8 = vmul.u32 17, %v1146_v34  ;;  %v3400_v37 = vmul.u32.u64.low 4042322161, %v3345_v38  ;;  %v3401_v41 = vmul.u32.u64.high 4042322161, %v3345_v38, %v3400_v37  ;;  %v3421_v45 = vld [vmem:[%s4680_s2] ss:$0 sm:$0xff] }
 0x10d   : > { %vm3403_vm0 = vcmp.lt.s32.totalorder %v1526_v36, 16  ;;  %vm3407_vm1 = vcmp.lt.s32.totalorder %v1516_v46, 16  ;;  %vm3411_vm2 = vcmp.lt.s32.totalorder %v1517_v49, 16  ;;  %v1528_v43 = vsel %vm3369_vm14, %v1494_v56, %v3281_v48 }
 0x10e   : > { %vm1677_vm3 = vcmask 130048   ;;  %vm1383_vm4 = vcmp.ne.s32.totalorder %v3374_v61, 0  ;;  %vm1417_vm5 = vcmp.lt.s32.totalorder %v3374_v61, 0  ;;  %vm3433_vm6 = vcmp.lt.s32.totalorder %v1518_v51, 16 }
 0x10f   : > { %vm3437_vm7 = vcmp.lt.s32.totalorder %v1527_v58, 16  ;;  %v1246_v19 = vmul.u32 17, %v1245_v25  ;;  %v3444_v20 = vsel %vm3388_vm15, 1.0, %v4682_v0  ;;  %vm3446_vm8 = vcmp.lt.s32.totalorder %v1528_v43, 16  ;;  %vm3475_vm9 = vmand %vm1417_vm5, %vm1383_vm4 }
 0x110   : > { %4769 = vst [vmem:[#allocation5_spill] sm:$0xff] %v3444_v20  ;;  %v3452_v11 = vsub.s32 %v3221_v3, %v1147_v8  ;;  %v3464_v17 = vsel %vm3403_vm0, 1.0, %v4682_v0  ;;  %v3469_v27 = vsel %vm3407_vm1, 1.0, %v4682_v0  ;;  %v3482_v30 = vsel %vm3411_vm2, 1.0, %v4682_v0 }
 0x111   : > { %4772 = vst [vmem:[#allocation6_spill] sm:$0xff] %v3464_v17  ;;  %4773 = vst [vmem:[#allocation7_spill] sm:$0xff] %v3469_v27  ;;  %v3487_v32 = vsel %vm3433_vm6, 1.0, %v4682_v0  ;;  %v1157_v10 = vshrl.u32 %v3378_v55, 4  ;;  %v3500_v34 = vsel %vm3446_vm8, 1.0, %v4682_v0  ;;  %v3506_v36 = vadd.s32 128, %v2944_v5 }
 0x112   : > { %4776 = vst [vmem:[#allocation8_spill] sm:$0xff] %v3482_v30  ;;  %4777 = vst [vmem:[#allocation9_spill] sm:$0xff] %v3487_v32  ;;  %vm1384_vm10 = vcmp.ne.s32.totalorder %v3452_v11, 0  ;;  %v1168_v49 = vshrl.u32 %v3401_v41, 4  ;;  %v3514_v50 = vadd.s32 136, %v2944_v5  ;;  %vm1418_vm12 = vcmp.lt.s32.totalorder %v3452_v11, 0 }
 0x113   : > { %v1158_v62 = vmul.u32 17, %v1157_v10  ;;  %v3544_v39 = vadd.s32 200, %v2944_v5  ;;  %vm3567_vm14 = vmand %vm1418_vm12, %vm1384_vm10 }
 0x114   : > { %v1169_v8 = vmul.u32 17, %v1168_v49  ;;  %v3540_v37 = vmul.u32.u64.low 4042322161, %v3514_v50  ;;  %v3541_v41 = vmul.u32.u64.high 4042322161, %v3514_v50, %v3540_v37 }
 0x169   : > { %v3247_v40 = vpop.f32.mrb[0].mxu0 }
 0x16a   : > { %v2321_v35 = vpop.f32.mrb[1].mxu0  ;;  %v3456_v22 = vadd.f32 %v3421_v45, %v3247_v40 }
 0x16b   : > { %v3265_v15 = vpop.f32.mrb[2].mxu0 }
 0x16c   : > { %v2322_v16 = vpop.f32.mrb[3].mxu0  ;;  %v3431_v18 = vadd.f32 %v3421_v45, %v3265_v15  ;;  %v1485_v15 = vadd.s32 17, %v3374_v61  ;;  %v1643_v56 = vmul.f32 %v3114_v13, %v3456_v22 }
 0x16d   : > { %v3426_v52 = vmul.u32.u64.low 4042322161, %v3381_v57  ;;  %v3427_v16 = vmul.u32.u64.high 4042322161, %v3381_v57, %v3426_v52 }
 0x16e   : > { %v1644_v33 = vmul.f32 %v3159_v29, %v3431_v18  ;;  %v1519_v46 = vsel %vm3475_vm9, %v1485_v15, %v3374_v61  ;;  %v3525_v61 = vadd.s32 17, %v3452_v11  ;;  %v1678_v35 = vsel %vm1677_vm3, %v1643_v56, 0.0 }
 0x16f   : > { %v1256_v55 = vshrl.u32 %v3427_v16, 4  ;;  %vm3550_vm13 = vcmp.lt.s32.totalorder %v1519_v46, 16 }
 0x170   : > { %v1679_v14 = vsel %vm1677_vm3, %v1644_v33, 0.0 }
 0x171   : > { %v835_v1 = vpop.f32.mrb[4].mxu0  ;;  %v1680_v48 = vadd.f32 %v1679_v14, %v1678_v35 }
 0x172   : > { %v2325_v4 = vpop.f32.mrb[5].mxu0  ;;  %v3459_v23 = vadd.f32 %v3421_v45, %v835_v1  ;;  %v3492_v1 = vsel %vm3437_vm7, 1.0, %v4682_v0 }
 0x173   : > { %v838_v44 = vpop.f32.mrb[6].mxu0  ;;  %4778 = vst [vmem:[#allocation10_spill] sm:$0xff] %v3492_v1  ;;  %v3503_v4 = vsub.s32 %v3245_v12, %v1246_v19  ;;  %v3556_v19 = vsub.s32 %v3326_v28, %v1158_v62  ;;  %v3593_v62 = vsel %vm3550_vm13, 1.0, %v4682_v0 }
 0x174   : > { %v2326_v42 = vpop.f32.mrb[7].mxu0  ;;  %v1645_v12 = vmul.f32 %v3197_v60, %v3459_v23  ;;  %v3521_v59 = vadd.f32 %v3421_v45, %v838_v44  ;;  %v3536_v25 = vmul.u32.u64.low 4042322161, %v3506_v36  ;;  %v3537_v44 = vmul.u32.u64.high 4042322161, %v3506_v36, %v3536_v25  ;;  %4783 = vst [vmem:[#allocation11_spill] sm:$0xff] %v3593_v62 }
 0x175   : > { %v3529_v42 = vadd.s32 192, %v2944_v5  ;;  %vm1393_vm11 = vcmp.ne.s32.totalorder %v3503_v4, 0  ;;  %vm1427_vm15 = vcmp.lt.s32.totalorder %v3503_v4, 0  ;;  %vm1385_vm0 = vcmp.ne.s32.totalorder %v3556_v19, 0 }
 0x176   : > { %v1681_v47 = vsel %vm1677_vm3, %v1645_v12, 0.0  ;;  %v1646_v43 = vmul.f32 %v3202_v31, %v3521_v59  ;;  %v3588_v12 = vadd.s32 17, %v3503_v4  ;;  %vm1419_vm1 = vcmp.lt.s32.totalorder %v3556_v19, 0  ;;  %vm3626_vm5 = vmand %vm1427_vm15, %vm1393_vm11 }
 0x177   : > { %v3572_v10 = vmul.u32.u64.low 4042322161, %v3529_v42  ;;  %v3573_v28 = vmul.u32.u64.high 4042322161, %v3529_v42, %v3572_v10  ;;  %v1682_v33 = vadd.f32 %v1681_v47, %v1680_v48  ;;  %v1487_v16 = vadd.s32 17, %v3556_v19  ;;  %vm3636_vm6 = vmand %vm1419_vm1, %vm1385_vm0 }
 0x178   : > { %v1683_v49 = vsel %vm1677_vm3, %v1646_v43, 0.0  ;;  %v1190_v48 = vshrl.u32 %v3541_v41, 4 }
 0x179   : > { %v843_v54 = vpop.f32.mrb[8].mxu0  ;;  %v1684_v37 = vadd.f32 %v1683_v49, %v1682_v33 }
 0x17a   : > { %v2329_v26 = vpop.f32.mrb[9].mxu0  ;;  %v3533_v51 = vadd.f32 %v3421_v45, %v843_v54  ;;  %v1257_v54 = vmul.u32 17, %v1256_v55 }
 0x17b   : > { %v846_v40 = vpop.f32.mrb[10].mxu0 }
 0x17c   : > { %v2330_v21 = vpop.f32.mrb[11].mxu0  ;;  %v1647_v7 = vmul.f32 %v3207_v53, %v3533_v51  ;;  %v3561_v15 = vadd.f32 %v3421_v45, %v846_v40  ;;  %v3579_v40 = vmul.u32.u64.low 4042322161, %v3544_v39  ;;  %v3580_v46 = vmul.u32.u64.high 4042322161, %v3544_v39, %v3579_v40 }
 0x17d   : > { %v3576_v21 = vsub.s32 %v3345_v38, %v1169_v8  ;;  %v1520_v38 = vsel %vm3567_vm14, %v3525_v61, %v3452_v11  ;;  %v3601_v55 = vsub.s32 %v3381_v57, %v1257_v54  ;;  %v1179_v8 = vshrl.u32 %v3537_v44, 4 }
 0x17e   : > { %v1685_v14 = vsel %vm1677_vm3, %v1647_v7, 0.0  ;;  %v1648_v25 = vmul.f32 %v3213_v63, %v3561_v15  ;;  %v3613_v57 = vadd.s32 208, %v2944_v5  ;;  %vm3656_vm10 = vcmp.lt.s32.totalorder %v1520_v38, 16 }
 0x17f   : > { %vm1386_vm2 = vcmp.ne.s32.totalorder %v3576_v21, 0  ;;  %vm1420_vm4 = vcmp.lt.s32.totalorder %v3576_v21, 0  ;;  %v1686_v54 = vadd.f32 %v1685_v14, %v1684_v37  ;;  %vm1394_vm7 = vcmp.ne.s32.totalorder %v3601_v55, 0 }
 0x180   : > { %vm1428_vm8 = vcmp.lt.s32.totalorder %v3601_v55, 0  ;;  %v1488_v3 = vadd.s32 17, %v3576_v21  ;;  %v1687_v10 = vsel %vm1677_vm3, %v1648_v25, 0.0  ;;  %vm3651_vm9 = vmand %vm1420_vm4, %vm1386_vm2  ;;  %v1180_v49 = vmul.u32 17, %v1179_v8 }
 0x181   : > { %v851_v58 = vpop.f32.mrb[12].mxu0  ;;  %v1267_v14 = vshrl.u32 %v3573_v28, 4  ;;  %v1529_v25 = vsel %vm3626_vm5, %v3588_v12, %v3503_v4  ;;  %v1521_v28 = vsel %vm3636_vm6, %v1487_v16, %v3556_v19  ;;  %v1191_v38 = vmul.u32 17, %v1190_v48  ;;  %vm3678_vm12 = vmand %vm1428_vm8, %vm1394_vm7 }
 0x182   : > { %v2333_v52 = vpop.f32.mrb[13].mxu0  ;;  %v3584_v56 = vadd.f32 %v3421_v45, %v851_v58  ;;  %v3695_v16 = vsub.s32 %v3506_v36, %v1180_v49  ;;  %vm3709_vm13 = vcmp.lt.s32.totalorder %v1529_v25, 16  ;;  %vm3713_vm11 = vcmp.lt.s32.totalorder %v1521_v28, 16 }
 0x183   : > { %v854_v9 = vpop.f32.mrb[14].mxu0  ;;  %v1268_v48 = vmul.u32 17, %v1267_v14  ;;  %v3729_v25 = vadd.s32 224, %v2944_v5 }
 0x184   : > { %v2334_v26 = vpop.f32.mrb[15].mxu0  ;;  %v1649_v11 = vmul.f32 %v3226_v6, %v3584_v56  ;;  %v3618_v61 = vadd.f32 %v3421_v45, %v854_v9  ;;  %vm1387_vm15 = vcmp.ne.s32.totalorder %v3695_v16, 0  ;;  %vm1421_vm0 = vcmp.lt.s32.totalorder %v3695_v16, 0 }
 0x185   : > { %v3741_v4 = vsub.s32 %v3529_v42, %v1268_v48  ;;  %v1489_v42 = vadd.s32 17, %v3695_v16  ;;  %vm3768_vm6 = vmand %vm1421_vm0, %vm1387_vm15 }
 0x186   : > { %v1650_v8 = vmul.f32 %v3290_v2, %v3618_v61 }
 0x187   : > { %vm1395_vm4 = vcmp.ne.s32.totalorder %v3741_v4, 0  ;;  %vm1429_vm5 = vcmp.lt.s32.totalorder %v3741_v4, 0  ;;  %v1523_v36 = vsel %vm3768_vm6, %v1489_v42, %v3695_v16 }
 0x188   : > { %v3606_v58 = vpop.f32.mrb[0].mxu1 }
 0x189   : > { %v859_v35 = vpop.f32.mrb[16].mxu0  ;;  %v2357_v47 = vpop.f32.mrb[1].mxu1 }
 0x18a   : > { %v2337_v43 = vpop.f32.mrb[17].mxu0  ;;  %v3620_v52 = vpop.f32.mrb[2].mxu1  ;;  %v3645_v41 = vadd.f32 %v3421_v45, %v859_v35  ;;  %v3665_v35 = vadd.s32 17, %v3601_v55  ;;  %v1278_v47 = vshrl.u32 %v3580_v46, 4  ;;  %v1522_v46 = vsel %vm3651_vm9, %v1488_v3, %v3576_v21 }
 0x18b   : > { %v862_v7 = vpop.f32.mrb[18].mxu0  ;;  %v2358_v26 = vpop.f32.mrb[3].mxu1  ;;  %v1689_v43 = vsel %vm1677_vm3, %v1649_v11, 0.0  ;;  %v3686_v12 = vmul.u32.u64.low 4042322161, %v3613_v57  ;;  %v3687_v11 = vmul.u32.u64.high 4042322161, %v3613_v57, %v3686_v12  ;;  %v3700_v21 = vsel %vm3656_vm10, 1.0, %v4682_v0  ;;  %vm3797_vm10 = vmand %vm1429_vm5, %vm1395_vm4 }
 0x18c   : > { %v2338_v33 = vpop.f32.mrb[19].mxu0  ;;  %v1688_v26 = vadd.f32 %v1687_v10, %v1686_v54  ;;  %v1651_v19 = vmul.f32 %v3444_v20, %v3645_v41  ;;  %v3692_v44 = vadd.f32 %v3421_v45, %v862_v7  ;;  %v1279_v3 = vmul.u32 17, %v1278_v47 }
 0x18d   : > { %v3703_v10 = vadd.s32 216, %v2944_v5  ;;  %v1691_v33 = vsel %vm1677_vm3, %v1650_v8, 0.0  ;;  %v1530_v14 = vsel %vm3678_vm12, %v3665_v35, %v3601_v55  ;;  %vm3721_vm14 = vcmp.lt.s32.totalorder %v1522_v46, 16 }
 0x18e   : > { %4794 = vst [vmem:[#allocation12_spill] sm:$0xff] %v3692_v44  ;;  %v1690_v54 = vadd.f32 %v1689_v43, %v1688_v26  ;;  %v3726_v43 = vsub.s32 %v3514_v50, %v1191_v38  ;;  %v3732_v8 = vadd.s32 232, %v2944_v5  ;;  %v1693_v28 = vsel %vm1677_vm3, %v1651_v19, 0.0 }
 0x18f   : > { %v1652_v26 = vmul.f32 %v3469_v27, %v3692_v44  ;;  %v3744_v46 = vsub.s32 %v3544_v39, %v1279_v3  ;;  %v1289_v39 = vshrl.u32 %v3687_v11, 4  ;;  %v3776_v11 = vadd.s32 240, %v2944_v5 }
 0x190   : > { %v1692_v50 = vadd.f32 %v1691_v33, %v1690_v54  ;;  %vm1388_vm1 = vcmp.ne.s32.totalorder %v3726_v43, 0  ;;  %vm1422_vm2 = vcmp.lt.s32.totalorder %v3726_v43, 0  ;;  %v1490_v33 = vadd.s32 17, %v3726_v43 }
 0x191   : > { %v867_v9 = vpop.f32.mrb[20].mxu0  ;;  %v1695_v3 = vsel %vm1677_vm3, %v1652_v26, 0.0  ;;  %vm1396_vm7 = vcmp.ne.s32.totalorder %v3744_v46, 0  ;;  %vm1430_vm8 = vcmp.lt.s32.totalorder %v3744_v46, 0  ;;  %vm3788_vm9 = vmand %vm1422_vm2, %vm1388_vm1  ;;  %v4812_v44 = vmov 0.0  }
 0x192   : > { %v3707_v7 = vadd.f32 %v3421_v45, %v867_v9  ;;  %v2341_v40 = vpop.f32.mrb[21].mxu0  ;;  %v3747_v12 = vmul.u32.u64.low 4042322161, %v3703_v10  ;;  %v3748_v9 = vmul.u32.u64.high 4042322161, %v3703_v10, %v3747_v12  ;;  %v1694_v48 = vadd.f32 %v1693_v28, %v1692_v50  ;;  %vm3814_vm12 = vmand %vm1430_vm8, %vm1396_vm7 }
 0x193   : > { %v870_v37 = vpop.f32.mrb[22].mxu0  ;;  %v1497_v50 = vadd.s32 17, %v3741_v4  ;;  %vm3834_vm15 = vcmp.lt.s32.totalorder %v1530_v14, 16  ;;  %v1524_v49 = vsel %vm3788_vm9, %v1490_v33, %v3726_v43 }
 0x194   : > { %4795 = vst [vmem:[#allocation13_spill] sm:$0xff] %v3707_v7  ;;  %v2342_v55 = vpop.f32.mrb[23].mxu0  ;;  %v3737_v35 = vpop.f32.mrb[4].mxu1  ;;  %v1653_v19 = vmul.f32 %v3482_v30, %v3707_v7  ;;  %v3753_v40 = vadd.f32 %v3421_v45, %v870_v37  ;;  %v1498_v30 = vadd.s32 17, %v3744_v46  ;;  %v1696_v27 = vadd.f32 %v1695_v3, %v1694_v48 }
 0x195   : > { %v2361_v38 = vpop.f32.mrb[5].mxu1  ;;  %v1531_v14 = vsel %vm3797_vm10, %v1497_v50, %v3741_v4  ;;  %v3864_v0 = vmul.u32.u64.low 4042322161, %v3776_v11  ;;  %v3865_v43 = vmul.u32.u64.high 4042322161, %v3776_v11, %v3864_v0 }
 0x196   : > { %4802 = vst [vmem:[#allocation14_spill] sm:$0xff] %v3753_v40  ;;  %v3755_v55 = vpop.f32.mrb[6].mxu1  ;;  %v1697_v26 = vsel %vm1677_vm3, %v1653_v19, 0.0  ;;  %v1654_v38 = vmul.f32 %v3487_v32, %v3753_v40 }
 0x197   : > { %v2362_v54 = vpop.f32.mrb[7].mxu1 }
 0x199   : > { %v875_v37 = vpop.f32.mrb[24].mxu0 }
 0x19a   : > { %v3782_v12 = vadd.f32 %v3421_v45, %v875_v37  ;;  %v2345_v54 = vpop.f32.mrb[25].mxu0  ;;  %v1290_v37 = vmul.u32 17, %v1289_v39  ;;  %v3819_v39 = vmul.u32.u64.low 4042322161, %v3732_v8  ;;  %v3820_v2 = vmul.u32.u64.high 4042322161, %v3732_v8, %v3819_v39 }
 0x19b   : > { %v878_v20 = vpop.f32.mrb[26].mxu0  ;;  %v3802_v54 = vmul.u32.u64.low 4042322161, %v3729_v25  ;;  %v3803_v32 = vmul.u32.u64.high 4042322161, %v3729_v25, %v3802_v54 }
 0x19c   : > { %4805 = vst [vmem:[#allocation15_spill] sm:$0xff] %v3782_v12  ;;  %v1655_v40 = vmul.f32 %v3593_v62, %v3782_v12  ;;  %v3808_v7 = vadd.f32 %v3421_v45, %v878_v20  ;;  %v2346_v48 = vpop.f32.mrb[27].mxu0  ;;  %v1698_v54 = vadd.f32 %v1697_v26, %v1696_v27  ;;  %v3825_v62 = vsel %vm3709_vm13, 1.0, %v4812_v44 }
 0x19d   : > { %v3830_v20 = vsel %vm3713_vm11, 1.0, %v4812_v44  ;;  %v1300_v48 = vshrl.u32 %v3748_v9, 4  ;;  %v1699_v12 = vsel %vm1677_vm3, %v1654_v38, 0.0  ;;  %v3841_v27 = vsel %vm3721_vm14, 1.0, %v4812_v44 }
 0x19e   : > { %4813 = vst [vmem:[#allocation16_spill] sm:$0xff] %v3830_v20  ;;  %4816 = vst [vmem:[#allocation17_spill] sm:$0xff] %v3841_v27  ;;  %v1532_v9 = vsel %vm3814_vm12, %v1498_v30, %v3744_v46  ;;  %v3856_v47 = vsub.s32 %v3613_v57, %v1290_v37  ;;  %v1701_v26 = vsel %vm1677_vm3, %v1655_v40, 0.0  ;;  %v1656_v16 = vmul.f32 %v3700_v21, %v3808_v7 }
 0x19f   : > { %v1700_v33 = vadd.f32 %v1699_v12, %v1698_v54  ;;  %vm3867_vm13 = vcmp.lt.s32.totalorder %v1523_v36, 16  ;;  %v1301_v30 = vmul.u32 17, %v1300_v48  ;;  %v3872_v57 = vadd.s32 248, %v2944_v5 }
 0x1a0   : > { %v3861_v42 = vpop.f32.mrb[8].mxu1  ;;  %vm3879_vm11 = vcmp.lt.s32.totalorder %v1524_v49, 16  ;;  %vm3883_vm14 = vcmp.lt.s32.totalorder %v1531_v14, 16  ;;  %vm3887_vm0 = vcmp.lt.s32.totalorder %v1532_v9, 16  ;;  %vm1397_vm1 = vcmp.ne.s32.totalorder %v3856_v47, 0 }
 0x1a1   : > { %v883_v4 = vpop.f32.mrb[28].mxu0  ;;  %v2365_v28 = vpop.f32.mrb[9].mxu1  ;;  %v1702_v3 = vadd.f32 %v1701_v26, %v1700_v33  ;;  %vm1431_vm2 = vcmp.lt.s32.totalorder %v3856_v47, 0  ;;  %v1311_v48 = vshrl.u32 %v3803_v32, 4  ;;  %v1703_v36 = vsel %vm1677_vm3, %v1656_v16, 0.0 }
 0x1a2   : > { %v3875_v46 = vadd.f32 %v3421_v45, %v883_v4  ;;  %v2349_v40 = vpop.f32.mrb[29].mxu0  ;;  %v3877_v38 = vpop.f32.mrb[10].mxu1  ;;  %v1322_v0 = vshrl.u32 %v3820_v2, 4  ;;  %v3902_v26 = vadd.s32 17, %v3856_v47  ;;  %v3905_v33 = vsub.s32 %v3703_v10, %v1301_v30  ;;  %vm3928_vm4 = vmand %vm1431_vm2, %vm1397_vm1 }
 0x1a3   : > { %v886_v39 = vpop.f32.mrb[30].mxu0  ;;  %v2366_v54 = vpop.f32.mrb[11].mxu1  ;;  %v3908_v4 = vmul.u32.u64.low 4042322161, %v3872_v57  ;;  %v3909_v32 = vmul.u32.u64.high 4042322161, %v3872_v57, %v3908_v4  ;;  %v3915_v28 = vsel %vm3834_vm15, 1.0, %v4812_v44  ;;  %v3922_v40 = vsel %vm3867_vm13, 1.0, %v4812_v44 }
 0x1a4   : > { %v1657_v49 = vmul.f32 %v3830_v20, %v3875_v46  ;;  %v3898_v14 = vadd.f32 %v3421_v45, %v886_v39  ;;  %v2350_v9 = vpop.f32.mrb[31].mxu0  ;;  %4825 = vst [vmem:[#allocation18_spill] sm:$0xff] %v3922_v40  ;;  %v1704_v30 = vadd.f32 %v1703_v36, %v1702_v3  ;;  %v3935_v6 = vsel %vm3879_vm11, 1.0, %v4812_v44 }
 0x1a5   : > { %v1312_v39 = vmul.u32 17, %v1311_v48  ;;  %v3938_v54 = vadd.s32 256, %v2944_v5  ;;  %v3943_v50 = vsel %vm3883_vm14, 1.0, %v4812_v44  ;;  %v1323_v3 = vmul.u32 17, %v1322_v0 }
 0x1a6   : > { %v1705_v16 = vsel %vm1677_vm3, %v1657_v49, 0.0  ;;  %v1658_v2 = vmul.f32 %v3841_v27, %v3898_v14  ;;  %v3948_v49 = vsel %vm3887_vm0, 1.0, %v4812_v44  ;;  %v1333_v36 = vshrl.u32 %v3865_v43, 4 }
 0x1a7   : > { %v1706_v19 = vadd.f32 %v1705_v16, %v1704_v30  ;;  %v1533_v48 = vsel %vm3928_vm4, %v3902_v26, %v3856_v47  ;;  %vm1398_vm5 = vcmp.ne.s32.totalorder %v3905_v33, 0  ;;  %v3957_v12 = vadd.s32 264, %v2944_v5 }
 0x1a8   : > { %v3961_v37 = vadd.f32 %v3421_v45, %v3606_v58  ;;  %v1707_v0 = vsel %vm1677_vm3, %v1658_v2, 0.0  ;;  %vm1432_vm6 = vcmp.lt.s32.totalorder %v3905_v33, 0  ;;  %v1500_v47 = vadd.s32 17, %v3905_v33 }
 0x1a9   : > { %v891_v9 = vpop.f32.mrb[32].mxu0  ;;  %v3970_v26 = vsub.s32 %v3729_v25, %v1312_v39  ;;  %v3973_v5 = vmul.u32.u64.low 4042322161, %v3938_v54  ;;  %v3974_v10 = vmul.u32.u64.high 4042322161, %v3938_v54, %v3973_v5  ;;  %v3978_v58 = vadd.f32 %v3421_v45, %v3620_v52  ;;  %vm3990_vm7 = vmand %vm1432_vm6, %vm1398_vm5 }
 0x1aa   : > { %v3965_v43 = vadd.f32 %v3421_v45, %v891_v9  ;;  %v2353_v4 = vpop.f32.mrb[33].mxu0  ;;  %v3986_v27 = vsub.s32 %v3732_v8, %v1323_v3  ;;  %v1708_v25 = vadd.f32 %v1707_v0, %v1706_v19  ;;  %v1344_v52 = vshrl.u32 %v3909_v32, 4 }
 0x1ab   : > { %v894_v16 = vpop.f32.mrb[34].mxu0  ;;  %v4003_v8 = vadd.f32 %v3421_v45, %v3737_v35  ;;  %vm1399_vm8 = vcmp.ne.s32.totalorder %v3970_v26, 0  ;;  %vm1433_vm9 = vcmp.lt.s32.totalorder %v3970_v26, 0  ;;  %v1334_v32 = vmul.u32 17, %v1333_v36 }
 0x1ac   : > { %v1659_v2 = vmul.f32 %v3922_v40, %v3965_v43  ;;  %v3983_v30 = vadd.f32 %v3421_v45, %v894_v16  ;;  %v2354_v9 = vpop.f32.mrb[35].mxu0  ;;  %v923_v4 = vpop.f32.mrb[12].mxu1  ;;  %v3996_v40 = vmul.u32.u64.low 4042322161, %v3957_v12  ;;  %v3997_v20 = vmul.u32.u64.high 4042322161, %v3957_v12, %v3996_v40  ;;  %vm4031_vm12 = vmand %vm1433_vm9, %vm1399_vm8 }
 0x1ad   : > { %v2369_v39 = vpop.f32.mrb[13].mxu1  ;;  %v1661_v16 = vmul.f32 %v3386_v24, %v3961_v37  ;;  %v1662_v40 = vmul.f32 %v3464_v17, %v3978_v58  ;;  %v4014_v35 = vadd.f32 %v3421_v45, %v3755_v55  ;;  %v1534_v24 = vsel %vm3990_vm7, %v1500_v47, %v3905_v33 }
 0x1ae   : > { %v1709_v3 = vsel %vm1677_vm3, %v1659_v2, 0.0  ;;  %v1660_v19 = vmul.f32 %v3935_v6, %v3983_v30  ;;  %v926_v0 = vpop.f32.mrb[14].mxu1  ;;  %vm1400_vm10 = vcmp.ne.s32.totalorder %v3986_v27, 0  ;;  %v1663_v17 = vmul.f32 %v3492_v1, %v4003_v8 }
 0x1af   : > { %v1710_v9 = vadd.f32 %v1709_v3, %v1708_v25  ;;  %v2370_v39 = vpop.f32.mrb[15].mxu1  ;;  %v1501_v3 = vadd.s32 17, %v3970_v26  ;;  %v1713_v36 = vsel %vm1677_vm3, %v1661_v16, 0.0  ;;  %v4027_v55 = vadd.f32 %v3421_v45, %v3861_v42 }
 0x1b0   : > { %v1711_v2 = vsel %vm1677_vm3, %v1660_v19, 0.0  ;;  %v1345_v39 = vmul.u32 17, %v1344_v52  ;;  %vm1434_vm15 = vcmp.lt.s32.totalorder %v3986_v27, 0  ;;  %vm4036_vm13 = vcmp.lt.s32.totalorder %v1533_v48, 16 }
 0x1b1   : > { %v1712_v25 = vadd.f32 %v1711_v2, %v1710_v9  ;;  %v4041_v52 = vsub.s32 %v3776_v11, %v1334_v32  ;;  %v1355_v16 = vshrl.u32 %v3974_v10, 4  ;;  %v1715_v42 = vsel %vm1677_vm3, %v1662_v40, 0.0  ;;  %vm4063_vm14 = vmand %vm1434_vm15, %vm1400_vm10 }
 0x1b2   : > { %v1664_v19 = vmul.f32 %v3500_v34, %v4014_v35  ;;  %v4049_v9 = vadd.f32 %v3421_v45, %v3877_v38  ;;  %v1502_v48 = vadd.s32 17, %v3986_v27  ;;  %vm4052_vm11 = vcmp.lt.s32.totalorder %v1534_v24, 16 }
 0x1b3   : > { %v1714_v33 = vadd.f32 %v1713_v36, %v1712_v25  ;;  %v1535_v11 = vsel %vm4031_vm12, %v1501_v3, %v3970_v26  ;;  %v1346_v10 = vsub.s32 %v3872_v57, %v1345_v39  ;;  %v1717_v32 = vsel %vm1677_vm3, %v1663_v17, 0.0 }
 0x1b4   : > { %v931_v2 = vpop.f32.mrb[16].mxu1  ;;  %v1665_v24 = vmul.f32 %v3825_v62, %v4027_v55  ;;  %v4072_v40 = vadd.f32 %v3421_v45, %v923_v4  ;;  %v1366_v26 = vshrl.u32 %v3997_v20, 4  ;;  %vm1401_vm0 = vcmp.ne.s32.totalorder %v4041_v52, 0 }
 0x1b5   : > { %v1716_v25 = vadd.f32 %v1715_v42, %v1714_v33  ;;  %v2373_v36 = vpop.f32.mrb[17].mxu1  ;;  %vm1435_vm1 = vcmp.lt.s32.totalorder %v4041_v52, 0  ;;  %v1356_v42 = vmul.u32 17, %v1355_v16  ;;  %v1719_v57 = vsel %vm1677_vm3, %v1664_v19, 0.0 }
 0x1b6   : > { %v934_v5 = vpop.f32.mrb[18].mxu1  ;;  %v1666_v17 = vmul.f32 %v3915_v28, %v4049_v9  ;;  %v4081_v39 = vadd.f32 %v3421_v45, %v926_v0  ;;  %v1536_v4 = vsel %vm4063_vm14, %v1502_v48, %v3986_v27  ;;  %vm1402_vm2 = vcmp.ne.s32.totalorder %v1346_v10, 0  ;;  %vm4093_vm5 = vmand %vm1435_vm1, %vm1401_vm0 }
 0x1b7   : > { %v1718_v3 = vadd.f32 %v1717_v32, %v1716_v25  ;;  %v2374_v33 = vpop.f32.mrb[19].mxu1  ;;  %v1503_v25 = vadd.s32 17, %v4041_v52  ;;  %vm1436_vm4 = vcmp.lt.s32.totalorder %v1346_v10, 0  ;;  %v1721_v36 = vsel %vm1677_vm3, %v1665_v24, 0.0 }
 0x1b8   : > { %v1667_v16 = vmul.f32 %v3943_v50, %v4072_v40  ;;  %v4091_v19 = vadd.f32 %v3421_v45, %v931_v2  ;;  %v1367_v32 = vmul.u32 17, %v1366_v26  ;;  %v4100_v27 = vsel %vm4036_vm13, 1.0, %v4812_v44  ;;  %vm4111_vm7 = vmand %vm1436_vm4, %vm1402_vm2 }
 0x1b9   : > { %v1720_v20 = vadd.f32 %v1719_v57, %v1718_v3  ;;  %v1504_v48 = vadd.s32 17, %v1346_v10  ;;  %v1357_v24 = vsub.s32 %v3938_v54, %v1356_v42  ;;  %v1723_v3 = vsel %vm1677_vm3, %v1666_v17, 0.0 }
 0x1ba   : > { %v1668_v2 = vmul.f32 %v3948_v49, %v4081_v39  ;;  %v4107_v33 = vadd.f32 %v3421_v45, %v934_v5  ;;  %vm1569_vm6 = vcmp.lt.s32.totalorder %v1535_v11, 16  ;;  %v4118_v54 = vsel %vm4052_vm11, 1.0, %v4812_v44 }
 0x1bb   : > { %v1722_v38 = vadd.f32 %v1721_v36, %v1720_v20  ;;  %4842 = vst [vmem:[#allocation19_spill] sm:$0xff] %v4118_v54  ;;  %vm4120_vm8 = vcmp.lt.s32.totalorder %v1536_v4, 16  ;;  %v1537_v11 = vsel %vm4093_vm5, %v1503_v25, %v4041_v52  ;;  %v1725_v5 = vsel %vm1677_vm3, %v1667_v16, 0.0 }
 0x1bc   : > { %v939_v57 = vpop.f32.mrb[20].mxu1  ;;  %v1669_v20 = vmul.f32 %v4100_v27, %v4091_v19  ;;  %v4135_v4 = vsel %vm1569_vm6, 1.0, %v4812_v44  ;;  %v1538_v0 = vsel %vm4111_vm7, %v1504_v48, %v1346_v10  ;;  %vm1403_vm9 = vcmp.ne.s32.totalorder %v1357_v24, 0 }
 0x1bd   : > { %v1724_v47 = vadd.f32 %v1723_v3, %v1722_v38  ;;  %v2377_v42 = vpop.f32.mrb[21].mxu1  ;;  %v4131_v36 = vadd.f32 %v3421_v45, %v939_v57  ;;  %v1368_v38 = vsub.s32 %v3957_v12, %v1367_v32  ;;  %4845 = vst [vmem:[#allocation20_spill] sm:$0xff] %v4135_v4  ;;  %v1727_v52 = vsel %vm1677_vm3, %v1668_v2, 0.0 }
 0x1be   : > { %v942_v1 = vpop.f32.mrb[22].mxu1  ;;  %v1670_v25 = vmul.f32 %v4118_v54, %v4107_v33  ;;  %vm1437_vm10 = vcmp.lt.s32.totalorder %v1357_v24, 0  ;;  %v4148_v12 = vsel %vm4120_vm8, 1.0, %v4812_v44  ;;  %vm1571_vm12 = vcmp.lt.s32.totalorder %v1537_v11, 16 }
 0x1bf   : > { %v1726_v3 = vadd.f32 %v1725_v5, %v1724_v47  ;;  %v2378_v42 = vpop.f32.mrb[23].mxu1  ;;  %v4143_v16 = vadd.f32 %v3421_v45, %v942_v1  ;;  %4846 = vst [vmem:[#allocation21_spill] sm:$0xff] %v4148_v12  ;;  %v1505_v32 = vadd.s32 17, %v1357_v24  ;;  %v1729_v10 = vsel %vm1677_vm3, %v1669_v20, 0.0  ;;  %vm4154_vm14 = vmand %vm1437_vm10, %vm1403_vm9 }
 0x1c0   : > { %v1671_v48 = vmul.f32 %v4135_v4, %v4131_v36  ;;  %vm1404_vm15 = vcmp.ne.s32.totalorder %v1368_v38, 0  ;;  %vm1438_vm13 = vcmp.lt.s32.totalorder %v1368_v38, 0  ;;  %vm1572_vm11 = vcmp.lt.s32.totalorder %v1538_v0, 16 }
 0x1c1   : > { %v1728_v57 = vadd.f32 %v1727_v52, %v1726_v3  ;;  %v1731_v47 = vsel %vm1677_vm3, %v1670_v25, 0.0  ;;  %v1672_v17 = vmul.f32 %v4148_v12, %v4143_v16  ;;  %v4162_v5 = vsel %vm1571_vm12, 1.0, %v4812_v44  ;;  %vm1472_vm0 = vmand %vm1438_vm13, %vm1404_vm15 }
 0x1c2   : > { %v1506_v20 = vadd.s32 17, %v1368_v38  ;;  %v1733_v0 = vsel %vm1677_vm3, %v1671_v48, 0.0  ;;  %v1539_v25 = vsel %vm4154_vm14, %v1505_v32, %v1357_v24  ;;  %vm2088_vm4 = vcmask 130049  }
 0x1c3   : > { %v1730_v2 = vadd.f32 %v1729_v10, %v1728_v57  ;;  %v4169_v57 = vsel %vm1572_vm11, 1.0, %v4812_v44  ;;  %vm1573_vm1 = vcmp.lt.s32.totalorder %v1539_v25, 16  ;;  %vm2091_vm5 = vcmask 122880  }
 0x1c4   : > { %v947_v11 = vpop.f32.mrb[24].mxu1  ;;  %4849 = vst [vmem:[#allocation22_spill] sm:$0xff] %v4169_v57  ;;  %v4183_v26 = vsel %vm1573_vm1, 1.0, %v4812_v44  ;;  %vm2093_vm6 = vcmask 130050   ;;  %vm2096_vm7 = vcmask 123904   ;;  %vm2098_vm8 = vcmask 130051  }
 0x1c5   : > { %v1732_v1 = vadd.f32 %v1731_v47, %v1730_v2  ;;  %v4165_v3 = vadd.f32 %v3421_v45, %v947_v11  ;;  %v2381_v42 = vpop.f32.mrb[25].mxu1  ;;  %v1735_v11 = vsel %vm1677_vm3, %v1672_v17, 0.0  ;;  %4850 = vst [vmem:[#allocation23_spill] sm:$0xff] %v4183_v26  ;;  %vm2101_vm9 = vcmask 124928  }
 0x1c6   : > { %v950_v52 = vpop.f32.mrb[26].mxu1  ;;  %v1540_v42 = vsel %vm1472_vm0, %v1506_v20, %v1368_v38  ;;  %vm2103_vm10 = vcmask 130052   ;;  %vm2106_vm12 = vcmask 125952   ;;  %vm2108_vm15 = vcmask 130053  }
 0x1c7   : > { %v1734_v10 = vadd.f32 %v1733_v0, %v1732_v1  ;;  %v1673_v12 = vmul.f32 %v4162_v5, %v4165_v3  ;;  %v4176_v2 = vadd.f32 %v3421_v45, %v950_v52  ;;  %v2382_v47 = vpop.f32.mrb[27].mxu1  ;;  %vm1574_vm2 = vcmp.lt.s32.totalorder %v1540_v42, 16 }
 0x1c8   : > { %v4190_v20 = vsel %vm1574_vm2, 1.0, %v4812_v44  ;;  %vm2111_vm13 = vcmask 126976   ;;  %vm2113_vm11 = vcmask 130054   ;;  %vm2116_vm14 = vcmask 128000  }
 0x1c9   : > { %v1736_v4 = vadd.f32 %v1735_v11, %v1734_v10  ;;  %v1737_v48 = vsel %vm1677_vm3, %v1673_v12, 0.0  ;;  %v1674_v54 = vmul.f32 %v4169_v57, %v4176_v2  ;;  %vm2118_vm0 = vcmask 130055  }
 0x1ca   : > { %vm2121_vm1 = vcmask 129024  }
 0x1cb   : > { %v1738_v24 = vadd.f32 %v1737_v48, %v1736_v4  ;;  %v1739_v1 = vsel %vm1677_vm3, %v1674_v54, 0.0 }
 0x1cc   : > { %v955_v32 = vpop.f32.mrb[28].mxu1 }
 0x1cd   : > { %v4187_v0 = vadd.f32 %v3421_v45, %v955_v32  ;;  %v2385_v17 = vpop.f32.mrb[29].mxu1  ;;  %v1740_v25 = vadd.f32 %v1739_v1, %v1738_v24 }
 0x1ce   : > { %v958_v38 = vpop.f32.mrb[30].mxu1 }
 0x1cf   : > { %v1675_v12 = vmul.f32 %v4183_v26, %v4187_v0  ;;  %v4195_v52 = vadd.f32 %v3421_v45, %v958_v38  ;;  %v2386_v4 = vpop.f32.mrb[31].mxu1 }
 0x1d1   : > { %v1676_v10 = vmul.f32 %v4190_v20, %v4195_v52  ;;  %v1741_v54 = vsel %vm1677_vm3, %v1675_v12, 0.0 }
 0x1d2   : > { %v1742_v47 = vadd.f32 %v1741_v54, %v1740_v25 }
 0x1d3   : > { %v1743_v11 = vsel %vm1677_vm3, %v1676_v10, 0.0 }
 0x1d4   : > { %v1744_v42 = vadd.f32 %v1743_v11, %v1742_v47 }
 0x1d6   : > { %1745 = vadd.xlane.f32.xlu1 %v1744_v42 }
 0x263   : > { %v1746_v44 = vpop.xlane.xlu1 %1745 }
 0x264   : > { %v1747_v48 = vrot.slane %v1746_v44, 4 }
 0x266   : > { %v1748_v32 = vadd.f32 %v1747_v48, %v1746_v44 }
 0x268   : > { %v1749_v17 = vrot.slane %v1748_v32, 2 }
 0x26a   : > { %v1750_v26 = vadd.f32 %v1749_v17, %v1748_v32  ;;  %v4852_v32 = vld [vmem:[#allocation12_spill] sm:$0xff]  ;;  %v4853_v17 = vld [vmem:[#allocation3_spill] sm:$0xff] }
 0x26c   : > { %v1751_v57 = vrot.slane %v1750_v26, 1 }
 0x26e   : > { %v1752_v45 = vadd.f32 %v1751_v57, %v1750_v26 }
 0x270   : > { %2472 = vpush %v1752_v45 }
 0x2a1   : > { %s2473_s14 = spop %2472 }
 0x2a2   : > { %s1754_s15 = smul.f32 0.00024414063, %s2473_s14 }
 0x2a4   : > { %v4201_v24 = vstv %s1754_s15 }
 0x2a5   : > { %v4205_v1 = vsub.f32 %v3456_v22, %v4201_v24  ;;  %v4209_v38 = vsub.f32 %v3431_v18, %v4201_v24  ;;  %v4213_v12 = vsub.f32 %v3459_v23, %v4201_v24  ;;  %v4217_v57 = vsub.f32 %v3521_v59, %v4201_v24 }
 0x2a6   : > { %v4225_v22 = vsub.f32 %v3533_v51, %v4201_v24  ;;  %v4231_v23 = vsub.f32 %v3561_v15, %v4201_v24 }
 0x2a7   : > { %v1790_v26 = vmul.f32 %v3114_v13, %v4205_v1  ;;  %v1791_v4 = vmul.f32 %v3159_v29, %v4209_v38  ;;  %v1792_v18 = vmul.f32 %v3197_v60, %v4213_v12  ;;  %v1793_v59 = vmul.f32 %v3202_v31, %v4217_v57 }
 0x2a8   : > { %v4237_v13 = vsub.f32 %v3584_v56, %v4201_v24  ;;  %v1794_v29 = vmul.f32 %v3207_v53, %v4225_v22  ;;  %v4243_v60 = vsub.f32 %v3618_v61, %v4201_v24  ;;  %v1795_v15 = vmul.f32 %v3213_v63, %v4231_v23  ;;  %v4851_v53 = vld [vmem:[#allocation2_spill] sm:$0xff] }
 0x2a9   : > { %v1824_v25 = vmul.f32 %v1790_v26, %v1790_v26  ;;  %v1825_v10 = vmul.f32 %v1791_v4, %v1791_v4  ;;  %v1826_v51 = vmul.f32 %v1792_v18, %v1792_v18  ;;  %v1827_v54 = vmul.f32 %v1793_v59, %v1793_v59 }
 0x2aa   : > { %v4251_v56 = vsub.f32 %v3645_v41, %v4201_v24  ;;  %v1796_v42 = vmul.f32 %v4851_v53, %v4237_v13  ;;  %v1828_v44 = vmul.f32 %v1794_v29, %v1794_v29  ;;  %v4258_v63 = vsub.f32 %v4852_v32, %v4201_v24  ;;  %v4854_v41 = vld [vmem:[#allocation13_spill] sm:$0xff]  ;;  %v4858_v32 = vld [vmem:[#allocation15_spill] sm:$0xff] }
 0x2ab   : > { %v1858_v31 = vsel %vm1677_vm3, %v1824_v25, 0.0  ;;  %v1859_v47 = vsel %vm1677_vm3, %v1825_v10, 0.0  ;;  %v1861_v61 = vsel %vm1677_vm3, %v1826_v51, 0.0  ;;  %v1797_v45 = vmul.f32 %v4853_v17, %v4243_v60  ;;  %v4855_v25 = vld [vmem:[#allocation5_spill] sm:$0xff] }
 0x2ac   : > { %v1860_v11 = vadd.f32 %v1859_v47, %v1858_v31  ;;  %v1829_v26 = vmul.f32 %v1795_v15, %v1795_v15  ;;  %v1863_v4 = vsel %vm1677_vm3, %v1827_v54, 0.0  ;;  %v4265_v59 = vsub.f32 %v4854_v41, %v4201_v24  ;;  %v4856_v47 = vld [vmem:[#allocation14_spill] sm:$0xff]  ;;  %v4857_v15 = vld [vmem:[#allocation7_spill] sm:$0xff] }
 0x2ad   : > { %v1798_v10 = vmul.f32 %v4855_v25, %v4251_v56  ;;  %v1830_v29 = vmul.f32 %v1796_v42, %v1796_v42  ;;  %v1865_v51 = vsel %vm1677_vm3, %v1828_v44, 0.0  ;;  %v1799_v53 = vmul.f32 %v4857_v15, %v4258_v63  ;;  %v4859_v42 = vld [vmem:[#allocation8_spill] sm:$0xff] }
 0x2ae   : > { %v1862_v48 = vadd.f32 %v1861_v61, %v1860_v11  ;;  %v4272_v11 = vsub.f32 %v4856_v47, %v4201_v24  ;;  %v1831_v54 = vmul.f32 %v1797_v45, %v1797_v45  ;;  %v1867_v61 = vsel %vm1677_vm3, %v1829_v26, 0.0  ;;  %v4860_v45 = vld [vmem:[#allocation9_spill] sm:$0xff] }
 0x2af   : > { %v4279_v17 = vsub.f32 %v4858_v32, %v4201_v24  ;;  %v1832_v44 = vmul.f32 %v1798_v10, %v1798_v10  ;;  %v4286_v25 = vsub.f32 %v3808_v7, %v4201_v24  ;;  %v1833_v26 = vmul.f32 %v1799_v53, %v1799_v53  ;;  %v4861_v10 = vld [vmem:[#allocation11_spill] sm:$0xff] }
 0x2b0   : > { %v1864_v18 = vadd.f32 %v1863_v4, %v1862_v48  ;;  %v1800_v4 = vmul.f32 %v4859_v42, %v4265_v59  ;;  %v4293_v15 = vsub.f32 %v3875_v46, %v4201_v24  ;;  %v4300_v7 = vsub.f32 %v3898_v14, %v4201_v24 }
 0x2b1   : > { %v1803_v53 = vmul.f32 %v3700_v21, %v4286_v25  ;;  %v1875_v42 = vsel %vm1677_vm3, %v1833_v26, 0.0  ;;  %v4307_v46 = vsub.f32 %v3965_v43, %v4201_v24  ;;  %v4314_v14 = vsub.f32 %v3983_v30, %v4201_v24  ;;  %v4863_v21 = vld [vmem:[#allocation17_spill] sm:$0xff] }
 0x2b2   : > { %v1866_v31 = vadd.f32 %v1865_v51, %v1864_v18  ;;  %v1869_v18 = vsel %vm1677_vm3, %v1830_v29, 0.0  ;;  %v1801_v51 = vmul.f32 %v4860_v45, %v4272_v11  ;;  %v1834_v29 = vmul.f32 %v1800_v4, %v1800_v4  ;;  %v4862_v4 = vld [vmem:[#allocation16_spill] sm:$0xff] }
 0x2b3   : > { %v1837_v26 = vmul.f32 %v1803_v53, %v1803_v53  ;;  %v4321_v43 = vsub.f32 %v3961_v37, %v4201_v24  ;;  %v4328_v30 = vsub.f32 %v3978_v58, %v4201_v24  ;;  %v1807_v53 = vmul.f32 %v3935_v6, %v4314_v14  ;;  %v4866_v6 = vld [vmem:[#allocation6_spill] sm:$0xff] }
 0x2b4   : > { %v1868_v48 = vadd.f32 %v1867_v61, %v1866_v31  ;;  %v1871_v31 = vsel %vm1677_vm3, %v1831_v54, 0.0  ;;  %v1802_v61 = vmul.f32 %v4861_v10, %v4279_v17  ;;  %v1835_v54 = vmul.f32 %v1801_v51, %v1801_v51 }
 0x2b5   : > { %v1877_v45 = vsel %vm1677_vm3, %v1834_v29, 0.0  ;;  %v1805_v51 = vmul.f32 %v4863_v21, %v4300_v7  ;;  %v4335_v37 = vsub.f32 %v4003_v8, %v4201_v24  ;;  %v4342_v58 = vsub.f32 %v4014_v35, %v4201_v24 }
 0x2b6   : > { %v1870_v41 = vadd.f32 %v1869_v18, %v1868_v48  ;;  %v1873_v48 = vsel %vm1677_vm3, %v1832_v44, 0.0  ;;  %v1836_v44 = vmul.f32 %v1802_v61, %v1802_v61  ;;  %v4864_v61 = vld [vmem:[#allocation18_spill] sm:$0xff]  ;;  %v4349_v8 = vsub.f32 %v4027_v55, %v4201_v24 }
 0x2b7   : > { %v4356_v35 = vsub.f32 %v4049_v9, %v4201_v24  ;;  %v4363_v55 = vsub.f32 %v4072_v40, %v4201_v24  ;;  %v4370_v9 = vsub.f32 %v4081_v39, %v4201_v24  ;;  %v4377_v40 = vsub.f32 %v4091_v19, %v4201_v24 }
 0x2b8   : > { %v1872_v47 = vadd.f32 %v1871_v31, %v1870_v41  ;;  %v1804_v41 = vmul.f32 %v4862_v4, %v4293_v15  ;;  %v4384_v39 = vsub.f32 %v4107_v33, %v4201_v24  ;;  %v4391_v19 = vsub.f32 %v4131_v36, %v4201_v24 }
 0x2b9   : > { %v4398_v33 = vsub.f32 %v4143_v16, %v4201_v24  ;;  %v4405_v36 = vsub.f32 %v4165_v3, %v4201_v24  ;;  %v4412_v16 = vsub.f32 %v4176_v2, %v4201_v24  ;;  %v4419_v3 = vsub.f32 %v4187_v0, %v4201_v24  ;;  %v4872_v0 = vld [vmem:[#allocation23_spill] sm:$0xff] }
 0x2ba   : > { %v1874_v32 = vadd.f32 %v1873_v48, %v1872_v47  ;;  %v1879_v47 = vsel %vm1677_vm3, %v1835_v54, 0.0  ;;  %v1806_v48 = vmul.f32 %v4864_v61, %v4307_v46  ;;  %v1838_v29 = vmul.f32 %v1804_v41, %v1804_v41  ;;  %v4865_v41 = vld [vmem:[#allocation4_spill] sm:$0xff]  ;;  %v4867_v61 = vld [vmem:[#allocation10_spill] sm:$0xff] }
 0x2bb   : > { %v1839_v54 = vmul.f32 %v1805_v51, %v1805_v51  ;;  %v1809_v51 = vmul.f32 %v4866_v6, %v4328_v30  ;;  %v4426_v2 = vsub.f32 %v4195_v52, %v4201_v24 }
 0x2bc   : > { %v1876_v18 = vadd.f32 %v1875_v42, %v1874_v32  ;;  %v1881_v32 = vsel %vm1677_vm3, %v1836_v44, 0.0  ;;  %v1840_v44 = vmul.f32 %v1806_v48, %v1806_v48  ;;  %v1810_v48 = vmul.f32 %v4867_v61, %v4335_v37 }
 0x2be   : > { %v1878_v31 = vadd.f32 %v1877_v45, %v1876_v18  ;;  %v1883_v18 = vsel %vm1677_vm3, %v1837_v26, 0.0  ;;  %v1808_v45 = vmul.f32 %v4865_v41, %v4321_v43  ;;  %v1841_v26 = vmul.f32 %v1807_v53, %v1807_v53 }
 0x2bf   : > { %v1811_v53 = vmul.f32 %v3500_v34, %v4342_v58  ;;  %v1812_v41 = vmul.f32 %v3825_v62, %v4349_v8  ;;  %v1813_v34 = vmul.f32 %v3915_v28, %v4356_v35  ;;  %v1814_v62 = vmul.f32 %v3943_v50, %v4363_v55 }
 0x2c0   : > { %v1880_v10 = vadd.f32 %v1879_v47, %v1878_v31  ;;  %v1885_v31 = vsel %vm1677_vm3, %v1838_v29, 0.0  ;;  %v1887_v47 = vsel %vm1677_vm3, %v1839_v54, 0.0  ;;  %v1842_v29 = vmul.f32 %v1808_v45, %v1808_v45 }
 0x2c1   : > { %v1843_v54 = vmul.f32 %v1809_v51, %v1809_v51  ;;  %v1844_v45 = vmul.f32 %v1810_v48, %v1810_v48  ;;  %v1815_v28 = vmul.f32 %v3948_v49, %v4370_v9  ;;  %v1847_v61 = vmul.f32 %v1813_v34, %v1813_v34  ;;  %v4868_v49 = vld [vmem:[#allocation19_spill] sm:$0xff] }
 0x2c2   : > { %v1882_v42 = vadd.f32 %v1881_v32, %v1880_v10  ;;  %v1889_v32 = vsel %vm1677_vm3, %v1840_v44, 0.0  ;;  %v1893_v44 = vsel %vm1677_vm3, %v1842_v29, 0.0  ;;  %v1816_v50 = vmul.f32 %v4100_v27, %v4377_v40  ;;  %v4869_v27 = vld [vmem:[#allocation20_spill] sm:$0xff] }
 0x2c3   : > { %v1895_v6 = vsel %vm1677_vm3, %v1843_v54, 0.0  ;;  %v1817_v54 = vmul.f32 %v4868_v49, %v4384_v39 }
 0x2c4   : > { %v1884_v4 = vadd.f32 %v1883_v18, %v1882_v42  ;;  %v1891_v18 = vsel %vm1677_vm3, %v1841_v26, 0.0  ;;  %v1846_v26 = vmul.f32 %v1812_v41, %v1812_v41 }
 0x2c6   : > { %v1886_v21 = vadd.f32 %v1885_v31, %v1884_v4 }
 0x2c8   : > { %v1888_v10 = vadd.f32 %v1887_v47, %v1886_v21  ;;  %v1845_v21 = vmul.f32 %v1811_v53, %v1811_v53  ;;  %v1897_v47 = vsel %vm1677_vm3, %v1844_v45, 0.0  ;;  %v1818_v45 = vmul.f32 %v4869_v27, %v4391_v19 }
 0x2ca   : > { %v1890_v42 = vadd.f32 %v1889_v32, %v1888_v10  ;;  %v1899_v48 = vsel %vm1677_vm3, %v1845_v21, 0.0  ;;  %v1848_v32 = vmul.f32 %v1814_v62, %v1814_v62  ;;  %v4870_v21 = vld [vmem:[#allocation21_spill] sm:$0xff] }
 0x2cc   : > { %v1892_v4 = vadd.f32 %v1891_v18, %v1890_v42  ;;  %v1901_v42 = vsel %vm1677_vm3, %v1846_v26, 0.0  ;;  %v1849_v18 = vmul.f32 %v1815_v28, %v1815_v28 }
 0x2ce   : > { %v1894_v31 = vadd.f32 %v1893_v44, %v1892_v4  ;;  %v1903_v4 = vsel %vm1677_vm3, %v1847_v61, 0.0  ;;  %v1850_v44 = vmul.f32 %v1816_v50, %v1816_v50  ;;  %v1907_v62 = vsel %vm1677_vm3, %v1849_v18, 0.0 }
 0x2cf   : > { %v1823_v18 = vmul.f32 %v4190_v20, %v4426_v2 }
 0x2d0   : > { %v1896_v51 = vadd.f32 %v1895_v6, %v1894_v31  ;;  %v1905_v31 = vsel %vm1677_vm3, %v1848_v32, 0.0  ;;  %v1819_v6 = vmul.f32 %v4870_v21, %v4398_v33  ;;  %v1909_v28 = vsel %vm1677_vm3, %v1850_v44, 0.0 }
 0x2d1   : > { %v1857_v44 = vmul.f32 %v1823_v18, %v1823_v18 }
 0x2d2   : > { %v1898_v10 = vadd.f32 %v1897_v47, %v1896_v51  ;;  %v1851_v51 = vmul.f32 %v1817_v54, %v1817_v54  ;;  %v1820_v47 = vmul.f32 %v4162_v5, %v4405_v36  ;;  %v1853_v50 = vmul.f32 %v1819_v6, %v1819_v6 }
 0x2d4   : > { %v1900_v29 = vadd.f32 %v1899_v48, %v1898_v10  ;;  %v1852_v10 = vmul.f32 %v1818_v45, %v1818_v45  ;;  %v4871_v48 = vld [vmem:[#allocation22_spill] sm:$0xff]  ;;  %v1911_v32 = vsel %vm1677_vm3, %v1851_v51, 0.0  ;;  %v1854_v49 = vmul.f32 %v1820_v47, %v1820_v47 }
 0x2d5   : > { %v1915_v52 = vsel %vm1677_vm3, %v1853_v50, 0.0  ;;  %v1923_v51 = vsel %vm1677_vm3, %v1857_v44, 0.0 }
 0x2d6   : > { %v1902_v53 = vadd.f32 %v1901_v42, %v1900_v29  ;;  %v1821_v29 = vmul.f32 %v4871_v48, %v4412_v16  ;;  %v1913_v5 = vsel %vm1677_vm3, %v1852_v10, 0.0  ;;  %v1917_v27 = vsel %vm1677_vm3, %v1854_v49, 0.0 }
 0x2d8   : > { %v1904_v41 = vadd.f32 %v1903_v4, %v1902_v53  ;;  %v1822_v53 = vmul.f32 %v4872_v0, %v4419_v3  ;;  %v1855_v4 = vmul.f32 %v1821_v29, %v1821_v29 }
 0x2da   : > { %v1906_v34 = vadd.f32 %v1905_v31, %v1904_v41  ;;  %v1856_v41 = vmul.f32 %v1822_v53, %v1822_v53  ;;  %v1919_v31 = vsel %vm1677_vm3, %v1855_v4, 0.0 }
 0x2dc   : > { %v1908_v26 = vadd.f32 %v1907_v62, %v1906_v34  ;;  %v1921_v21 = vsel %vm1677_vm3, %v1856_v41, 0.0 }
 0x2de   : > { %v1910_v61 = vadd.f32 %v1909_v28, %v1908_v26 }
 0x2e0   : > { %v1912_v42 = vadd.f32 %v1911_v32, %v1910_v61 }
 0x2e2   : > { %v1914_v54 = vadd.f32 %v1913_v5, %v1912_v42 }
 0x2e4   : > { %v1916_v24 = vadd.f32 %v1915_v52, %v1914_v54 }
 0x2e6   : > { %v1918_v45 = vadd.f32 %v1917_v27, %v1916_v24 }
 0x2e8   : > { %v1920_v34 = vadd.f32 %v1919_v31, %v1918_v45 }
 0x2ea   : > { %v1922_v6 = vadd.f32 %v1921_v21, %v1920_v34 }
 0x2ec   : > { %v1924_v62 = vadd.f32 %v1923_v51, %v1922_v6 }
 0x2ee   : > { %1925 = vadd.xlane.f32.xlu0 %v1924_v62 }
 0x37b   : > { %v1926_v20 = vpop.xlane.xlu0 %1925 }
 0x37c   : > { %v1927_v26 = vrot.slane %v1926_v20, 4 }
 0x37e   : > { %v1928_v47 = vadd.f32 %v1927_v26, %v1926_v20 }
 0x380   : > { %v1929_v10 = vrot.slane %v1928_v47, 2 }
 0x382   : > { %v1930_v28 = vadd.f32 %v1929_v10, %v1928_v47 }
 0x384   : > { %v1931_v61 = vrot.slane %v1930_v28, 1 }
 0x386   : > { %v1932_v48 = vadd.f32 %v1931_v61, %v1930_v28 }
 0x388   : > { %2474 = vpush %v1932_v48 }
 0x3b9   : > { %s2475_s16 = spop %2474 }
 0x3ba   : > { %s1934_s17 = smul.f32 0.00024414063, %s2475_s16 }
 0x3bc   : > { %s1935_s18 = sadd.f32 1e-05, %s1934_s17 }
 0x3be   : > { %v1936_v29 = vstv %s1935_s18 }
 0x3bf   : > { %2520 = vrsqrt.f32 %v1936_v29  ;;  %v2274_v29 = vld [vmem:[%s4680_s2 + $0x2] ss:$0 sm:$0xff] }
 0x3c9   : > { %v2521_v50 = vpop.eup %2520 }
 0x3ca   : > { %2476 = vpush %v2521_v50 }
 0x3fb   : > { %s2477_s19 = spop %2476 }
 0x3fc   : > { %v1939_v32 = vstv %s2477_s19 }
 0x3fd   : > { %v1940_v42 = vmul.f32 %v1939_v32, %v4205_v1  ;;  %v1941_v0 = vmul.f32 %v1939_v32, %v4209_v38  ;;  %v1942_v53 = vmul.f32 %v1939_v32, %v4213_v12  ;;  %v1943_v49 = vmul.f32 %v1939_v32, %v4217_v57 }
 0x3fe   : > { %v1944_v5 = vmul.f32 %v1939_v32, %v4225_v22  ;;  %v1945_v54 = vmul.f32 %v1939_v32, %v4231_v23  ;;  %v1946_v18 = vmul.f32 %v1939_v32, %v4237_v13  ;;  %v1947_v4 = vmul.f32 %v1939_v32, %v4243_v60 }
 0x3ff   : > { %v1948_v52 = vmul.f32 %v1939_v32, %v4251_v56  ;;  %v1949_v24 = vmul.f32 %v1939_v32, %v4258_v63  ;;  %v1950_v1 = vmul.f32 %v1939_v32, %v4265_v59  ;;  %v1951_v38 = vmul.f32 %v1939_v32, %v4272_v11 }
 0x400   : > { %v1952_v12 = vmul.f32 %v1939_v32, %v4279_v17  ;;  %v1953_v57 = vmul.f32 %v1939_v32, %v4286_v25  ;;  %v1954_v22 = vmul.f32 %v1939_v32, %v4293_v15  ;;  %v1955_v23 = vmul.f32 %v1939_v32, %v4300_v7  ;;  %v2273_v15 = vld [vmem:[%s4680_s2 + $0x1] ss:$0 sm:$0xff] }
 0x401   : > { %v1956_v13 = vmul.f32 %v1939_v32, %v4307_v46  ;;  %v1957_v60 = vmul.f32 %v1939_v32, %v4314_v14  ;;  %v1958_v56 = vmul.f32 %v1939_v32, %v4321_v43  ;;  %v1959_v63 = vmul.f32 %v1939_v32, %v4328_v30 }
 0x402   : > { %v1960_v59 = vmul.f32 %v1939_v32, %v4335_v37  ;;  %v1961_v11 = vmul.f32 %v1939_v32, %v4342_v58  ;;  %v1962_v17 = vmul.f32 %v1939_v32, %v4349_v8  ;;  %v1963_v25 = vmul.f32 %v1939_v32, %v4356_v35 }
 0x403   : > { %v1964_v7 = vmul.f32 %v1939_v32, %v4363_v55  ;;  %v1965_v46 = vmul.f32 %v1939_v32, %v4370_v9  ;;  %v1966_v14 = vmul.f32 %v1939_v32, %v4377_v40  ;;  %v1967_v43 = vmul.f32 %v1939_v32, %v4384_v39 }
 0x404   : > { %v1968_v30 = vmul.f32 %v1939_v32, %v4391_v19  ;;  %v1969_v37 = vmul.f32 %v1939_v32, %v4398_v33  ;;  %v1970_v58 = vmul.f32 %v1939_v32, %v4405_v36  ;;  %v1971_v8 = vmul.f32 %v1939_v32, %v4412_v16 }
 0x405   : > { %v1972_v35 = vmul.f32 %v1939_v32, %v4419_v3  ;;  %v1973_v41 = vmul.f32 %v1939_v32, %v4426_v2  ;;  %v1979_v27 = vmul.f32 %v2273_v15, %v1940_v42  ;;  %v1980_v55 = vmul.f32 %v2273_v15, %v1941_v0 }
 0x406   : > { %v1981_v45 = vmul.f32 %v2273_v15, %v1942_v53  ;;  %v1982_v9 = vmul.f32 %v2273_v15, %v1943_v49  ;;  %v1983_v44 = vmul.f32 %v2273_v15, %v1944_v5  ;;  %v1984_v40 = vmul.f32 %v2273_v15, %v1945_v54 }
 0x407   : > { %v1985_v31 = vmul.f32 %v2273_v15, %v1946_v18  ;;  %v1986_v39 = vmul.f32 %v2273_v15, %v1947_v4  ;;  %v1987_v34 = vmul.f32 %v2273_v15, %v1948_v52  ;;  %v1988_v19 = vmul.f32 %v2273_v15, %v1949_v24 }
 0x408   : > { %v1989_v21 = vmul.f32 %v2273_v15, %v1950_v1  ;;  %v1990_v33 = vmul.f32 %v2273_v15, %v1951_v38  ;;  %v1991_v6 = vmul.f32 %v2273_v15, %v1952_v12  ;;  %v1992_v36 = vmul.f32 %v2273_v15, %v1953_v57 }
 0x409   : > { %v1993_v51 = vmul.f32 %v2273_v15, %v1954_v22  ;;  %v1994_v16 = vmul.f32 %v2273_v15, %v1955_v23  ;;  %v1995_v62 = vmul.f32 %v2273_v15, %v1956_v13  ;;  %v1996_v3 = vmul.f32 %v2273_v15, %v1957_v60 }
 0x40a   : > { %v1997_v20 = vmul.f32 %v2273_v15, %v1958_v56  ;;  %v1998_v2 = vmul.f32 %v2273_v15, %v1959_v63  ;;  %v1999_v26 = vmul.f32 %v2273_v15, %v1960_v59  ;;  %v2000_v47 = vmul.f32 %v2273_v15, %v1961_v11 }
 0x40b   : > { %v2001_v10 = vmul.f32 %v2273_v15, %v1962_v17  ;;  %v2002_v28 = vmul.f32 %v2273_v15, %v1963_v25  ;;  %v2003_v61 = vmul.f32 %v2273_v15, %v1964_v7  ;;  %v2004_v48 = vmul.f32 %v2273_v15, %v1965_v46 }
 0x40c   : > { %v2005_v50 = vmul.f32 %v2273_v15, %v1966_v14  ;;  %v2006_v32 = vmul.f32 %v2273_v15, %v1967_v43  ;;  %v2007_v42 = vmul.f32 %v2273_v15, %v1968_v30  ;;  %v2008_v0 = vmul.f32 %v2273_v15, %v1969_v37 }
 0x40d   : > { %v2009_v53 = vmul.f32 %v2273_v15, %v1970_v58  ;;  %v2010_v49 = vmul.f32 %v2273_v15, %v1971_v8  ;;  %v2011_v5 = vmul.f32 %v2273_v15, %v1972_v35  ;;  %v2012_v54 = vmul.f32 %v2273_v15, %v1973_v41 }
 0x40e   : > { %v2018_v18 = vadd.f32 %v2274_v29, %v1979_v27  ;;  %v2019_v4 = vadd.f32 %v2274_v29, %v1980_v55  ;;  %v4481_v52 = vadd.f32 %v2274_v29, %v1981_v45  ;;  %v4483_v24 = vadd.f32 %v2274_v29, %v1982_v9 }
 0x40f   : > { %v4485_v1 = vadd.f32 %v2274_v29, %v1983_v44  ;;  %v4487_v38 = vadd.f32 %v2274_v29, %v1984_v40  ;;  %v4489_v12 = vadd.f32 %v2274_v29, %v1985_v31  ;;  %v4491_v57 = vadd.f32 %v2274_v29, %v1986_v39 }
 0x410   : > { %v4493_v22 = vadd.f32 %v2274_v29, %v1987_v34  ;;  %v4495_v23 = vadd.f32 %v2274_v29, %v1988_v19  ;;  %v4497_v13 = vadd.f32 %v2274_v29, %v1989_v21  ;;  %v4499_v60 = vadd.f32 %v2274_v29, %v1990_v33 }
 0x411   : > { %v4501_v56 = vadd.f32 %v2274_v29, %v1991_v6  ;;  %v4503_v63 = vadd.f32 %v2274_v29, %v1992_v36  ;;  %v4505_v59 = vadd.f32 %v2274_v29, %v1993_v51  ;;  %v4507_v11 = vadd.f32 %v2274_v29, %v1994_v16 }
 0x412   : > { %v4510_v17 = vadd.f32 %v2274_v29, %v1995_v62  ;;  %v4512_v25 = vadd.f32 %v2274_v29, %v1996_v3  ;;  %v4514_v15 = vadd.f32 %v2274_v29, %v1997_v20  ;;  %v4516_v7 = vadd.f32 %v2274_v29, %v1998_v2 }
 0x413   : > { %v4518_v46 = vadd.f32 %v2274_v29, %v1999_v26  ;;  %v4520_v14 = vadd.f32 %v2274_v29, %v2000_v47  ;;  %v4522_v43 = vadd.f32 %v2274_v29, %v2001_v10  ;;  %v4524_v30 = vadd.f32 %v2274_v29, %v2002_v28 }
 0x414   : > { %v4526_v37 = vadd.f32 %v2274_v29, %v2003_v61  ;;  %v4528_v58 = vadd.f32 %v2274_v29, %v2004_v48  ;;  %v4530_v8 = vadd.f32 %v2274_v29, %v2005_v50  ;;  %v4532_v35 = vadd.f32 %v2274_v29, %v2006_v32 }
 0x415   : > { %v4539_v41 = vadd.f32 %v2274_v29, %v2007_v42  ;;  %v4541_v27 = vadd.f32 %v2274_v29, %v2008_v0  ;;  %v4543_v55 = vadd.f32 %v2274_v29, %v2009_v53  ;;  %v4545_v45 = vadd.f32 %v2274_v29, %v2010_v49 }
 0x416   : > { %v4547_v9 = vadd.f32 %v2274_v29, %v2011_v5  ;;  %v4549_v44 = vadd.f32 %v2274_v29, %v2012_v54  ;;  %v2052_v40 = vmax.f32 %v2018_v18, 0.0  ;;  %v2053_v31 = vmax.f32 %v2019_v4, 0.0 }
 0x417   : > { %v2054_v39 = vmax.f32 %v4481_v52, 0.0  ;;  %v2055_v34 = vmax.f32 %v4483_v24, 0.0  ;;  %v2056_v19 = vmax.f32 %v4485_v1, 0.0  ;;  %v2057_v21 = vmax.f32 %v4487_v38, 0.0 }
 0x418   : > { %v2058_v33 = vmax.f32 %v4489_v12, 0.0  ;;  %v2059_v6 = vmax.f32 %v4491_v57, 0.0  ;;  %v2060_v36 = vmax.f32 %v4493_v22, 0.0  ;;  %v2061_v51 = vmax.f32 %v4495_v23, 0.0  ;;  %2086 = vst.msk [vmem:[%s4537_s26] sm:$0xff] %vm1677_vm3, %v2052_v40  ;;  %2087 = vst.msk [vmem:[%s4537_s26 + $0x8] sm:$0xff] %vm1677_vm3, %v2053_v31 }
 0x419   : > { %v2062_v16 = vmax.f32 %v4497_v13, 0.0  ;;  %v2063_v62 = vmax.f32 %v4499_v60, 0.0  ;;  %v2064_v3 = vmax.f32 %v4501_v56, 0.0  ;;  %v2065_v20 = vmax.f32 %v4503_v63, 0.0  ;;  %2089 = vst.msk [vmem:[%s4537_s26 + $0xf] sm:$0xfe] %vm2088_vm4, %v2054_v39 }
 0x41a   : > { %2090 = vst.msk [vmem:[%s4537_s26 + $0x17] sm:$0xff] %vm1677_vm3, %v2055_v34  ;;  %2095 = vst.msk [vmem:[%s4537_s26 + $0x26] sm:$0xff] %vm1677_vm3, %v2057_v21  ;;  %v2066_v2 = vmax.f32 %v4505_v59, 0.0  ;;  %v2067_v26 = vmax.f32 %v4507_v11, 0.0  ;;  %v2068_v47 = vmax.f32 %v4510_v17, 0.0  ;;  %v2069_v10 = vmax.f32 %v4512_v25, 0.0 }
 0x41b   : > { %2092 = vst.msk [vmem:[%s4537_s26 + $0x1f] sm:$0x1] %vm2091_vm5, %v2056_v19  ;;  %v2070_v28 = vmax.f32 %v4514_v15, 0.0  ;;  %v2071_v61 = vmax.f32 %v4516_v7, 0.0  ;;  %v2072_v48 = vmax.f32 %v4518_v46, 0.0  ;;  %v2073_v29 = vmax.f32 %v4520_v14, 0.0 }
 0x41c   : > { %2094 = vst.msk [vmem:[%s4537_s26 + $0x1e] sm:$0xfc] %vm2093_vm6, %v2056_v19  ;;  %v2074_v50 = vmax.f32 %v4522_v43, 0.0  ;;  %v2075_v32 = vmax.f32 %v4524_v30, 0.0  ;;  %v2076_v42 = vmax.f32 %v4526_v37, 0.0  ;;  %v2077_v0 = vmax.f32 %v4528_v58, 0.0 }
 0x41d   : > { %2097 = vst.msk [vmem:[%s4537_s26 + $0x2e] sm:$0x3] %vm2096_vm7, %v2058_v33  ;;  %v2078_v53 = vmax.f32 %v4530_v8, 0.0  ;;  %v2079_v49 = vmax.f32 %v4532_v35, 0.0  ;;  %v2080_v5 = vmax.f32 %v4539_v41, 0.0  ;;  %v2081_v54 = vmax.f32 %v4541_v27, 0.0 }
 0x41e   : > { %2099 = vst.msk [vmem:[%s4537_s26 + $0x2d] sm:$0xf8] %vm2098_vm8, %v2058_v33  ;;  %v2082_v18 = vmax.f32 %v4543_v55, 0.0  ;;  %v2083_v4 = vmax.f32 %v4545_v45, 0.0  ;;  %v2084_v52 = vmax.f32 %v4547_v9, 0.0  ;;  %v2085_v24 = vmax.f32 %v4549_v44, 0.0 }
 0x41f   : > { %2100 = vst.msk [vmem:[%s4537_s26 + $0x35] sm:$0xff] %vm1677_vm3, %v2059_v6  ;;  %2105 = vst.msk [vmem:[%s4537_s26 + $0x44] sm:$0xff] %vm1677_vm3, %v2061_v51 }
 0x420   : > { %2102 = vst.msk [vmem:[%s4537_s26 + $0x3d] sm:$0x7] %vm2101_vm9, %v2060_v36  ;;  %2133 = vst.msk [vmem:[%s4537_s26 + $0xbd] sm:$0x7] %vm2101_vm9, %v2077_v0 }
 0x421   : > { %2104 = vst.msk [vmem:[%s4537_s26 + $0x3c] sm:$0xf0] %vm2103_vm10, %v2060_v36  ;;  %2134 = vst.msk [vmem:[%s4537_s26 + $0xbc] sm:$0xf0] %vm2103_vm10, %v2077_v0 }
 0x422   : > { %2107 = vst.msk [vmem:[%s4537_s26 + $0x4c] sm:$0xf] %vm2106_vm12, %v2062_v16  ;;  %2136 = vst.msk [vmem:[%s4537_s26 + $0xcc] sm:$0xf] %vm2106_vm12, %v2079_v49 }
 0x423   : > { %2109 = vst.msk [vmem:[%s4537_s26 + $0x4b] sm:$0xe0] %vm2108_vm15, %v2062_v16  ;;  %2137 = vst.msk [vmem:[%s4537_s26 + $0xcb] sm:$0xe0] %vm2108_vm15, %v2079_v49 }
 0x424   : > { %2110 = vst.msk [vmem:[%s4537_s26 + $0x53] sm:$0xff] %vm1677_vm3, %v2063_v62  ;;  %2115 = vst.msk [vmem:[%s4537_s26 + $0x62] sm:$0xff] %vm1677_vm3, %v2065_v20 }
 0x425   : > { %2112 = vst.msk [vmem:[%s4537_s26 + $0x5b] sm:$0x1f] %vm2111_vm13, %v2064_v3  ;;  %2139 = vst.msk [vmem:[%s4537_s26 + $0xdb] sm:$0x1f] %vm2111_vm13, %v2081_v54 }
 0x426   : > { %2114 = vst.msk [vmem:[%s4537_s26 + $0x5a] sm:$0xc0] %vm2113_vm11, %v2064_v3  ;;  %2140 = vst.msk [vmem:[%s4537_s26 + $0xda] sm:$0xc0] %vm2113_vm11, %v2081_v54 }
 0x427   : > { %2117 = vst.msk [vmem:[%s4537_s26 + $0x6a] sm:$0x3f] %vm2116_vm14, %v2066_v2  ;;  %2142 = vst.msk [vmem:[%s4537_s26 + $0xea] sm:$0x3f] %vm2116_vm14, %v2083_v4 }
 0x428   : > { %2119 = vst.msk [vmem:[%s4537_s26 + $0x69] sm:$0x80] %vm2118_vm0, %v2066_v2  ;;  %2143 = vst.msk [vmem:[%s4537_s26 + $0xe9] sm:$0x80] %vm2118_vm0, %v2083_v4 }
 0x429   : > { %2120 = vst.msk [vmem:[%s4537_s26 + $0x71] sm:$0xff] %vm1677_vm3, %v2067_v26  ;;  %2123 = vst.msk [vmem:[%s4537_s26 + $0x80] sm:$0xff] %vm1677_vm3, %v2069_v10 }
 0x42a   : > { %2122 = vst.msk [vmem:[%s4537_s26 + $0x79] sm:$0x7f] %vm2121_vm1, %v2068_v47  ;;  %2145 = vst.msk [vmem:[%s4537_s26 + $0xf9] sm:$0x7f] %vm2121_vm1, %v2085_v24 }
 0x42b   : > { %2124 = vst.msk [vmem:[%s4537_s26 + $0x88] sm:$0xff] %vm1677_vm3, %v2070_v28  ;;  %2126 = vst.msk [vmem:[%s4537_s26 + $0x97] sm:$0xff] %vm1677_vm3, %v2072_v48 }
 0x42c   : > { %2125 = vst.msk [vmem:[%s4537_s26 + $0x8f] sm:$0xfe] %vm2088_vm4, %v2071_v61 }
 0x42d   : > { %2127 = vst.msk [vmem:[%s4537_s26 + $0x9f] sm:$0x1] %vm2091_vm5, %v2073_v29 }
 0x42e   : > { %2128 = vst.msk [vmem:[%s4537_s26 + $0x9e] sm:$0xfc] %vm2093_vm6, %v2073_v29 }
 0x42f   : > { %2129 = vst.msk [vmem:[%s4537_s26 + $0xa6] sm:$0xff] %vm1677_vm3, %v2074_v50  ;;  %2132 = vst.msk [vmem:[%s4537_s26 + $0xb5] sm:$0xff] %vm1677_vm3, %v2076_v42 }
 0x430   : > { %2130 = vst.msk [vmem:[%s4537_s26 + $0xae] sm:$0x3] %vm2096_vm7, %v2075_v32 }
 0x431   : > { %2131 = vst.msk [vmem:[%s4537_s26 + $0xad] sm:$0xf8] %vm2098_vm8, %v2075_v32 }
 0x432   : > { %2135 = vst.msk [vmem:[%s4537_s26 + $0xc4] sm:$0xff] %vm1677_vm3, %v2078_v53  ;;  %2138 = vst.msk [vmem:[%s4537_s26 + $0xd3] sm:$0xff] %vm1677_vm3, %v2080_v5 }
 0x433   : > { %2141 = vst.msk [vmem:[%s4537_s26 + $0xe2] sm:$0xff] %vm1677_vm3, %v2082_v18  ;;  %2144 = vst.msk [vmem:[%s4537_s26 + $0xf1] sm:$0xff] %vm1677_vm3, %v2084_v52 }
 0x434 PF: > { %s13_s12 = sadd.s32 1, %s2528_s12  }
 0x435   : > { %p10_p4 = scmp.ge.s32.totalorder %s13_s12, 4  }
 0x437   :  { %12 = sbr.rel (!%p10_p4) target bundleno = 1 (0x1), region = 62 }

// kernel: _lambda_.5
= control target key start
LH: loop header
LB: loop body
LE: loop exit
PB: predicated region body
PF: predicated region fallthrough
CT: control target
= control target key end

     0   :  { %s1190_s12 = smov 0   ;;  %s1678_s0 = inlined_call_operand.vmem [shape: bf16[2,88,64], index: 0, kind: input, shape index: {}]   ;;  %s1679_s1 = inlined_call_operand.vmem [shape: bf16[256,32], index: 1, kind: input, shape index: {}]   ;;  %s1680_s2 = inlined_call_operand.vmem [shape: f32[3,32], index: 2, kind: input, shape index: {}]   ;;  %s1681_s3 = inlined_call_operand.vmem [shape: f32[2,64,32], index: 3, kind: output, shape index: {}]  }
   0x1 LB: > { %s982_s13 = sadd.s32 4294967295, %s1166_s12   ;;  %p986_p0 = scmp.ge.s32.totalorder %s1166_s12, 1  ;;  %s1166_s12 = sphi %s1190_s12, %s13_s12  }
   0x2   : > { %p137_p1 = scmp.lt.s32.totalorder %s1166_s12, 3 }
   0x4   : > { %p138_p2 = pnand %p986_p0, %p137_p1 }
   0x5   : > { %p161_p3 = scmp.lt.s32.totalorder (!%p138_p2), %s982_s13, 1  ;;  %v1141_v0 = vld [vmem:[%s1679_s1 + $0x40] sm:$0xff] (!%p138_p2)   ;;  %v1143_v2 = vld [vmem:[%s1679_s1 + $0x48] sm:$0xff] (!%p138_p2)   ;;  %v1145_v4 = vld [vmem:[%s1679_s1 + $0x50] sm:$0xff] (!%p138_p2)   ;;  %vm312_vm0 = vcmask (!%p138_p2), 1046528   ;;  %s1168_s9 = smov (!%p138_p2), 64  }
   0x6   : > { %141 = sbr.rel (%p138_p2) target bundleno = 915 (0x393), region = 32  ;;  %1033 = vmatprep.subr.bf16.mxu0 (!%p138_p2), %v1141_v0  ;;  %v1142_v1 = vld [vmem:[%s1679_s1] sm:$0xff] (!%p138_p2)   ;;  %1079 = vmatprep.subr.bf16.mxu1 (!%p138_p2), %v1141_v0  ;;  %v1144_v3 = vld [vmem:[%s1679_s1 + $0x8] sm:$0xff] (!%p138_p2)   ;;  %vm211_vm1 = vsmask.f32 (!%p138_p2), 7424  ;;  %v1146_v5 = vld [vmem:[%s1679_s1 + $0x10] sm:$0xff] (!%p138_p2)  }
   0x7   : > { %1034 = vmatpush3.bf16.msra.mxu0 (!%p138_p2), %v1142_v1  ;;  %1087 = vmatpush3.bf16.msra.mxu1 (!%p138_p2), %v1142_v1  ;;  %v1147_v29 = vld [vmem:[%s1679_s1 + $0x58] sm:$0xff] (!%p138_p2)   ;;  %v1149_v41 = vld [vmem:[%s1679_s1 + $0x60] sm:$0xff] (!%p138_p2)   ;;  %v1151_v56 = vld [vmem:[%s1679_s1 + $0x68] sm:$0xff] (!%p138_p2)   ;;  %vm332_vm2 = vcmask (!%p138_p2), 523264  }
   0x8   : > { %1035 = vmatprep.subr.bf16.mxu0 (!%p138_p2), %v1143_v2  ;;  %1080 = vmatprep.subr.bf16.mxu1 (!%p138_p2), %v1143_v2  ;;  %v1148_v35 = vld [vmem:[%s1679_s1 + $0x18] sm:$0xff] (!%p138_p2)   ;;  %v1150_v55 = vld [vmem:[%s1679_s1 + $0x20] sm:$0xff] (!%p138_p2)   ;;  %v1152_v61 = vld [vmem:[%s1679_s1 + $0x28] sm:$0xff] (!%p138_p2)  }
   0x9   : > { %v1153_v63 = vld [vmem:[%s1679_s1 + $0x70] sm:$0xff] (!%p138_p2)  }
   0xb   : > { %1036 = vmatpush3.bf16.msra.mxu0 (!%p138_p2), %v1144_v3  ;;  %1088 = vmatpush3.bf16.msra.mxu1 (!%p138_p2), %v1144_v3 }
   0xc   : > { %1037 = vmatprep.subr.bf16.mxu0 (!%p138_p2), %v1145_v4  ;;  %1081 = vmatprep.subr.bf16.mxu1 (!%p138_p2), %v1145_v4 }
   0xd   : > { %s1709_s13 = smov (!%p161_p3, %s982_s13), 1 }
   0xe   : > { %s1095_s20 = smul.u32 44, %s1709_s13  ;;  %s1032_s11 = sshll.u32 %s1709_s13, 6 }
   0xf   : > { %1038 = vmatpush3.bf16.msra.mxu0 %v1146_v5  ;;  %1089 = vmatpush3.bf16.msra.mxu1 %v1146_v5  ;;  %s1643_s16 = scalar_lea.vmem %s1681_s3, %s1032_s11 }
  0x10   : > { %s1219_s27 = scalar_lea.vmem %s1678_s0, %s1095_s20  ;;  %1039 = vmatprep.subr.bf16.mxu0 %v1147_v29  ;;  %1082 = vmatprep.subr.bf16.mxu1 %v1147_v29  ;;  %v1156_v29 = vld [vmem:[%s1679_s1 + $0x38] sm:$0xff]  }
  0x11   : > { %v174_v6 = vld [vmem:[%s1219_s27 + $0x8] sm:$0xf]  ;;  %v175_v7 = vld [vmem:[%s1219_s27 + $0xc] sm:$0xf]  ;;  %v176_v8 = vld [vmem:[%s1219_s27 + $0x10] sm:$0xf] }
  0x12   : > { %v184_v9 = vld [vmem:[%s1219_s27 + $0x4] sm:$0xe]  ;;  %v1228_v10 = vcombine.low %v175_v7, %v176_v8  ;;  %v172_v11 = vld [vmem:[%s1219_s27] sm:$0xf]  ;;  %v1232_v13 = vcombine.low %v174_v6, %v175_v7  ;;  %v177_v17 = vld [vmem:[%s1219_s27 + $0x14] sm:$0xf] }
  0x13   : > { %v173_v12 = vld [vmem:[%s1219_s27 + $0x4] sm:$0xf]  ;;  %v1001_v14 = vcombine.low %v184_v9, %v174_v6  ;;  %v178_v18 = vld [vmem:[%s1219_s27 + $0x18] sm:$0xf]  ;;  %v179_v19 = vld [vmem:[%s1219_s27 + $0x1c] sm:$0xf]  ;;  %v1252_v28 = vcombine.low %v176_v8, %v177_v17  ;;  %1040 = vmatpush3.bf16.msra.mxu0 %v1148_v35  ;;  %1090 = vmatpush3.bf16.msra.mxu1 %v1148_v35 }
  0x14   : > { %v1234_v15 = vcombine.low %v172_v11, %v173_v12  ;;  %v1236_v16 = vcombine.low %v173_v12, %v174_v6  ;;  %v314_v20 = vrot.slane %v1228_v10, 1  ;;  %v220_v21 = vshll.u32 %v1232_v13, 16  ;;  %v1248_v24 = vld [vmem:[%s1219_s27 + $0x20] sm:$0xf]  ;;  %v1263_v34 = vld [vmem:[%s1219_s27 + $0x24] sm:$0x1f]   ;;  %1041 = vmatprep.subr.bf16.mxu0 %v1149_v41  ;;  %1083 = vmatprep.subr.bf16.mxu1 %v1149_v41 }
  0x15   : > { %v1243_v22 = vcombine.low %v178_v18, %v179_v19  ;;  %v1245_v23 = vcombine.low %v177_v17, %v178_v18  ;;  %v313_v25 = vrot.slane %v1001_v14, 1  ;;  %v224_v32 = vshrl.u32 %v1232_v13, 16  ;;  %v181_v39 = vld [vmem:[%s1219_s27 + $0x24] sm:$0x1]  ;;  %v1154_v9 = vld [vmem:[%s1679_s1 + $0x30] sm:$0xff]  }
  0x16   : > { %v213_v26 = vshrl.u32 %v1234_v15, 16  ;;  %v215_v27 = vshll.u32 %v1234_v15, 16  ;;  %v222_v30 = vrot.slane %v220_v21, 1  ;;  %v1260_v33 = vcombine.low %v179_v19, %v1248_v24 }
  0x17   : > { %v316_v31 = vrot.slane %v1245_v23, 1  ;;  %v315_v36 = vsel %vm312_vm0, %v313_v25, %v314_v20  ;;  %v228_v38 = vshll.u32 %v1252_v28, 16  ;;  %v236_v40 = vshll.u32 %v1243_v22, 16  ;;  %1042 = vmatpush3.bf16.msra.mxu0 %v1150_v55  ;;  %1091 = vmatpush3.bf16.msra.mxu1 %v1150_v55 }
  0x18   : > { %v217_v37 = vrot.slane %v215_v27, 1  ;;  %322 = vrot.lane.b32.xlu0 %v315_v36, %s1168_s9  ;;  %v226_v43 = vor.u32 %v224_v32, %v222_v30  ;;  %v318_v44 = vrot.slane %v1260_v33, 1  ;;  %v320_v45 = vrot.slane %v1263_v34, 1  ;;  %1043 = vmatprep.subr.bf16.mxu0 %v1151_v56 }
  0x19   : > { %v317_v42 = vsel %vm312_vm0, %v314_v20, %v316_v31  ;;  %v230_v47 = vrot.slane %v228_v38, 1  ;;  %v995_v48 = vcombine.low %v1248_v24, %v181_v39  ;;  %v238_v49 = vrot.slane %v236_v40, 1  ;;  %1084 = vmatprep.subr.bf16.mxu1 %v1151_v56 }
  0x1a   : > { %v218_v46 = vor.u32 %v217_v37, %v213_v26  ;;  %324 = vrot.lane.b32.xlu1 %v317_v42, %s1168_s9  ;;  %v240_v50 = vshrl.u32 %v1243_v22, 16  ;;  %v232_v51 = vshrl.u32 %v1252_v28, 16  ;;  %v319_v58 = vsel %vm312_vm0, %v316_v31, %v318_v44 }
  0x1b   : > { %v231_v53 = vsel %vm211_vm1, %v226_v43, %v230_v47  ;;  %v244_v54 = vshll.u32 %v995_v48, 16  ;;  %v321_v62 = vsel %vm312_vm0, %v318_v44, %v320_v45  ;;  %v271_v0 = vshrl.u32 %v1236_v16, 16  ;;  %1044 = vmatpush3.bf16.msra.mxu0 %v1152_v61  ;;  %1092 = vmatpush3.bf16.msra.mxu1 %v1152_v61 }
  0x1c   : > { %v223_v52 = vsel %vm211_vm1, %v218_v46, %v222_v30  ;;  %v234_v57 = vor.u32 %v232_v51, %v230_v47  ;;  %v242_v59 = vor.u32 %v240_v50, %v238_v49  ;;  %v273_v1 = vshll.u32 %v1236_v16, 16  ;;  %1045 = vmatprep.subr.bf16.mxu0 %v1153_v63  ;;  %1085 = vmatprep.subr.bf16.mxu1 %v1153_v63 }
  0x1d   : > { %251 = vrot.lane.b32.xlu0 %v223_v52, %s1168_s9  ;;  %v246_v60 = vrot.slane %v244_v54, 1  ;;  %v248_v3 = vshrl.u32 %v995_v48, 16  ;;  %v278_v4 = vshll.u32 %v1228_v10, 16  ;;  %v282_v7 = vshrl.u32 %v1228_v10, 16  ;;  %v1155_v10 = vld [vmem:[%s1679_s1 + $0x78] sm:$0xff]  }
  0x1e   : > { %253 = vrot.lane.b32.xlu1 %v231_v53, %s1168_s9  ;;  %v239_v2 = vsel %vm211_vm1, %v234_v57, %v238_v49  ;;  %v275_v6 = vrot.slane %v273_v1, 1  ;;  %v286_v8 = vshll.u32 %v1245_v23, 16  ;;  %v290_v12 = vshrl.u32 %v1245_v23, 16 }
  0x1f   : > { %v247_v5 = vsel %vm211_vm1, %v242_v59, %v246_v60  ;;  %v280_v11 = vrot.slane %v278_v4, 1  ;;  %v294_v14 = vshll.u32 %v1260_v33, 16  ;;  %v298_v16 = vshrl.u32 %v1260_v33, 16  ;;  %1046 = vmatpush3.bf16.msra.mxu0 %v1154_v9  ;;  %1093 = vmatpush3.bf16.msra.mxu1 %v1154_v9 }
  0x20   : > { %v276_v17 = vor.u32 %v275_v6, %v271_v0  ;;  %v288_v18 = vrot.slane %v286_v8, 1  ;;  %v302_v19 = vshll.u32 %v1263_v34, 16  ;;  %v250_v23 = vor.u32 %v248_v3, %v246_v60  ;;  %1047 = vmatprep.subr.bf16.mxu0 %v1155_v10  ;;  %1086 = vmatprep.subr.bf16.mxu1 %v1155_v10 }
  0x21   : > { %326 = vrot.lane.b32.xlu0 %v319_v58, %s1168_s9  ;;  %v284_v20 = vor.u32 %v282_v7, %v280_v11  ;;  %v296_v21 = vrot.slane %v294_v14, 1  ;;  %v306_v44 = vshrl.u32 %v1263_v34, 16  ;;  %v994_v34 = vcombine.low %v1248_v24, %v1248_v24 }
  0x22   : > { %328 = vrot.lane.b32.xlu1 %v321_v62, %s1168_s9  ;;  %v281_v25 = vsel %vm211_vm1, %v276_v17, %v280_v11  ;;  %v292_v26 = vor.u32 %v290_v12, %v288_v18  ;;  %v304_v27 = vrot.slane %v302_v19, 1  ;;  %v574_v55 = vlaneseq }
  0x23   : > { %v289_v30 = vsel %vm211_vm1, %v284_v20, %v288_v18  ;;  %v300_v31 = vor.u32 %v298_v16, %v296_v21  ;;  %1048 = vmatpush3.bf16.msra.mxu0 %v1156_v29  ;;  %1094 = vmatpush3.bf16.msra.mxu1 %v1156_v29 }
  0x24   : > { %v297_v32 = vsel %vm211_vm1, %v292_v26, %v296_v21  ;;  %v308_v50 = vor.u32 %v306_v44, %v304_v27  ;;  %v575_v56 = vshrl.u32 %v574_v55, 7 }
  0x25   : > { %255 = vrot.lane.b32.xlu0 %v239_v2, %s1168_s9  ;;  %v305_v33 = vsel %vm211_vm1, %v300_v31, %v304_v27 }
  0x26   : > { %257 = vrot.lane.b32.xlu1 %v247_v5, %s1168_s9  ;;  %v577_v57 = vadd.s32 16, %v575_v56  ;;  %v1352_v58 = vmul.u32.u64.low 3817748708, %v575_v56  ;;  %v1353_v59 = vmul.u32.u64.high 3817748708, %v575_v56, %v1352_v58  ;;  %v578_v63 = vadd.s32 24, %v575_v56 }
  0x27   : > { %v579_v1 = vadd.s32 32, %v575_v56  ;;  %v581_v4 = vadd.s32 48, %v575_v56  ;;  %v582_v6 = vadd.s32 56, %v575_v56  ;;  %v1370_v9 = vadd.s32 40, %v575_v56 }
  0x28   : > { %v1358_v61 = vmul.u32.u64.low 3817748708, %v577_v57  ;;  %v1359_v62 = vmul.u32.u64.high 3817748708, %v577_v57, %v1358_v61  ;;  %v590_v2 = vshrl.u32 %v1353_v59, 3  ;;  %v1372_v12 = vadd.s32 64, %v575_v56 }
  0x29   : > { %330 = vrot.lane.b32.xlu0 %v320_v45, %s1168_s9  ;;  %v1367_v7 = vmul.u32.u64.low 3817748708, %v579_v1  ;;  %v1368_v8 = vmul.u32.u64.high 3817748708, %v579_v1, %v1367_v7  ;;  %v1374_v16 = vmul.u32.u64.low 3817748708, %v581_v4  ;;  %v1375_v10 = vmul.u32.u64.high 3817748708, %v581_v4, %v1374_v16 }
  0x2a   : > { %259 = vrot.lane.b32.xlu1 %v250_v23, %s1168_s9  ;;  %v612_v5 = vshrl.u32 %v1359_v62, 3  ;;  %v591_v11 = vmul.u32 9, %v590_v2  ;;  %v1378_v19 = vmul.u32.u64.low 3817748708, %v582_v6  ;;  %v1379_v20 = vmul.u32.u64.high 3817748708, %v582_v6, %v1378_v19 }
  0x2b   : > { %v1382_v21 = vmul.u32.u64.low 3817748708, %v1370_v9  ;;  %v1383_v23 = vmul.u32.u64.high 3817748708, %v1370_v9, %v1382_v21  ;;  %v1386_v26 = vmul.u32.u64.low 3817748708, %v1372_v12  ;;  %v1387_v27 = vmul.u32.u64.high 3817748708, %v1372_v12, %v1386_v26 }
  0x2c   : > { %v613_v17 = vmul.u32 9, %v612_v5  ;;  %v1169_v61 = vmov 0.0  }
  0x2d   : > { %v678_v44 = vshrl.u32 %v1387_v27, 3 }
  0x2f   : > { %v679_v55 = vmul.u32 9, %v678_v44 }
  0x8a   : > { %v323_v35 = vpop.permute.xlu0 %322 }
  0x8b   : > { %v351_v36 = vsel %vm332_vm2, %v281_v25, %v323_v35  ;;  %v592_v25 = vsub.s32 %v575_v56, %v591_v11  ;;  %v656_v35 = vshrl.u32 %v1375_v10, 3 }
  0x8c   : > { %v325_v37 = vpop.permute.xlu1 %324  ;;  %534 = vmatprep.mubr.bf16.mxu0 %v351_v36 }
  0x8d   : > { %v355_v39 = vsel %vm332_vm2, %v289_v30, %v325_v37  ;;  %v614_v30 = vsub.s32 %v577_v57, %v613_v17  ;;  %vm683_vm3 = vcmp.ne.s32.totalorder %v592_v25, 0  ;;  %vm692_vm4 = vcmp.lt.s32.totalorder %v592_v25, 0 }
  0x8e   : > { %v667_v37 = vshrl.u32 %v1379_v20, 3  ;;  %vm1392_vm9 = vmand %vm692_vm4, %vm683_vm3 }
  0x8f   : > { %v252_v38 = vpop.permute.xlu0 %251  ;;  %vm685_vm7 = vcmp.ne.s32.totalorder %v614_v30, 0  ;;  %vm694_vm8 = vcmp.lt.s32.totalorder %v614_v30, 0 }
  0x90   : > { %v334_v40 = vsel %vm332_vm2, %v1234_v15, %v252_v38  ;;  %v254_v41 = vpop.permute.xlu1 %253  ;;  %vm1402_vm11 = vmand %vm694_vm8, %vm685_vm7 }
  0x91   : > { %535 = vmatmul.mubr.bf16.vlgmr.msra.gmra.mrb[0].mxu0 %v334_v40  ;;  %v337_v46 = vsel %vm332_vm2, %v1232_v13, %v254_v41  ;;  %v645_v41 = vshrl.u32 %v1383_v23, 3 }
  0x92   : > { %542 = vmatprep.mubr.bf16.mxu0 %v355_v39 }
  0x93   : > { %v327_v42 = vpop.permute.xlu0 %326 }
  0x94   : > { %v329_v43 = vpop.permute.xlu1 %328  ;;  %v359_v47 = vsel %vm332_vm2, %v297_v32, %v327_v42  ;;  %v634_v32 = vshrl.u32 %v1368_v8, 3 }
  0x95   : > { %v363_v45 = vsel %vm332_vm2, %v305_v33, %v329_v43  ;;  %v710_v33 = vadd.s32 9, %v592_v25  ;;  %v712_v43 = vadd.s32 9, %v614_v30 }
  0x96   : > { %558 = vmatprep.mubr.bf16.mxu1 %v363_v45  ;;  %v635_v40 = vmul.u32 9, %v634_v32 }
  0x97   : > { %v256_v48 = vpop.permute.xlu0 %255 }
  0x98   : > { %v258_v49 = vpop.permute.xlu1 %257  ;;  %v340_v13 = vsel %vm332_vm2, %v1252_v28, %v256_v48  ;;  %v1361_v0 = vmul.u32.u64.low 3817748708, %v578_v63  ;;  %v1362_v28 = vmul.u32.u64.high 3817748708, %v578_v63, %v1361_v0  ;;  %v719_v48 = vsel %vm1392_vm9, %v710_v33, %v592_v25 }
  0x99   : > { %543 = vmatmul.mubr.bf16.gmra.mrb[4].mxu0 %v337_v46  ;;  %v343_v15 = vsel %vm332_vm2, %v1243_v22, %v258_v49  ;;  %v576_v22 = vadd.s32 8, %v575_v56  ;;  %v657_v46 = vmul.u32 9, %v656_v35  ;;  %v668_v49 = vmul.u32 9, %v667_v37 }
  0x9a   : > { %550 = vmatprep.mubr.bf16.mxu0 %v359_v47  ;;  %559 = vmatmul.mubr.bf16.vlgmr.msra.gmra.mrb[0].mxu1 %v343_v15  ;;  %v623_v18 = vshrl.u32 %v1362_v28, 3  ;;  %vm728_vm14 = vcmp.lt.s32.totalorder %v719_v48, 8  ;;  %v1441_v28 = vsub.s32 %v1372_v12, %v679_v55 }
  0x9b   : > { %v331_v51 = vpop.permute.xlu0 %330  ;;  %v1355_v60 = vmul.u32.u64.low 3817748708, %v576_v22  ;;  %v1356_v24 = vmul.u32.u64.high 3817748708, %v576_v22, %v1355_v60  ;;  %v1418_v57 = vsub.s32 %v581_v4, %v657_v46  ;;  %v1420_v59 = vsub.s32 %v582_v6, %v668_v49 }
  0x9c   : > { %v260_v52 = vpop.permute.xlu1 %259  ;;  %v367_v53 = vsel %vm332_vm2, %v308_v50, %v331_v51  ;;  %v624_v31 = vmul.u32 9, %v623_v18  ;;  %v1410_v51 = vsub.s32 %v579_v1, %v635_v40  ;;  %v1425_v60 = vld [vmem:[%s1680_s2] ss:$0 sm:$0xff]  ;;  %v1433_v62 = vsel %vm728_vm14, 1.0, %v1169_v61 }
  0x9d   : > { %566 = vmatprep.mubr.bf16.mxu1 %v367_v53  ;;  %v347_v54 = vsel %vm332_vm2, %v994_v34, %v260_v52  ;;  %v601_v3 = vshrl.u32 %v1356_v24, 3  ;;  %v646_v34 = vmul.u32 9, %v645_v41  ;;  %vm689_vm4 = vcmp.ne.s32.totalorder %v1418_v57, 0 }
  0x9e   : > { %v625_v36 = vsub.s32 %v578_v63, %v624_v31  ;;  %vm687_vm2 = vcmp.ne.s32.totalorder %v1410_v51, 0  ;;  %vm696_vm3 = vcmp.lt.s32.totalorder %v1410_v51, 0  ;;  %v714_v2 = vadd.s32 9, %v1410_v51 }
  0x9f   : > { %v602_v14 = vmul.u32 9, %v601_v3  ;;  %v1430_v24 = vsub.s32 %v1370_v9, %v646_v34  ;;  %vm699_vm7 = vcmp.lt.s32.totalorder %v1420_v59, 0  ;;  %vm1461_vm8 = vmand %vm696_vm3, %vm687_vm2  ;;  %v716_v11 = vadd.s32 9, %v1418_v57 }
  0xa0   : > { %vm686_vm12 = vcmp.ne.s32.totalorder %v625_v36, 0  ;;  %vm695_vm13 = vcmp.lt.s32.totalorder %v625_v36, 0  ;;  %vm700_vm14 = vcmp.lt.s32.totalorder %v1441_v28, 0  ;;  %v717_v23 = vadd.s32 9, %v1420_v59 }
  0xa1   : > { %551 = vmatmul.mubr.bf16.gmra.mrb[8].mxu0 %v340_v13  ;;  %v603_v29 = vsub.s32 %v576_v22, %v602_v14  ;;  %v721_v13 = vsel %vm1402_vm11, %v712_v43, %v614_v30  ;;  %vm1414_vm15 = vmand %vm695_vm13, %vm686_vm12  ;;  %vm697_vm11 = vcmp.lt.s32.totalorder %v1430_v24, 0  ;;  %vm691_vm13 = vcmp.ne.s32.totalorder %v1441_v28, 0 }
  0xa2   : > { %567 = vmatmul.mubr.bf16.gmra.mrb[4].mxu1 %v347_v54  ;;  %v713_v54 = vadd.s32 9, %v625_v36  ;;  %vm730_vm1 = vcmp.lt.s32.totalorder %v721_v13, 8  ;;  %v723_v25 = vsel %vm1461_vm8, %v714_v2, %v1410_v51  ;;  %v715_v26 = vadd.s32 9, %v1430_v24  ;;  %vm1520_vm2 = vmand %vm700_vm14, %vm691_vm13 }
  0xa3   : > { %vm684_vm5 = vcmp.ne.s32.totalorder %v603_v29, 0  ;;  %vm693_vm6 = vcmp.lt.s32.totalorder %v603_v29, 0  ;;  %v711_v39 = vadd.s32 9, %v603_v29  ;;  %v1453_v5 = vsel %vm730_vm1, 1.0, %v1169_v61 }
  0xa4   : > { %vm1397_vm10 = vmand %vm693_vm6, %vm684_vm5  ;;  %v722_v0 = vsel %vm1414_vm15, %v713_v54, %v625_v36  ;;  %vm698_vm5 = vcmp.lt.s32.totalorder %v1418_v57, 0  ;;  %vm690_vm6 = vcmp.ne.s32.totalorder %v1420_v59, 0  ;;  %v718_v33 = vadd.s32 9, %v1441_v28 }
  0xa5   : > { %v720_v15 = vsel %vm1397_vm10, %v711_v39, %v603_v29  ;;  %vm1465_vm9 = vcmp.lt.s32.totalorder %v722_v0, 8  ;;  %vm688_vm10 = vcmp.ne.s32.totalorder %v1430_v24, 0  ;;  %vm1478_vm12 = vmand %vm698_vm5, %vm689_vm4  ;;  %vm764_vm1 = vcmask 261120  }
  0xa6   : > { %vm729_vm0 = vcmp.lt.s32.totalorder %v720_v15, 8  ;;  %vm1488_vm15 = vmand %vm699_vm7, %vm690_vm6  ;;  %v1514_v35 = vsel %vm1465_vm9, 1.0, %v1169_v61  ;;  %v725_v41 = vsel %vm1478_vm12, %v716_v11, %v1418_v57  ;;  %vm1536_vm3 = vcmp.lt.s32.totalorder %v723_v25, 8 }
  0xa7   : > { %v1444_v1 = vsel %vm729_vm0, 1.0, %v1169_v61  ;;  %vm1506_vm0 = vmand %vm697_vm11, %vm688_vm10  ;;  %v726_v42 = vsel %vm1488_vm15, %v717_v23, %v1420_v59  ;;  %v727_v49 = vsel %vm1520_vm2, %v718_v33, %v1441_v28  ;;  %vm1550_vm4 = vcmp.lt.s32.totalorder %v725_v41, 8 }
  0xa8   : > { %v724_v44 = vsel %vm1506_vm0, %v715_v26, %v1430_v24  ;;  %vm1554_vm5 = vcmp.lt.s32.totalorder %v726_v42, 8  ;;  %vm736_vm7 = vcmp.lt.s32.totalorder %v727_v49, 8  ;;  %vm899_vm8 = vcmask 261121  }
  0xa9   : > { %vm733_vm6 = vcmp.lt.s32.totalorder %v724_v44, 8  ;;  %vm901_vm9 = vcmask 253952   ;;  %vm903_vm10 = vcmask 261122   ;;  %vm905_vm11 = vcmask 254976  }
  0xaa   : > { %v1024_v6 = vsel %vm733_vm6, 1.0, %v1169_v61  ;;  %vm907_vm12 = vcmask 261123   ;;  %vm909_vm13 = vcmask 256000   ;;  %vm911_vm14 = vcmask 261124  }
  0xab   : > { %vm913_vm15 = vcmask 257024   ;;  %vm915_vm0 = vcmask 261125   ;;  %vm917_vm2 = vcmask 258048   ;;  %vm925_vm6 = vcmask 260096  }
 0x164   : > { %v1049_v47 = vpop.f32.mrb[0].mxu0 }
 0x165   : > { %v1050_v50 = vpop.f32.mrb[1].mxu0 }
 0x166   : > { %v1051_v52 = vadd.f32 %v1050_v50, %v1049_v47  ;;  %v1052_v53 = vpop.f32.mrb[2].mxu0 }
 0x167   : > { %v1053_v56 = vpop.f32.mrb[3].mxu0 }
 0x168   : > { %v1054_v58 = vadd.f32 %v1053_v56, %v1052_v53  ;;  %v1450_v3 = vadd.f32 %v1051_v52, %v1425_v60  ;;  %v1023_v56 = vsel %vm1536_vm3, 1.0, %v1169_v61  ;;  %vm919_vm3 = vcmask 261126  }
 0x16a   : > { %v1436_v63 = vadd.f32 %v1054_v58, %v1425_v60  ;;  %v755_v27 = vmul.f32 %v1433_v62, %v1450_v3 }
 0x16c   : > { %v1055_v4 = vpop.f32.mrb[4].mxu0  ;;  %v756_v12 = vmul.f32 %v1444_v1, %v1436_v63  ;;  %v765_v45 = vsel %vm764_vm1, %v755_v27, 0.0 }
 0x16d   : > { %v1056_v7 = vpop.f32.mrb[5].mxu0  ;;  %v1067_v9 = vpop.f32.mrb[0].mxu1 }
 0x16e   : > { %v1057_v14 = vadd.f32 %v1056_v7, %v1055_v4  ;;  %v1058_v16 = vpop.f32.mrb[6].mxu0  ;;  %v1068_v10 = vpop.f32.mrb[1].mxu1  ;;  %v766_v38 = vsel %vm764_vm1, %v756_v12, 0.0  ;;  %v1025_v4 = vsel %vm1550_vm4, 1.0, %v1169_v61  ;;  %vm921_vm4 = vcmask 259072  }
 0x16f   : > { %v1059_v18 = vpop.f32.mrb[7].mxu0  ;;  %v1069_v19 = vadd.f32 %v1068_v10, %v1067_v9  ;;  %v1070_v20 = vpop.f32.mrb[2].mxu1  ;;  %v767_v50 = vadd.f32 %v766_v38, %v765_v45 }
 0x170   : > { %v1500_v29 = vadd.f32 %v1057_v14, %v1425_v60  ;;  %v1060_v30 = vadd.f32 %v1059_v18, %v1058_v16  ;;  %v1071_v31 = vpop.f32.mrb[3].mxu1  ;;  %v1026_v14 = vsel %vm1554_vm5, 1.0, %v1169_v61  ;;  %v1027_v16 = vsel %vm736_vm7, 1.0, %v1169_v61 }
 0x171   : > { %v1072_v36 = vadd.f32 %v1071_v31, %v1070_v20  ;;  %v561_v24 = vadd.f32 %v1069_v19, %v1425_v60  ;;  %vm923_vm5 = vcmask 261127  }
 0x172   : > { %v757_v39 = vmul.f32 %v1453_v5, %v1500_v29  ;;  %v1528_v40 = vadd.f32 %v1060_v30, %v1425_v60 }
 0x173   : > { %v564_v7 = vadd.f32 %v1072_v36, %v1425_v60  ;;  %v761_v10 = vmul.f32 %v1025_v4, %v561_v24 }
 0x174   : > { %v768_v46 = vsel %vm764_vm1, %v757_v39, 0.0  ;;  %v758_v47 = vmul.f32 %v1514_v35, %v1528_v40  ;;  %v1061_v48 = vpop.f32.mrb[8].mxu0 }
 0x175   : > { %v1062_v15 = vpop.f32.mrb[9].mxu0  ;;  %v1073_v51 = vpop.f32.mrb[4].mxu1  ;;  %v769_v55 = vadd.f32 %v768_v46, %v767_v50  ;;  %v762_v20 = vmul.f32 %v1026_v14, %v564_v7  ;;  %v776_v26 = vsel %vm764_vm1, %v761_v10, 0.0 }
 0x176   : > { %v1063_v53 = vadd.f32 %v1062_v15, %v1061_v48  ;;  %v1064_v13 = vpop.f32.mrb[10].mxu0  ;;  %v1074_v54 = vpop.f32.mrb[5].mxu1  ;;  %v770_v59 = vsel %vm764_vm1, %v758_v47, 0.0 }
 0x177   : > { %v1065_v22 = vpop.f32.mrb[11].mxu0  ;;  %v1075_v57 = vadd.f32 %v1074_v54, %v1073_v51  ;;  %v1076_v58 = vpop.f32.mrb[6].mxu1  ;;  %v771_v12 = vadd.f32 %v770_v59, %v769_v55  ;;  %v778_v27 = vsel %vm764_vm1, %v762_v20, 0.0 }
 0x178   : > { %v553_v0 = vadd.f32 %v1063_v53, %v1425_v60  ;;  %v1066_v28 = vadd.f32 %v1065_v22, %v1064_v13  ;;  %v1077_v2 = vpop.f32.mrb[7].mxu1 }
 0x179   : > { %v569_v11 = vadd.f32 %v1075_v57, %v1425_v60 }
 0x17a   : > { %v759_v8 = vmul.f32 %v1023_v56, %v553_v0  ;;  %v556_v9 = vadd.f32 %v1066_v28, %v1425_v60 }
 0x17b   : > { %v763_v23 = vmul.f32 %v1027_v16, %v569_v11 }
 0x17c   : > { %v772_v17 = vsel %vm764_vm1, %v759_v8, 0.0  ;;  %v760_v18 = vmul.f32 %v1024_v6, %v556_v9 }
 0x17d   : > { %v773_v19 = vadd.f32 %v772_v17, %v771_v12  ;;  %v780_v30 = vsel %vm764_vm1, %v763_v23, 0.0 }
 0x17e   : > { %v774_v21 = vsel %vm764_vm1, %v760_v18, 0.0 }
 0x17f   : > { %v775_v25 = vadd.f32 %v774_v21, %v773_v19 }
 0x181   : > { %v777_v60 = vadd.f32 %v776_v26, %v775_v25 }
 0x183   : > { %v779_v31 = vadd.f32 %v778_v27, %v777_v60 }
 0x185   : > { %v781_v32 = vadd.f32 %v780_v30, %v779_v31  ;;  %v1028_v31 = vld [vmem:[%s1680_s2 + $0x1] ss:$0 sm:$0xff] }
 0x187   : > { %782 = vadd.xlane.f32.xlu0 %v781_v32 }
 0x214   : > { %v783_v61 = vpop.xlane.xlu0 %782 }
 0x215   : > { %v784_v33 = vrot.slane %v783_v61, 4 }
 0x217   : > { %v785_v36 = vadd.f32 %v784_v33, %v783_v61 }
 0x219   : > { %v786_v37 = vrot.slane %v785_v36, 2 }
 0x21b   : > { %v787_v38 = vadd.f32 %v786_v37, %v785_v36 }
 0x21d   : > { %v788_v39 = vrot.slane %v787_v38, 1 }
 0x21f   : > { %v789_v41 = vadd.f32 %v788_v39, %v787_v38 }
 0x221   : > { %1114 = vpush %v789_v41 }
 0x252   : > { %s1115_s28 = spop %1114 }
 0x253   : > { %s791_s29 = smul.f32 0.00048828125, %s1115_s28 }
 0x255   : > { %v792_v42 = vstv %s791_s29 }
 0x256   : > { %v1581_v43 = vsub.f32 %v1450_v3, %v792_v42  ;;  %v1584_v44 = vsub.f32 %v1436_v63, %v792_v42  ;;  %v1587_v45 = vsub.f32 %v1500_v29, %v792_v42  ;;  %v1590_v46 = vsub.f32 %v1528_v40, %v792_v42 }
 0x257   : > { %v1592_v47 = vsub.f32 %v553_v0, %v792_v42  ;;  %v1600_v50 = vsub.f32 %v556_v9, %v792_v42  ;;  %v1604_v40 = vsub.f32 %v561_v24, %v792_v42  ;;  %v1608_v52 = vsub.f32 %v564_v7, %v792_v42 }
 0x258   : > { %v802_v48 = vmul.f32 %v1433_v62, %v1581_v43  ;;  %v803_v49 = vmul.f32 %v1444_v1, %v1584_v44  ;;  %v804_v3 = vmul.f32 %v1453_v5, %v1587_v45  ;;  %v805_v63 = vmul.f32 %v1514_v35, %v1590_v46 }
 0x259   : > { %v806_v51 = vmul.f32 %v1023_v56, %v1592_v47  ;;  %v807_v1 = vmul.f32 %v1024_v6, %v1600_v50  ;;  %v1612_v54 = vsub.f32 %v569_v11, %v792_v42  ;;  %v808_v35 = vmul.f32 %v1025_v4, %v1604_v40  ;;  %v1029_v42 = vld [vmem:[%s1680_s2 + $0x2] ss:$0 sm:$0xff] }
 0x25a   : > { %v811_v29 = vmul.f32 %v802_v48, %v802_v48  ;;  %v812_v15 = vmul.f32 %v803_v49, %v803_v49  ;;  %v813_v34 = vmul.f32 %v804_v3, %v804_v3  ;;  %v814_v53 = vmul.f32 %v805_v63, %v805_v63 }
 0x25b   : > { %v815_v55 = vmul.f32 %v806_v51, %v806_v51  ;;  %v809_v56 = vmul.f32 %v1026_v14, %v1608_v52  ;;  %v816_v58 = vmul.f32 %v807_v1, %v807_v1  ;;  %v810_v0 = vmul.f32 %v1027_v16, %v1612_v54 }
 0x25c   : > { %v820_v62 = vsel %vm764_vm1, %v811_v29, 0.0  ;;  %v821_v5 = vsel %vm764_vm1, %v812_v15, 0.0  ;;  %v823_v22 = vsel %vm764_vm1, %v813_v34, 0.0  ;;  %v825_v59 = vsel %vm764_vm1, %v814_v53, 0.0 }
 0x25d   : > { %v822_v13 = vadd.f32 %v821_v5, %v820_v62  ;;  %v817_v28 = vmul.f32 %v808_v35, %v808_v35  ;;  %v827_v2 = vsel %vm764_vm1, %v815_v55, 0.0  ;;  %v818_v7 = vmul.f32 %v809_v56, %v809_v56 }
 0x25e   : > { %v829_v8 = vsel %vm764_vm1, %v816_v58, 0.0  ;;  %v819_v9 = vmul.f32 %v810_v0, %v810_v0 }
 0x25f   : > { %v824_v57 = vadd.f32 %v823_v22, %v822_v13  ;;  %v831_v11 = vsel %vm764_vm1, %v817_v28, 0.0  ;;  %v833_v14 = vsel %vm764_vm1, %v818_v7, 0.0 }
 0x260   : > { %v835_v17 = vsel %vm764_vm1, %v819_v9, 0.0 }
 0x261   : > { %v826_v24 = vadd.f32 %v825_v59, %v824_v57 }
 0x263   : > { %v828_v6 = vadd.f32 %v827_v2, %v826_v24 }
 0x265   : > { %v830_v4 = vadd.f32 %v829_v8, %v828_v6 }
 0x267   : > { %v832_v12 = vadd.f32 %v831_v11, %v830_v4 }
 0x269   : > { %v834_v10 = vadd.f32 %v833_v14, %v832_v12 }
 0x26b   : > { %v836_v18 = vadd.f32 %v835_v17, %v834_v10 }
 0x26d   : > { %837 = vadd.xlane.f32.xlu1 %v836_v18 }
 0x2fa   : > { %v838_v16 = vpop.xlane.xlu1 %837 }
 0x2fb   : > { %v839_v19 = vrot.slane %v838_v16, 4 }
 0x2fd   : > { %v840_v20 = vadd.f32 %v839_v19, %v838_v16 }
 0x2ff   : > { %v841_v21 = vrot.slane %v840_v20, 2 }
 0x301   : > { %v842_v23 = vadd.f32 %v841_v21, %v840_v20 }
 0x303   : > { %v843_v25 = vrot.slane %v842_v23, 1 }
 0x305   : > { %v844_v26 = vadd.f32 %v843_v25, %v842_v23 }
 0x307   : > { %1116 = vpush %v844_v26 }
 0x338   : > { %s1117_s30 = spop %1116 }
 0x339   : > { %s846_s4 = smul.f32 0.00048828125, %s1117_s30 }
 0x33b   : > { %s847_s5 = sadd.f32 1e-05, %s846_s4 }
 0x33d   : > { %v848_v60 = vstv %s847_s5 }
 0x33e   : > { %1158 = vrsqrt.f32 %v848_v60 }
 0x348   : > { %v1159_v27 = vpop.eup %1158 }
 0x349   : > { %1118 = vpush %v1159_v27 }
 0x37a   : > { %s1119_s6 = spop %1118 }
 0x37b   : > { %v851_v30 = vstv %s1119_s6 }
 0x37c   : > { %v852_v32 = vmul.f32 %v851_v30, %v1581_v43  ;;  %v853_v61 = vmul.f32 %v851_v30, %v1584_v44  ;;  %v854_v33 = vmul.f32 %v851_v30, %v1587_v45  ;;  %v855_v36 = vmul.f32 %v851_v30, %v1590_v46 }
 0x37d   : > { %v856_v37 = vmul.f32 %v851_v30, %v1592_v47  ;;  %v857_v38 = vmul.f32 %v851_v30, %v1600_v50  ;;  %v858_v39 = vmul.f32 %v851_v30, %v1604_v40  ;;  %v859_v41 = vmul.f32 %v851_v30, %v1608_v52 }
 0x37e   : > { %v860_v43 = vmul.f32 %v851_v30, %v1612_v54  ;;  %v866_v44 = vmul.f32 %v1028_v31, %v852_v32  ;;  %v867_v48 = vmul.f32 %v1028_v31, %v853_v61  ;;  %v868_v45 = vmul.f32 %v1028_v31, %v854_v33 }
 0x37f   : > { %v869_v49 = vmul.f32 %v1028_v31, %v855_v36  ;;  %v870_v46 = vmul.f32 %v1028_v31, %v856_v37  ;;  %v871_v3 = vmul.f32 %v1028_v31, %v857_v38  ;;  %v872_v47 = vmul.f32 %v1028_v31, %v858_v39 }
 0x380   : > { %v873_v63 = vmul.f32 %v1028_v31, %v859_v41  ;;  %v874_v50 = vmul.f32 %v1028_v31, %v860_v43  ;;  %v880_v29 = vadd.f32 %v1029_v42, %v866_v44  ;;  %v881_v15 = vadd.f32 %v1029_v42, %v867_v48 }
 0x381   : > { %v882_v40 = vadd.f32 %v1029_v42, %v868_v45  ;;  %v883_v51 = vadd.f32 %v1029_v42, %v869_v49  ;;  %v884_v34 = vadd.f32 %v1029_v42, %v870_v46  ;;  %v885_v62 = vadd.f32 %v1029_v42, %v871_v3 }
 0x382   : > { %v886_v52 = vadd.f32 %v1029_v42, %v872_v47  ;;  %v887_v1 = vadd.f32 %v1029_v42, %v873_v63  ;;  %v888_v53 = vadd.f32 %v1029_v42, %v874_v50  ;;  %v889_v5 = vmax.f32 %v880_v29, 0.0 }
 0x383   : > { %v890_v13 = vmax.f32 %v881_v15, 0.0  ;;  %v891_v54 = vmax.f32 %v882_v40, 0.0  ;;  %v892_v35 = vmax.f32 %v883_v51, 0.0  ;;  %v893_v55 = vmax.f32 %v884_v34, 0.0 }
 0x384   : > { %v894_v22 = vmax.f32 %v885_v62, 0.0  ;;  %v895_v57 = vmax.f32 %v886_v52, 0.0  ;;  %v896_v56 = vmax.f32 %v887_v1, 0.0  ;;  %v897_v58 = vmax.f32 %v888_v53, 0.0  ;;  %898 = vst.msk [vmem:[%s1643_s16] sm:$0xff] %vm764_vm1, %v889_v5 }
 0x385   : > { %900 = vst.msk [vmem:[%s1643_s16 + $0x7] sm:$0xfe] %vm899_vm8, %v890_v13 }
 0x386   : > { %902 = vst.msk [vmem:[%s1643_s16 + $0xf] sm:$0x1] %vm901_vm9, %v891_v54 }
 0x387   : > { %904 = vst.msk [vmem:[%s1643_s16 + $0xe] sm:$0xfc] %vm903_vm10, %v891_v54 }
 0x388   : > { %906 = vst.msk [vmem:[%s1643_s16 + $0x16] sm:$0x3] %vm905_vm11, %v892_v35 }
 0x389   : > { %908 = vst.msk [vmem:[%s1643_s16 + $0x15] sm:$0xf8] %vm907_vm12, %v892_v35 }
 0x38a   : > { %910 = vst.msk [vmem:[%s1643_s16 + $0x1d] sm:$0x7] %vm909_vm13, %v893_v55 }
 0x38b   : > { %912 = vst.msk [vmem:[%s1643_s16 + $0x1c] sm:$0xf0] %vm911_vm14, %v893_v55 }
 0x38c   : > { %914 = vst.msk [vmem:[%s1643_s16 + $0x24] sm:$0xf] %vm913_vm15, %v894_v22 }
 0x38d   : > { %916 = vst.msk [vmem:[%s1643_s16 + $0x23] sm:$0xe0] %vm915_vm0, %v894_v22 }
 0x38e   : > { %918 = vst.msk [vmem:[%s1643_s16 + $0x2b] sm:$0x1f] %vm917_vm2, %v895_v57 }
 0x38f   : > { %920 = vst.msk [vmem:[%s1643_s16 + $0x2a] sm:$0xc0] %vm919_vm3, %v895_v57 }
 0x390   : > { %922 = vst.msk [vmem:[%s1643_s16 + $0x32] sm:$0x3f] %vm921_vm4, %v896_v56 }
 0x391   : > { %924 = vst.msk [vmem:[%s1643_s16 + $0x31] sm:$0x80] %vm923_vm5, %v896_v56 }
 0x392   : > { %926 = vst.msk [vmem:[%s1643_s16 + $0x39] sm:$0x7f] %vm925_vm6, %v897_v58 }
 0x393 PF: > { %s13_s12 = sadd.s32 1, %s1166_s12  }
 0x394   : > { %p10_p4 = scmp.ge.s32.totalorder %s13_s12, 4  }
 0x396   :  { %12 = sbr.rel (!%p10_p4) target bundleno = 1 (0x1), region = 62 }

// kernel: _lambda_.6
= control target key start
LH: loop header
LB: loop body
LE: loop exit
PB: predicated region body
PF: predicated region fallthrough
CT: control target
= control target key end

     0   :  { %s1010_s12 = smov 0   ;;  %s1191_s0 = inlined_call_operand.vmem [shape: bf16[2,32,128], index: 0, kind: input, shape index: {}]   ;;  %s1192_s1 = inlined_call_operand.vmem [shape: bf16[512,32], index: 1, kind: input, shape index: {}]   ;;  %s1193_s2 = inlined_call_operand.vmem [shape: f32[3,32], index: 2, kind: input, shape index: {}]   ;;  %s1194_s3 = inlined_call_operand.vmem [shape: f32[2,16,32], index: 3, kind: output, shape index: {}]  }
   0x1 LB: > { %s807_s13 = sadd.s32 4294967295, %s987_s12   ;;  %p811_p0 = scmp.ge.s32.totalorder %s987_s12, 1  ;;  %s987_s12 = sphi %s1010_s12, %s13_s12  }
   0x2   : > { %p137_p1 = scmp.lt.s32.totalorder %s987_s12, 3 }
   0x4   : > { %p138_p2 = pnand %p811_p0, %p137_p1 }
   0x5   : > { %v941_v0 = vld [vmem:[%s1192_s1 + $0x40] sm:$0xff] (!%p138_p2)   ;;  %v945_v4 = vld [vmem:[%s1192_s1 + $0x48] sm:$0xff] (!%p138_p2)   ;;  %v949_v8 = vld [vmem:[%s1192_s1 + $0x50] sm:$0xff] (!%p138_p2)   ;;  %p161_p3 = scmp.lt.s32.totalorder (!%p138_p2), %s807_s13, 1  ;;  %vm245_vm0 = vcmask (!%p138_p2), 1044480   ;;  %vm672_vm15 = vcmask (!%p138_p2), 261120  }
   0x6   : > { %141 = sbr.rel (%p138_p2) target bundleno = 774 (0x306), region = 32  ;;  %v942_v1 = vld [vmem:[%s1192_s1 + $0xc0] sm:$0xff] (!%p138_p2)   ;;  %864 = vmatprep.subr.bf16.mxu0 (!%p138_p2), %v941_v0  ;;  %v946_v5 = vld [vmem:[%s1192_s1 + $0xc8] sm:$0xff] (!%p138_p2)   ;;  %v950_v9 = vld [vmem:[%s1192_s1 + $0xd0] sm:$0xff] (!%p138_p2)   ;;  %vm194_vm1 = vsmask.f32 (!%p138_p2), 7424  ;;  %v608_v0 = vlaneseq (!%p138_p2) }
   0x7   : > { %v943_v2 = vld [vmem:[%s1192_s1] sm:$0xff] (!%p138_p2)   ;;  %892 = vmatprep.subr.bf16.mxu1 (!%p138_p2), %v942_v1  ;;  %v947_v6 = vld [vmem:[%s1192_s1 + $0x8] sm:$0xff] (!%p138_p2)   ;;  %v951_v10 = vld [vmem:[%s1192_s1 + $0x10] sm:$0xff] (!%p138_p2)   ;;  %vm222_vm2 = vsmask.f32 (!%p138_p2), 5376 }
   0x8   : > { %v944_v3 = vld [vmem:[%s1192_s1 + $0x80] sm:$0xff] (!%p138_p2)   ;;  %865 = vmatpush3.bf16.msra.mxu0 (!%p138_p2), %v943_v2  ;;  %v948_v7 = vld [vmem:[%s1192_s1 + $0x88] sm:$0xff] (!%p138_p2)   ;;  %v952_v11 = vld [vmem:[%s1192_s1 + $0x90] sm:$0xff] (!%p138_p2)   ;;  %v609_v1 = vshrl.u32 (!%p138_p2), %v608_v0, 7 }
   0x9   : > { %893 = vmatpush3.bf16.msra.mxu1 (!%p138_p2), %v944_v3  ;;  %866 = vmatprep.subr.bf16.mxu0 (!%p138_p2), %v945_v4  ;;  %v953_v12 = vld [vmem:[%s1192_s1 + $0x58] sm:$0xff] (!%p138_p2)   ;;  %v957_v16 = vld [vmem:[%s1192_s1 + $0x60] sm:$0xff] (!%p138_p2)   ;;  %v961_v20 = vld [vmem:[%s1192_s1 + $0x68] sm:$0xff] (!%p138_p2)  }
   0xa   : > { %894 = vmatprep.subr.bf16.mxu1 (!%p138_p2), %v946_v5  ;;  %v954_v13 = vld [vmem:[%s1192_s1 + $0xd8] sm:$0xff] (!%p138_p2)   ;;  %v958_v17 = vld [vmem:[%s1192_s1 + $0xe0] sm:$0xff] (!%p138_p2)   ;;  %v962_v21 = vld [vmem:[%s1192_s1 + $0xe8] sm:$0xff] (!%p138_p2)   ;;  %v610_v2 = vadd.s32 (!%p138_p2), 8, %v609_v1 }
   0xb   : > { %v955_v14 = vld [vmem:[%s1192_s1 + $0x18] sm:$0xff] (!%p138_p2)   ;;  %v959_v18 = vld [vmem:[%s1192_s1 + $0x20] sm:$0xff] (!%p138_p2)   ;;  %v963_v22 = vld [vmem:[%s1192_s1 + $0x28] sm:$0xff] (!%p138_p2)  }
   0xc   : > { %867 = vmatpush3.bf16.msra.mxu0 (!%p138_p2), %v947_v6  ;;  %v956_v15 = vld [vmem:[%s1192_s1 + $0x98] sm:$0xff] (!%p138_p2)   ;;  %v960_v19 = vld [vmem:[%s1192_s1 + $0xa0] sm:$0xff] (!%p138_p2)   ;;  %v964_v23 = vld [vmem:[%s1192_s1 + $0xa8] sm:$0xff] (!%p138_p2)   ;;  %v1137_v3 = vmul.u32.u64.low (!%p138_p2), 3435973837, %v610_v2  ;;  %v1138_v4 = vmul.u32.u64.high 3435973837, %v610_v2, %v1137_v3 }
   0xd   : > { %895 = vmatpush3.bf16.msra.mxu1 %v948_v7  ;;  %868 = vmatprep.subr.bf16.mxu0 %v949_v8  ;;  %s1202_s13 = smov (!%p161_p3, %s807_s13), 1  ;;  %v965_v24 = vld [vmem:[%s1192_s1 + $0x70] sm:$0xff]   ;;  %v969_v28 = vld [vmem:[%s1192_s1 + $0x78] sm:$0xff]   ;;  %v1140_v5 = vmul.u32.u64.low 3435973837, %v609_v1  ;;  %v1141_v6 = vmul.u32.u64.high 3435973837, %v609_v1, %v1140_v5  ;;  %v611_v7 = vadd.s32 16, %v609_v1 }
   0xe   : > { %896 = vmatprep.subr.bf16.mxu1 %v950_v9  ;;  %v966_v25 = vld [vmem:[%s1192_s1 + $0xf0] sm:$0xff]   ;;  %s862_s20 = sshll.u32 %s1202_s13, 4  ;;  %v970_v29 = vld [vmem:[%s1192_s1 + $0xf8] sm:$0xff]  }
   0xf   : > { %v967_v26 = vld [vmem:[%s1192_s1 + $0x30] sm:$0xff]   ;;  %v971_v30 = vld [vmem:[%s1192_s1 + $0x38] sm:$0xff]   ;;  %s1123_s29 = scalar_lea.vmem %s1191_s0, %s862_s20  ;;  %v1143_v8 = vmul.u32.u64.low 3435973837, %v611_v7  ;;  %v1144_v9 = vmul.u32.u64.high 3435973837, %v611_v7, %v1143_v8  ;;  %s170_s22 = scalar_lea.vmem %s1194_s3, %s862_s20 }
  0x10   : > { %869 = vmatpush3.bf16.msra.mxu0 %v951_v10  ;;  %v968_v27 = vld [vmem:[%s1192_s1 + $0xb0] sm:$0xff]   ;;  %v972_v31 = vld [vmem:[%s1192_s1 + $0xb8] sm:$0xff]   ;;  %v973_v32 = vld [vmem:[%s1123_s29] sm:$0xff]   ;;  %v629_v10 = vshrl.u32 %v1138_v4, 2 }
  0x11   : > { %897 = vmatpush3.bf16.msra.mxu1 %v952_v11  ;;  %870 = vmatprep.subr.bf16.mxu0 %v953_v12  ;;  %v974_v33 = vld [vmem:[%s1123_s29 + $0x8] ss:$0 sps:$4 sm:$0x77]   ;;  %v176_v34 = vld [vmem:[%s1123_s29] sm:$0xc]  ;;  %v196_v36 = vshrl.u32 %v973_v32, 16 }
  0x12   : > { %898 = vmatprep.subr.bf16.mxu1 %v954_v13  ;;  %v177_v35 = vld [vmem:[%s1123_s29 + $0x4] sm:$0xf]  ;;  %v198_v37 = vshll.u32 %v973_v32, 16  ;;  %v203_v38 = vshll.u32 %v974_v33, 16  ;;  %v180_v40 = vld [vmem:[%s1123_s29] sm:$0x8] }
  0x13   : > { %v819_v39 = vcombine.low %v176_v34, %v177_v35  ;;  %v976_v41 = vld [vmem:[%s1123_s29 + $0x8] sm:$0x1f]   ;;  %v821_v44 = vcombine.low %v180_v40, %v177_v35  ;;  %v207_v53 = vshrl.u32 %v974_v33, 16  ;;  %v618_v11 = vshrl.u32 %v1141_v6, 2 }
  0x14   : > { %871 = vmatpush3.bf16.msra.mxu0 %v955_v14  ;;  %v200_v42 = vrot.slane %v198_v37, 1  ;;  %v205_v43 = vrot.slane %v203_v38, 1  ;;  %v247_v46 = vrot.slane %v976_v41, 3  ;;  %v232_v48 = vshrl.u32 %v976_v41, 16 }
  0x15   : > { %899 = vmatpush3.bf16.msra.mxu1 %v956_v15  ;;  %872 = vmatprep.subr.bf16.mxu0 %v957_v16  ;;  %v224_v45 = vshrl.u32 %v819_v39, 16  ;;  %v227_v47 = vshll.u32 %v819_v39, 16  ;;  %v235_v49 = vshll.u32 %v976_v41, 16  ;;  %v246_v51 = vrot.slane %v821_v44, 3 }
  0x16   : > { %900 = vmatprep.subr.bf16.mxu1 %v958_v17  ;;  %v201_v50 = vor.u32 %v200_v42, %v196_v36  ;;  %v234_v55 = vrot.slane %v232_v48, 2  ;;  %v209_v59 = vor.u32 %v207_v53, %v205_v43  ;;  %v978_v63 = vld [vmem:[%s1123_s29 + $0x8] ss:$0 sps:$4 sm:$0x33]   ;;  %v630_v12 = vmul.u32 5, %v629_v10 }
  0x17   : > { %v226_v52 = vrot.slane %v224_v45, 2  ;;  %v229_v54 = vrot.slane %v227_v47, 3  ;;  %v237_v56 = vrot.slane %v235_v49, 3  ;;  %v248_v58 = vsel %vm245_vm0, %v246_v51, %v247_v46 }
  0x18   : > { %873 = vmatpush3.bf16.msra.mxu0 %v959_v18  ;;  %v206_v57 = vsel %vm194_vm1, %v201_v50, %v205_v43  ;;  %592 = vmatprep.mubr.bf16.mxu1 %v248_v58  ;;  %v619_v13 = vmul.u32 5, %v618_v11  ;;  %v640_v14 = vshrl.u32 %v1144_v9, 2  ;;  %v631_v15 = vsub.s32 %v610_v2, %v630_v12 }
  0x19   : > { %901 = vmatpush3.bf16.msra.mxu1 %v960_v19  ;;  %874 = vmatprep.subr.bf16.mxu0 %v961_v20  ;;  %v230_v60 = vor.u32 %v229_v54, %v226_v52  ;;  %v238_v61 = vor.u32 %v237_v56, %v234_v55  ;;  %v989_v43 = vmov 0.0   ;;  %vm676_vm0 = vcmask 257024  }
  0x1a   : > { %902 = vmatprep.subr.bf16.mxu1 %v962_v21  ;;  %544 = vmatprep.mubr.bf16.mxu0 %v206_v57  ;;  %v620_v16 = vsub.s32 %v609_v1, %v619_v13  ;;  %v641_v17 = vmul.u32 5, %v640_v14  ;;  %vm646_vm3 = vcmp.ne.s32.totalorder %v631_v15, 0  ;;  %vm649_vm4 = vcmp.lt.s32.totalorder %v631_v15, 0 }
  0x1b   : > { %v239_v62 = vsel %vm222_vm2, %v230_v60, %v238_v61  ;;  %v655_v18 = vadd.s32 5, %v631_v15  ;;  %vm1149_vm7 = vmand %vm649_vm4, %vm646_vm3  ;;  %vm742_vm1 = vcmask 261125   ;;  %vm744_vm2 = vcmask 253952  }
  0x1c   : > { %875 = vmatpush3.bf16.msra.mxu0 %v963_v22  ;;  %vm645_vm5 = vcmp.ne.s32.totalorder %v620_v16, 0  ;;  %vm648_vm6 = vcmp.lt.s32.totalorder %v620_v16, 0  ;;  %v642_v19 = vsub.s32 %v611_v7, %v641_v17  ;;  %v654_v21 = vadd.s32 5, %v620_v16 }
  0x1d   : > { %903 = vmatpush3.bf16.msra.mxu1 %v964_v23  ;;  %876 = vmatprep.subr.bf16.mxu0 %v965_v24  ;;  %vm1153_vm8 = vmand %vm648_vm6, %vm645_vm5  ;;  %v822_v24 = vld [vmem:[%s1193_s2] ss:$0 sm:$0xff]  ;;  %vm746_vm3 = vcmask 259074   ;;  %vm748_vm4 = vcmask 261127   ;;  %vm750_vm5 = vcmask 256000  }
  0x1e   : > { %904 = vmatprep.subr.bf16.mxu1 %v966_v25  ;;  %vm647_vm9 = vcmp.ne.s32.totalorder %v642_v19, 0  ;;  %vm650_vm10 = vcmp.lt.s32.totalorder %v642_v19, 0  ;;  %v656_v33 = vadd.s32 5, %v642_v19 }
  0x1f   : > { %vm1164_vm12 = vmand %vm650_vm10, %vm647_vm9 }
  0x20   : > { %877 = vmatpush3.bf16.msra.mxu0 %v967_v26  ;;  %v658_v26 = vsel %vm1149_vm7, %v655_v18, %v631_v15  ;;  %v659_v45 = vsel %vm1164_vm12, %v656_v33, %v642_v19 }
  0x21   : > { %905 = vmatpush3.bf16.msra.mxu1 %v968_v27  ;;  %878 = vmatprep.subr.bf16.mxu0 %v969_v28  ;;  %vm661_vm11 = vcmp.lt.s32.totalorder %v658_v26, 4  ;;  %vm662_vm14 = vcmp.lt.s32.totalorder %v659_v45, 4 }
  0x22   : > { %906 = vmatprep.subr.bf16.mxu1 %v970_v29  ;;  %v856_v44 = vsel %vm661_vm11, 1.0, %v989_v43 }
  0x24   : > { %879 = vmatpush3.bf16.msra.mxu0 %v971_v30 }
  0x25   : > { %907 = vmatpush3.bf16.msra.mxu1 %v972_v31  ;;  %v657_v31 = vsel %vm1153_vm8, %v654_v21, %v620_v16 }
  0x26   : > { %vm660_vm13 = vcmp.lt.s32.totalorder %v657_v31, 4 }
  0x27   : > { %545 = vmatmul.mubr.bf16.vlgmr.msra.gmra.mrb[0].mxu0 %v973_v32  ;;  %v855_v48 = vsel %vm660_vm13, 1.0, %v989_v43 }
  0x28   : > { %552 = vmatprep.mubr.bf16.mxu0 %v209_v59  ;;  %593 = vmatmul.mubr.bf16.vlgmr.msra.gmra.mrb[0].mxu1 %v239_v62 }
  0x29   : > { %600 = vmatprep.mubr.bf16.mxu1 %v247_v46 }
  0x2f   : > { %553 = vmatmul.mubr.bf16.gmra.mrb[4].mxu0 %v978_v63 }
  0x30   : > { %601 = vmatmul.mubr.bf16.gmra.mrb[4].mxu1 %v238_v61  ;;  %v857_v61 = vsel %vm662_vm14, 1.0, %v989_v43 }
  0xfa   : > { %v880_v22 = vpop.f32.mrb[0].mxu0 }
  0xfb   : > { %v881_v25 = vpop.f32.mrb[1].mxu0  ;;  %v908_v27 = vpop.f32.mrb[0].mxu1 }
  0xfc   : > { %v882_v28 = vadd.f32 %v881_v25, %v880_v22  ;;  %v883_v29 = vpop.f32.mrb[2].mxu0  ;;  %v909_v30 = vpop.f32.mrb[1].mxu1 }
  0xfd   : > { %v884_v32 = vpop.f32.mrb[3].mxu0  ;;  %v910_v35 = vadd.f32 %v909_v30, %v908_v27  ;;  %v911_v36 = vpop.f32.mrb[2].mxu1 }
  0xfe   : > { %v547_v34 = vadd.f32 %v882_v28, %v822_v24  ;;  %v885_v37 = vadd.f32 %v884_v32, %v883_v29  ;;  %v912_v39 = vpop.f32.mrb[3].mxu1 }
  0xff   : > { %v913_v42 = vadd.f32 %v912_v39, %v911_v36 }
 0x100   : > { %v595_v40 = vadd.f32 %v910_v35, %v547_v34  ;;  %v550_v41 = vadd.f32 %v885_v37, %v822_v24  ;;  %v858_v37 = vld [vmem:[%s1193_s2 + $0x1] ss:$0 sm:$0xff] }
 0x102   : > { %v598_v46 = vadd.f32 %v913_v42, %v550_v41  ;;  %v886_v47 = vpop.f32.mrb[4].mxu0  ;;  %v669_v56 = vmul.f32 %v855_v48, %v595_v40  ;;  %v859_v41 = vld [vmem:[%s1193_s2 + $0x2] ss:$0 sm:$0xff] }
 0x103   : > { %v887_v49 = vpop.f32.mrb[5].mxu0  ;;  %v914_v51 = vpop.f32.mrb[4].mxu1 }
 0x104   : > { %v670_v50 = vmul.f32 %v856_v44, %v598_v46  ;;  %v888_v52 = vadd.f32 %v887_v49, %v886_v47  ;;  %v889_v53 = vpop.f32.mrb[6].mxu0  ;;  %v915_v54 = vpop.f32.mrb[5].mxu1  ;;  %v673_v1 = vsel %vm672_vm15, %v669_v56, 0.0 }
 0x105   : > { %v890_v55 = vpop.f32.mrb[7].mxu0  ;;  %v916_v58 = vadd.f32 %v915_v54, %v914_v51  ;;  %v917_v59 = vpop.f32.mrb[6].mxu1 }
 0x106   : > { %v555_v57 = vadd.f32 %v888_v52, %v822_v24  ;;  %v918_v60 = vpop.f32.mrb[7].mxu1  ;;  %v674_v63 = vsel %vm672_vm15, %v670_v50, 0.0 }
 0x107   : > { %v675_v2 = vadd.f32 %v674_v63, %v673_v1 }
 0x108   : > { %v603_v62 = vadd.f32 %v916_v58, %v555_v57 }
 0x10a   : > { %v671_v0 = vmul.f32 %v857_v61, %v603_v62 }
 0x10c   : > { %v677_v3 = vsel %vm676_vm0, %v671_v0, 0.0 }
 0x10d   : > { %v678_v4 = vadd.f32 %v677_v3, %v675_v2 }
 0x10f   : > { %679 = vadd.xlane.f32.xlu0 %v678_v4 }
 0x19c   : > { %v680_v5 = vpop.xlane.xlu0 %679 }
 0x19d   : > { %v681_v6 = vrot.slane %v680_v5, 4 }
 0x19f   : > { %v682_v7 = vadd.f32 %v681_v6, %v680_v5 }
 0x1a1   : > { %v683_v8 = vrot.slane %v682_v7, 2 }
 0x1a3   : > { %v684_v9 = vadd.f32 %v683_v8, %v682_v7 }
 0x1a5   : > { %v685_v10 = vrot.slane %v684_v9, 1 }
 0x1a7   : > { %v686_v11 = vadd.f32 %v685_v10, %v684_v9 }
 0x1a9   : > { %926 = vpush %v686_v11 }
 0x1da   : > { %s927_s7 = spop %926 }
 0x1db   : > { %s688_s8 = smul.f32 0.001953125, %s927_s7 }
 0x1dd   : > { %v689_v12 = vstv %s688_s8 }
 0x1de   : > { %v690_v13 = vsub.f32 %v595_v40, %v689_v12  ;;  %v691_v14 = vsub.f32 %v598_v46, %v689_v12  ;;  %v692_v15 = vsub.f32 %v603_v62, %v689_v12 }
 0x1e0   : > { %v693_v16 = vmul.f32 %v855_v48, %v690_v13  ;;  %v694_v17 = vmul.f32 %v856_v44, %v691_v14  ;;  %v695_v18 = vmul.f32 %v857_v61, %v692_v15 }
 0x1e2   : > { %v696_v19 = vmul.f32 %v693_v16, %v693_v16  ;;  %v697_v20 = vmul.f32 %v694_v17, %v694_v17  ;;  %v698_v21 = vmul.f32 %v695_v18, %v695_v18 }
 0x1e4   : > { %v699_v22 = vsel %vm672_vm15, %v696_v19, 0.0  ;;  %v700_v23 = vsel %vm672_vm15, %v697_v20, 0.0  ;;  %v702_v25 = vsel %vm676_vm0, %v698_v21, 0.0 }
 0x1e5   : > { %v701_v24 = vadd.f32 %v700_v23, %v699_v22 }
 0x1e7   : > { %v703_v26 = vadd.f32 %v702_v25, %v701_v24 }
 0x1e9   : > { %704 = vadd.xlane.f32.xlu0 %v703_v26 }
 0x276   : > { %v705_v27 = vpop.xlane.xlu0 %704 }
 0x277   : > { %v706_v28 = vrot.slane %v705_v27, 4 }
 0x279   : > { %v707_v29 = vadd.f32 %v706_v28, %v705_v27 }
 0x27b   : > { %v708_v30 = vrot.slane %v707_v29, 2 }
 0x27d   : > { %v709_v31 = vadd.f32 %v708_v30, %v707_v29 }
 0x27f   : > { %v710_v32 = vrot.slane %v709_v31, 1 }
 0x281   : > { %v711_v33 = vadd.f32 %v710_v32, %v709_v31 }
 0x283   : > { %928 = vpush %v711_v33 }
 0x2b4   : > { %s929_s9 = spop %928 }
 0x2b5   : > { %s713_s10 = smul.f32 0.001953125, %s929_s9 }
 0x2b7   : > { %s714_s11 = sadd.f32 1e-05, %s713_s10 }
 0x2b9   : > { %v715_v34 = vstv %s714_s11 }
 0x2ba   : > { %979 = vrsqrt.f32 %v715_v34 }
 0x2c4   : > { %v980_v35 = vpop.eup %979 }
 0x2c5   : > { %930 = vpush %v980_v35 }
 0x2f6   : > { %s931_s14 = spop %930 }
 0x2f7   : > { %v718_v36 = vstv %s931_s14 }
 0x2f8   : > { %v719_v38 = vmul.f32 %v718_v36, %v690_v13  ;;  %v720_v39 = vmul.f32 %v718_v36, %v691_v14  ;;  %v721_v40 = vmul.f32 %v718_v36, %v692_v15 }
 0x2fa   : > { %v727_v42 = vmul.f32 %v858_v37, %v719_v38  ;;  %v728_v43 = vmul.f32 %v858_v37, %v720_v39  ;;  %v729_v44 = vmul.f32 %v858_v37, %v721_v40 }
 0x2fc   : > { %v735_v45 = vadd.f32 %v859_v41, %v727_v42  ;;  %v736_v46 = vadd.f32 %v859_v41, %v728_v43  ;;  %v737_v47 = vadd.f32 %v859_v41, %v729_v44 }
 0x2fe   : > { %v738_v48 = vmax.f32 %v735_v45, 0.0  ;;  %v739_v49 = vmax.f32 %v736_v46, 0.0  ;;  %v740_v50 = vmax.f32 %v737_v47, 0.0 }
 0x300   : > { %741 = vst.msk [vmem:[%s170_s22] sm:$0xf] %vm676_vm0, %v738_v48 }
 0x301   : > { %743 = vst.msk [vmem:[%s170_s22 - $0x1] sm:$0xe0] %vm742_vm1, %v738_v48 }
 0x302   : > { %745 = vst.msk [vmem:[%s170_s22 + $0x7] sm:$0x1] %vm744_vm2, %v739_v49 }
 0x303   : > { %747 = vst.msk [vmem:[%s170_s22 + $0x6] sm:$0x3c] %vm746_vm3, %v739_v49 }
 0x304   : > { %749 = vst.msk [vmem:[%s170_s22 + $0x5] sm:$0x80] %vm748_vm4, %v739_v49 }
 0x305   : > { %751 = vst.msk [vmem:[%s170_s22 + $0xd] sm:$0x7] %vm750_vm5, %v740_v50 }
 0x306 PF: > { %s13_s12 = sadd.s32 1, %s987_s12  }
 0x307   : > { %p10_p4 = scmp.ge.s32.totalorder %s13_s12, 4  }
 0x309   :  { %12 = sbr.rel (!%p10_p4) target bundleno = 1 (0x1), region = 62 }

// kernel: _lambda_.7
= control target key start
LH: loop header
LB: loop body
LE: loop exit
PB: predicated region body
PF: predicated region fallthrough
CT: control target
= control target key end

     0   :  { %8 = vsyncpa [#allocation3], 0  ;;  %s1168_s0 = inlined_call_operand.vmem [shape: bf16[2,16,128], index: 0, kind: input, shape index: {}]   ;;  %s1169_s1 = inlined_call_operand.vmem [shape: bf16[512,32], index: 1, kind: input, shape index: {}]   ;;  %s1170_s2 = inlined_call_operand.vmem [shape: f32[3,32], index: 2, kind: input, shape index: {}]   ;;  %s1171_s3 = inlined_call_operand.hbm [shape: f32[2,1,32], index: 3, kind: output, shape index: {}]  }
   0x1   :  { %10 = vsyncpa [#allocation3 + $0x1], 0  ;;  %s956_s12 = smov 0   ;;  %s958_s13 = smov 0  }
   0x2   :  { %s960_s14 = smov 0   ;;  %s962_s15 = smov 0  }
   0x3 LB: > { %s977_s16 = sadd.s32 4294967295, %s932_s15   ;;  %s692_s17 = sadd.s32 4294967294, %s932_s15   ;;  %s932_s15 = sphi %s962_s15, %s1177_s15   ;;  %s928_s14 = sphi %s960_s14, %s1176_s14   ;;  %s924_s13 = sphi %s958_s13, %s1175_s13   ;;  %s920_s12 = sphi %s956_s12, %s1174_s12  }
   0x4   : > { %s981_s18 = sadd.s32 1, %s932_s15   ;;  %s91_s19 = sadd.s32 1, %s928_s14 }
   0x5   : > { %s88_s20 = ssub.s32 %s932_s15, %s981_s18  ;;  %p101_p0 = scmp.ne.s32.totalorder %s928_s14, %s924_s13 }
   0x6   : > { %p89_p1 = scmp.eq.s32.totalorder %s88_s20, 0  ;;  %p102_p2 = scmp.eq.s32.totalorder %s977_s16, 1 }
   0x7   : > { %p107_p3 = scmp.ne.s32.totalorder %s924_s13, %s920_s12  ;;  %p108_p4 = scmp.eq.s32.totalorder %s692_s17, 1 }
   0x8   : > { %s992_s21 = scalar_select %p89_p1, %s928_s14, %s91_s19  }
   0x9   : > { %p994_p5 = por %p102_p2, %p101_p0  ;;  %p998_p6 = por %p108_p4, %p107_p3 }
   0xa   : > { %p695_p7 = scmp.ge.s32.totalorder %s932_s15, 1  ;;  %p140_p8 = scmp.lt.s32.totalorder %s932_s15, 3 }
   0xc   : > { %p141_p9 = pnand %p695_p7, %p140_p8 }
   0xd   : > { %v833_v0 = vld [vmem:[%s1169_s1 + $0x40] sm:$0xff] (!%p141_p9)   ;;  %v837_v4 = vld [vmem:[%s1169_s1 + $0x48] sm:$0xff] (!%p141_p9)   ;;  %v841_v8 = vld [vmem:[%s1169_s1 + $0x50] sm:$0xff] (!%p141_p9)   ;;  %p163_p10 = scmp.lt.s32.totalorder (!%p141_p9), %s977_s16, 1  ;;  %v545_v49 = vlaneseq (!%p141_p9)  ;;  %vm567_vm4 = vcmask (!%p141_p9), 259072   ;;  %s161_s6 = sand.u32 (!%p141_p9), 1, %s924_s13  }
   0xe   : > { %144 = sbr.rel (%p141_p9) target bundleno = 793 (0x319), region = 32  ;;  %v834_v1 = vld [vmem:[%s1169_s1 + $0xc0] sm:$0xff] (!%p141_p9)   ;;  %741 = vmatprep.subr.bf16.mxu0 (!%p141_p9), %v833_v0  ;;  %v838_v5 = vld [vmem:[%s1169_s1 + $0xc8] sm:$0xff] (!%p141_p9)   ;;  %v842_v9 = vld [vmem:[%s1169_s1 + $0xd0] sm:$0xff] (!%p141_p9)   ;;  %vm622_vm5 = vcmask (!%p141_p9), 253952   ;;  %s625_s19 = scalar_lea.sflag (!%p141_p9), [#allocation3], %s161_s6 }
   0xf   : > { %v835_v2 = vld [vmem:[%s1169_s1] sm:$0xff] (!%p141_p9)   ;;  %763 = vmatprep.subr.bf16.mxu1 (!%p141_p9), %v834_v1  ;;  %v839_v6 = vld [vmem:[%s1169_s1 + $0x8] sm:$0xff] (!%p141_p9)   ;;  %v843_v10 = vld [vmem:[%s1169_s1 + $0x10] sm:$0xff] (!%p141_p9)   ;;  %v546_v50 = vshrl.u32 (!%p141_p9), %v545_v49, 7 }
  0x10   : > { %v836_v3 = vld [vmem:[%s1169_s1 + $0x80] sm:$0xff] (!%p141_p9)   ;;  %742 = vmatpush3.bf16.msra.mxu0 (!%p141_p9), %v835_v2  ;;  %v840_v7 = vld [vmem:[%s1169_s1 + $0x88] sm:$0xff] (!%p141_p9)   ;;  %v844_v11 = vld [vmem:[%s1169_s1 + $0x90] sm:$0xff] (!%p141_p9)  }
  0x11   : > { %764 = vmatpush3.bf16.msra.mxu1 (!%p141_p9), %v836_v3  ;;  %743 = vmatprep.subr.bf16.mxu0 (!%p141_p9), %v837_v4  ;;  %v845_v12 = vld [vmem:[%s1169_s1 + $0x58] sm:$0xff] (!%p141_p9)   ;;  %v849_v16 = vld [vmem:[%s1169_s1 + $0x60] sm:$0xff] (!%p141_p9)   ;;  %v853_v20 = vld [vmem:[%s1169_s1 + $0x68] sm:$0xff] (!%p141_p9)   ;;  %v1105_v51 = vmul.u32.u64.low (!%p141_p9), 2863311531, %v546_v50  ;;  %v1106_v52 = vmul.u32.u64.high 2863311531, %v546_v50, %v1105_v51 }
  0x12   : > { %765 = vmatprep.subr.bf16.mxu1 (!%p141_p9), %v838_v5  ;;  %v846_v13 = vld [vmem:[%s1169_s1 + $0xd8] sm:$0xff] (!%p141_p9)   ;;  %v850_v17 = vld [vmem:[%s1169_s1 + $0xe0] sm:$0xff] (!%p141_p9)   ;;  %v854_v21 = vld [vmem:[%s1169_s1 + $0xe8] sm:$0xff] (!%p141_p9)  }
  0x13   : > { %v847_v14 = vld [vmem:[%s1169_s1 + $0x18] sm:$0xff] (!%p141_p9)   ;;  %v851_v18 = vld [vmem:[%s1169_s1 + $0x20] sm:$0xff] (!%p141_p9)   ;;  %v855_v22 = vld [vmem:[%s1169_s1 + $0x28] sm:$0xff] (!%p141_p9)   ;;  %v553_v53 = vshrl.u32 (!%p141_p9), %v1106_v52, 1 }
  0x14   : > { %744 = vmatpush3.bf16.msra.mxu0 (!%p141_p9), %v839_v6  ;;  %v848_v15 = vld [vmem:[%s1169_s1 + $0x98] sm:$0xff] (!%p141_p9)   ;;  %v852_v19 = vld [vmem:[%s1169_s1 + $0xa0] sm:$0xff] (!%p141_p9)   ;;  %v856_v23 = vld [vmem:[%s1169_s1 + $0xa8] sm:$0xff] (!%p141_p9)   ;;  %v934_v6 = vmov (!%p141_p9), 0.0  }
  0x15   : > { %766 = vmatpush3.bf16.msra.mxu1 %v840_v7  ;;  %745 = vmatprep.subr.bf16.mxu0 %v841_v8  ;;  %s164_s7 = scalar_select %p163_p10, %s977_s16, 1  ;;  %v857_v24 = vld [vmem:[%s1169_s1 + $0x70] sm:$0xff]   ;;  %v861_v28 = vld [vmem:[%s1169_s1 + $0x78] sm:$0xff]   ;;  %v554_v54 = vmul.u32 3, %v553_v53  ;;  %v701_v60 = vld [vmem:[%s1170_s2] ss:$0 sm:$0xff] }
  0x16   : > { %767 = vmatprep.subr.bf16.mxu1 %v842_v9  ;;  %v858_v25 = vld [vmem:[%s1169_s1 + $0xf0] sm:$0xff]   ;;  %v862_v29 = vld [vmem:[%s1169_s1 + $0xf8] sm:$0xff]  }
  0x17   : > { %v859_v26 = vld [vmem:[%s1169_s1 + $0x30] sm:$0xff]   ;;  %s740_s25 = sshll.u32 %s164_s7, 3  ;;  %v863_v30 = vld [vmem:[%s1169_s1 + $0x38] sm:$0xff]   ;;  %v555_v55 = vsub.s32 %v546_v50, %v554_v54  ;;  %s162_s7 = scalar_lea.vmem [#allocation2], %s161_s6 }
  0x18   : > { %746 = vmatpush3.bf16.msra.mxu0 %v843_v10  ;;  %v860_v27 = vld [vmem:[%s1169_s1 + $0xb0] sm:$0xff]   ;;  %s167_s8 = scalar_lea.vmem %s1168_s0, %s740_s25  ;;  %v864_v31 = vld [vmem:[%s1169_s1 + $0xb8] sm:$0xff]   ;;  %s637_s9 = sshll.u32 %s162_s7, 4  ;;  %s1128_s9 = int_to_ptr.vmem [resolvable:$true] %s637_s9 }
  0x19   : > { %768 = vmatpush3.bf16.msra.mxu1 %v844_v11  ;;  %747 = vmatprep.subr.bf16.mxu0 %v845_v12  ;;  %v865_v32 = vld [vmem:[%s167_s8] ss:$0 sps:$4 sm:$0xff]   ;;  %v171_v33 = vld [vmem:[%s167_s8] sm:$0xe]  ;;  %v172_v34 = vld [vmem:[%s167_s8 + $0x4] sm:$0x1] }
  0x1a   : > { %769 = vmatprep.subr.bf16.mxu1 %v846_v13  ;;  %v173_v35 = vld [vmem:[%s167_s8] sm:$0xc]  ;;  %v178_v36 = vshrl.u32 %v865_v32, 16  ;;  %v180_v37 = vshll.u32 %v865_v32, 16  ;;  %v699_v38 = vcombine.low %v171_v33, %v172_v34  ;;  %vm558_vm0 = vcmp.ne.s32.totalorder %v555_v55, 0 }
  0x1b   : > { %v700_v39 = vcombine.low %v173_v35, %v172_v34  ;;  %v169_v47 = vld [vmem:[%s167_s8] sm:$0x7]  ;;  %vm559_vm1 = vcmp.lt.s32.totalorder %v555_v55, 0  ;;  %v561_v56 = vadd.s32 3, %v555_v55  ;;  %s737_s8 = sshll.u32 %s977_s16, 4  ;;  %s935_s16 = smov [#allocation2]  }
  0x1c   : > { %748 = vmatpush3.bf16.msra.mxu0 %v847_v14  ;;  %v182_v40 = vrot.slane %v180_v37, 1  ;;  %v191_v41 = vshrl.u32 %v699_v38, 16  ;;  %v194_v42 = vshll.u32 %v699_v38, 16  ;;  %vm560_vm2 = vmand %vm559_vm1, %vm558_vm0  ;;  %v735_v33 = vld [vmem:[%s1170_s2 + $0x1] ss:$0 sm:$0xff]  ;;  %s1126_s17 = scalar_lea.hbm %s1171_s3, %s737_s8 }
  0x1d   : > { %770 = vmatpush3.bf16.msra.mxu1 %v848_v15  ;;  %749 = vmatprep.subr.bf16.mxu0 %v849_v16  ;;  %v202_v43 = vrot.slane %v700_v39, 2  ;;  %v562_v57 = vsel %vm560_vm2, %v561_v56, %v555_v55  ;;  %v736_v35 = vld [vmem:[%s1170_s2 + $0x2] ss:$0 sm:$0xff] }
  0x1e   : > { %771 = vmatprep.subr.bf16.mxu1 %v850_v17  ;;  %v183_v44 = vor.u32 %v182_v40, %v178_v36  ;;  %v193_v45 = vrot.slane %v191_v41, 1  ;;  %v196_v46 = vrot.slane %v194_v42, 2  ;;  %vm563_vm3 = vcmp.lt.s32.totalorder %v562_v57, 2 }
  0x1f   : > { %537 = vmatprep.mubr.bf16.mxu1 %v202_v43  ;;  %v734_v7 = vsel %vm563_vm3, 1.0, %v934_v6 }
  0x20   : > { %750 = vmatpush3.bf16.msra.mxu0 %v851_v18  ;;  %497 = vmatprep.mubr.bf16.mxu0 %v183_v44  ;;  %v197_v48 = vor.u32 %v196_v46, %v193_v45 }
  0x21   : > { %772 = vmatpush3.bf16.msra.mxu1 %v852_v19  ;;  %751 = vmatprep.subr.bf16.mxu0 %v853_v20 }
  0x22   : > { %773 = vmatprep.subr.bf16.mxu1 %v854_v21 }
  0x24   : > { %752 = vmatpush3.bf16.msra.mxu0 %v855_v22 }
  0x25   : > { %774 = vmatpush3.bf16.msra.mxu1 %v856_v23  ;;  %753 = vmatprep.subr.bf16.mxu0 %v857_v24 }
  0x26   : > { %775 = vmatprep.subr.bf16.mxu1 %v858_v25 }
  0x28   : > { %754 = vmatpush3.bf16.msra.mxu0 %v859_v26 }
  0x29   : > { %776 = vmatpush3.bf16.msra.mxu1 %v860_v27  ;;  %755 = vmatprep.subr.bf16.mxu0 %v861_v28 }
  0x2a   : > { %777 = vmatprep.subr.bf16.mxu1 %v862_v29 }
  0x2c   : > { %756 = vmatpush3.bf16.msra.mxu0 %v863_v30 }
  0x2d   : > { %778 = vmatpush3.bf16.msra.mxu1 %v864_v31 }
  0x2f   : > { %498 = vmatmul.mubr.bf16.vlgmr.msra.gmra.mrb[0].mxu0 %v169_v47 }
  0x30   : > { %538 = vmatmul.mubr.bf16.vlgmr.msra.gmra.mrb[0].mxu1 %v197_v48 }
 0x102   : > { %v757_v58 = vpop.f32.mrb[0].mxu0 }
 0x103   : > { %v779_v59 = vpop.f32.mrb[0].mxu1  ;;  %v758_v61 = vpop.f32.mrb[1].mxu0 }
 0x104   : > { %v759_v62 = vadd.f32 %v758_v61, %v757_v58  ;;  %v780_v63 = vpop.f32.mrb[1].mxu1  ;;  %v760_v0 = vpop.f32.mrb[2].mxu0 }
 0x105   : > { %v781_v1 = vadd.f32 %v780_v63, %v779_v59  ;;  %v782_v2 = vpop.f32.mrb[2].mxu1  ;;  %v761_v3 = vpop.f32.mrb[3].mxu0 }
 0x106   : > { %v500_v4 = vadd.f32 %v759_v62, %v701_v60  ;;  %v783_v5 = vpop.f32.mrb[3].mxu1 }
 0x108   : > { %v540_v8 = vadd.f32 %v781_v1, %v500_v4 }
 0x10a   : > { %v566_v9 = vmul.f32 %v734_v7, %v540_v8 }
 0x10c   : > { %v568_v10 = vsel %vm567_vm4, %v566_v9, 0.0 }
 0x10d   : > { %569 = vadd.xlane.f32.xlu0 %v568_v10 }
 0x19a   : > { %v570_v11 = vpop.xlane.xlu0 %569 }
 0x19b   : > { %v571_v12 = vrot.slane %v570_v11, 4 }
 0x19d   : > { %v572_v13 = vadd.f32 %v571_v12, %v570_v11 }
 0x19f   : > { %v573_v14 = vrot.slane %v572_v13, 2 }
 0x1a1   : > { %v574_v15 = vadd.f32 %v573_v14, %v572_v13 }
 0x1a3   : > { %v575_v16 = vrot.slane %v574_v15, 1 }
 0x1a5   : > { %v576_v17 = vadd.f32 %v575_v16, %v574_v15 }
 0x1a7   : > { %787 = vpush %v576_v17 }
 0x1d8   : > { %s788_s20 = spop %787 }
 0x1d9   : > { %s578_s24 = smul.f32 0.0078125, %s788_s20  ;;  %s870_s20 = scalar_lea.vmem %s1128_s9, 16 }
 0x1da   : > { %p871_p11 = scmp.ne.s32.totalorder %s1128_s9, %s870_s20 }
 0x1db   : > { %v579_v18 = vstv %s578_s24  ;;  %s874_s24 = sshll.u32 %s935_s16, 4  ;;  %s875_s24 = int_to_ptr.vmem [resolvable:$false] %s874_s24 }
 0x1dc   : > { %v580_v19 = vsub.f32 %v540_v8, %v579_v18  ;;  %p872_p12 = pnand %p871_p11, %p994_p5  ;;  %p877_p0 = scmp.lt.s32.totalorder %s1128_s9, %s875_s24 }
 0x1de   : > { %v581_v20 = vmul.f32 %v734_v7, %v580_v19  ;;  %p873_p13 = pneg %p872_p12 }
 0x1e0   : > { %v582_v21 = vmul.f32 %v581_v20, %v581_v20 }
 0x1e2   : > { %v583_v22 = vsel %vm567_vm4, %v582_v21, 0.0 }
 0x1e3   : > { %584 = vadd.xlane.f32.xlu0 %v583_v22 }
 0x270   : > { %v585_v23 = vpop.xlane.xlu0 %584 }
 0x271   : > { %v586_v24 = vrot.slane %v585_v23, 4 }
 0x273   : > { %v587_v25 = vadd.f32 %v586_v24, %v585_v23 }
 0x275   : > { %v588_v26 = vrot.slane %v587_v25, 2 }
 0x277   : > { %v589_v27 = vadd.f32 %v588_v26, %v587_v25 }
 0x279   : > { %v590_v28 = vrot.slane %v589_v27, 1 }
 0x27b   : > { %v591_v29 = vadd.f32 %v590_v28, %v589_v27 }
 0x27d   : > { %789 = vpush %v591_v29 }
 0x2ae   : > { %s790_s25 = spop %789 }
 0x2af   : > { %s593_s26 = smul.f32 0.0078125, %s790_s25  ;;  %s876_s25 = scalar_lea.vmem %s875_s24, 32 }
 0x2b0   : > { %p878_p1 = scmp.lt.s32.totalorder %s876_s25, %s870_s20 }
 0x2b1   : > { %s594_s27 = sadd.f32 1e-05, %s593_s26 }
 0x2b2   : > { %p879_p2 = por %p878_p1, %p877_p0 }
 0x2b3   : > { %v595_v30 = vstv %s594_s27 }
 0x2b4   : > { %868 = vrsqrt.f32 %v595_v30  ;;  %p880_p3 = pnand %p879_p2, %p873_p13 }
 0x2be   : > { %v869_v31 = vpop.eup %868 }
 0x2bf   : > { %791 = vpush %v869_v31 }
 0x2f0   : > { %s792_s28 = spop %791 }
 0x2f1   : > { %v598_v32 = vstv %s792_s28 }
 0x2f2   : > { %v599_v34 = vmul.f32 %v598_v32, %v580_v19 }
 0x2f4   : > { %v605_v36 = vmul.f32 %v735_v33, %v599_v34 }
 0x2f6   : > { %v611_v37 = vadd.f32 %v736_v35, %v605_v36 }
 0x2f8   : > { %v612_v38 = vmax.f32 %v611_v37, 0.0 }
 0x2fa   : > { %v613_v39 = vmul.f32 %v734_v7, %v612_v38 }
 0x2fc   : > { %v614_v40 = vsel %vm567_vm4, %v613_v39, 0.0 }
 0x2fd   : > { %v615_v41 = vrot.slane %v614_v40, 4 }
 0x2ff   : > { %v616_v42 = vadd.f32 %v615_v41, %v614_v40 }
 0x301   : > { %v617_v43 = vrot.slane %v616_v42, 2 }
 0x303   : > { %v618_v44 = vadd.f32 %v617_v43, %v616_v42 }
 0x305   : > { %v619_v45 = vrot.slane %v618_v44, 1 }
 0x307   : > { %v620_v46 = vadd.f32 %v619_v45, %v618_v44 }
 0x309   : > { %v621_v47 = vmul.f32 0.25, %v620_v46 }
 0x30b   : > { %623 = vst.msk [vmem:[%s162_s7] sm:$0x1] %vm622_vm5, %v621_v47 }
 0x30c   : > { %883 = shalt.err (!%p880_p3)
}
 0x30d   : > { %s884_s26 = scalar_lea.hbm %s1126_s17, 16  ;;  %s888_s29 = scalar_lea.hbm %s1171_s3, 32 }
 0x30e   : > { %p885_p4 = scmp.ne.s32.totalorder %s1126_s17, %s884_s26  ;;  %p889_p9 = scmp.lt.u32.totalorder %s1126_s17, %s1171_s3 }
 0x30f   : > { %p890_p10 = scmp.lt.u32.totalorder %s888_s29, %s884_s26  ;;  %p892_p12 = scmp.lt.u32.totalorder %s884_s26, %s1126_s17 }
 0x310   : > { %p886_p7 = pnand %p885_p4, %p994_p5 }
 0x311   : > { %p891_p11 = por %p890_p10, %p889_p9 }
 0x312   : > { %p887_p8 = pneg %p886_p7 }
 0x313   : > { %p893_p13 = por %p892_p12, %p891_p11 }
 0x315   : > { %p894_p0 = pnand %p893_p13, %p887_p8 }
 0x317   : > { %897 = shalt.err (!%p894_p0)
}
 0x318   : > { %793 = dma.vmem_to_hbm [thread:$0]  (%p994_p5), %s1128_s9, 16, %s1126_s17, %s625_s19  }
 0x319 PF: > { %p799_p1 = scmp.ge.s32.totalorder %s932_s15, 2  ;;  %s649_s5 = sand.u32 1, %s920_s12  }
 0x31a   : > { %s650_s6 = scalar_lea.sflag [#allocation3], %s649_s5 }
 0x31b   : > { %p796_p2 = pnand %p799_p1, %p998_p6 }
 0x31d   : > { %915 = dma.done.wait (!%p796_p2), %s650_s6, 16  }
 0x31e   : > { %917 = vsyncadd (!%p796_p2), %s650_s6, 4294967280  ;;  %p13_p3 = scmp.ge.s32.totalorder %s981_s18, 4   ;;  %s1174_s12 = smov %s924_s13 }
 0x31f   : > { %s1175_s13 = smov %s928_s14  ;;  %s1176_s14 = smov %s992_s21 }
 0x320   : > { %s1177_s15 = smov %s981_s18  ;;  %15 = sbr.rel (!%p13_p3) target bundleno = 3 (0x3), region = 67 }
 0x327   :  { %654 = vsyncpa [#allocation3], 1 }
 0x328   :  { %656 = vsyncpa [#allocation3 + $0x1], 1 }

</bundles_post_ra>
